<compile_context>
chip_gen: v7x
topology: tpu7x:2x2x1
jax: 0.10.0
libtpu: 0.0.40
codegen_flags: <defaults>
</compile_context>

<pallas_src>
import numpy as np
import jax
import jax.numpy as jnp
from jax import lax
from jax.experimental import pallas as pl
from jax.experimental.pallas import tpu as pltpu

N_CH1, N_CH2, N_CH3, N_CH4 = 25, 50, 100, 200
KT = 10        # temporal kernel width of every conv
POOL_K = 3     # temporal max-pool window size


# ----------------------------- in-kernel helpers -----------------------------
def _elu(z):
    # ELU(alpha=1): x if x>0 else exp(x)-1   (clamp arg of exp for safety)
    return jnp.where(z > 0, z, jnp.exp(jnp.minimum(z, 0.0)) - 1.0)


def _make_kernel(b_tile, stage_dims):
    """Build the fused 4-stage kernel for static (b_tile, per-stage dims).

    stage_dims: 4-tuple of (l_in, tp, ws) Python ints per stage, where
      l_in = per-sample input length, tp = per-sample pooled length,
      ws   = (tp-1)*stride + 1 = selector row count (intra-sample only).
    """

    def _stage(x_bf, w, scale, shift, sel, l_in, tp, ws):
        # x_bf : (c_in, b_tile*l_in) bf16 — per-sample segments folded on lanes
        # w    : (c_out, KT*c_in) bf16, column order k*c_in + c
        # scale/shift : (c_out, 1) f32 — folded BatchNorm (eval)
        # sel  : (ws, tp) bf16 one-hot — shared per-sample stride subsample
        width = x_bf.shape[-1]
        wv = width - (KT - 1)
        # im2col: KT lane-shifted bf16 slices stacked on sublanes -> one MXU matmul
        cols = jnp.concatenate([x_bf[:, k:k + wv] for k in range(KT)], axis=0)
        z = jnp.dot(w, cols, preferred_element_type=jnp.float32)
        z = z * scale + shift                      # BatchNorm (must precede max)
        wm = wv - (POOL_K - 1)                     # window-max (window = 3)
        m = jnp.maximum(jnp.maximum(z[:, 0:wm], z[:, 1:wm + 1]), z[:, 2:wm + 2])
        # Per-sample stride subsample via the tiny shared one-hot selector.
        # Only intra-sample columns [bb*l_in, bb*l_in+ws) are ever read, so
        # cross-sample "garbage" conv/pool columns are provably never selected.
        parts = [
            jnp.dot(m[:, bb * l_in: bb * l_in + ws].astype(jnp.bfloat16), sel,
                    preferred_element_type=jnp.float32)
            for bb in range(b_tile)
        ]
        y = parts[0] if b_tile == 1 else jnp.concatenate(parts, axis=1)
        # ELU hoisted past pool + selection (monotone => commutes with max).
        return _elu(y)                             # (c_out, b_tile*tp) f32

    (l1, tp1, ws1), (l2, tp2, ws2), (l3, tp3, ws3), (l4, tp4, ws4) = stage_dims

    def kernel(x_ref,
               wc_ref, s1_ref, b1_ref, sel1_ref,
               w3_ref, s2_ref, b2_ref, sel2_ref,
               w4_ref, s3_ref, b3_ref, sel3_ref,
               w5_ref, s4_ref, b4_ref, sel4_ref,
               o_ref):
        y = _stage(x_ref[0], wc_ref[...], s1_ref[...], b1_ref[...],
                   sel1_ref[...], l1, tp1, ws1)
        y = _stage(y.astype(jnp.bfloat16), w3_ref[...], s2_ref[...],
                   b2_ref[...], sel2_ref[...], l2, tp2, ws2)
        y = _stage(y.astype(jnp.bfloat16), w4_ref[...], s3_ref[...],
                   b3_ref[...], sel3_ref[...], l3, tp3, ws3)
        y = _stage(y.astype(jnp.bfloat16), w5_ref[...], s4_ref[...],
                   b4_ref[...], sel4_ref[...], l4, tp4, ws4)
        # TODO(synk): the store is (200, b_tile*tp4); making it lane-dense
        # (transposed/flattened) needs an in-kernel relayout whose win is
        # bounded by the tiny (~KB) payload, so it is left as-is.
        o_ref[0] = y

    return kernel


# ------------------------------ host-side prep -------------------------------
def _make_selector(l_in, stride):
    """Shared per-sample one-hot stride-subsample selector (ws, tp), bf16.

    Exact in bf16 (entries are 0/1).  Only intra-sample window-max columns
    [0, ws) are referenced, with ws = (tp-1)*stride + 1 <= l_in - 11.
    """
    tc = l_in - (KT - 1)
    tp = (tc - POOL_K) // stride + 1
    ws = (tp - 1) * stride + 1
    sel = np.zeros((ws, tp), np.float32)
    for p in range(tp):
        sel[p * stride, p] = 1.0
    return jnp.asarray(sel, jnp.bfloat16), tp, ws


def _reshape_conv_w(w):
    """(c_out, c_in, 1, KT) -> (c_out, KT*c_in) matching im2col row order."""
    c_out, c_in = w.shape[0], w.shape[1]
    return jnp.transpose(w[:, :, 0, :], (0, 2, 1)).reshape(c_out, KT * c_in)


def pallas_forward(x, p, b_tile=16):
    n, _, h, t = x.shape
    b_tile = max(1, min(b_tile, n))
    # Keep >=2 grid steps when possible so v7x's two TensorCores both get work
    # (the batch grid axis is marked "parallel"); on v5e/v6e this is harmless.
    if n >= 2 and -(-n // b_tile) < 2:
        b_tile = max(1, (n + 1) // 2)

    x3 = x[:, 0]                                          # (N, H, T)
    n_pad = (-n) % b_tile
    if n_pad:
        x3 = jnp.concatenate([x3, jnp.zeros((n_pad, h, t), x3.dtype)], 0)
    g = x3.shape[0] // b_tile
    # fold batch into the lane axis: (G, H, B*T), sample b at columns
    # [b*T, (b+1)*T); pre-cast to bf16 (halves input DMA and im2col work).
    xf = (x3.reshape(g, b_tile, h, t).transpose(0, 2, 1, 3)
             .reshape(g, h, b_tile * t).astype(jnp.bfloat16))

    bf = jnp.bfloat16
    # ---- stage 1: fold conv1(+bias) and spatial conv2 into one weight ----
    w1 = p["w1"].reshape(N_CH1, KT)                       # (25, 10)
    w2 = p["w2"][:, :, :, 0]                              # (25, 25, H)
    wc = jnp.einsum("omh,mk->okh", w2, w1).reshape(N_CH1, KT * h)
    bias_c = jnp.einsum("omh,m->o", w2, p["b1"])
    s1 = p["s1"]
    sh1 = p["sh1"] + s1 * bias_c                          # fold conv bias into BN shift

    w3r = _reshape_conv_w(p["w3"])
    w4r = _reshape_conv_w(p["w4"])
    w5r = _reshape_conv_w(p["w5"])

    sel1, tp1, ws1 = _make_selector(t, 2)
    sel2, tp2, ws2 = _make_selector(tp1, 2)
    sel3, tp3, ws3 = _make_selector(tp2, 2)
    sel4, tp4, ws4 = _make_selector(tp3, 3)
    stage_dims = ((t, tp1, ws1), (tp1, tp2, ws2), (tp2, tp3, ws3), (tp3, tp4, ws4))

    args = (
        xf,
        wc.astype(bf), s1[:, None], sh1[:, None], sel1,
        w3r.astype(bf), p["s2"][:, None], p["sh2"][:, None], sel2,
        w4r.astype(bf), p["s3"][:, None], p["sh3"][:, None], sel3,
        w5r.astype(bf), p["s4"][:, None], p["sh4"][:, None], sel4,
    )

    in_specs = [pl.BlockSpec((1, h, b_tile * t), lambda i: (i, 0, 0))]
    # Grid-invariant weights/selectors total ~0.6 MiB, so default double
    # buffering is harmless on every generation (no vmem_limit needed).
    in_specs += [pl.BlockSpec(a.shape, lambda i: (0, 0)) for a in args[1:]]

    out = pl.pallas_call(
        _make_kernel(b_tile, stage_dims),
        out_shape=jax.ShapeDtypeStruct((g, N_CH4, b_tile * tp4), jnp.float32),
        grid=(g,),
        in_specs=in_specs,
        out_specs=pl.BlockSpec((1, N_CH4, b_tile * tp4), lambda i: (i, 0, 0)),
        compiler_params=pltpu.CompilerParams(dimension_semantics=("parallel",)),
    )(*args)

    # unfold batch: (G, C, B*tp4) -> (N, C*tp4)  (matches PyTorch .view(N, -1))
    out = out.reshape(g, N_CH4, b_tile, tp4).transpose(0, 2, 1, 3)
    out = out.reshape(g * b_tile, N_CH4 * tp4)
    return out[:n]


# ------------------------------ plain-JAX reference ---------------------------
def reference_forward(x, p):
    dn = ("NCHW", "OIHW", "NCHW")

    def conv(a, w):
        return lax.conv_general_dilated(a, w, (1, 1), "VALID", dimension_numbers=dn)

    def bn(a, s, sh):
        return a * s[None, :, None, None] + sh[None, :, None, None]

    def elu(a):
        return jnp.where(a > 0, a, jnp.exp(jnp.minimum(a, 0.0)) - 1.0)

    def pool(a, st):
        return lax.reduce_window(a, jnp.float32(-jnp.inf), lax.max,
                                 (1, 1, 1, POOL_K), (1, 1, 1, st), "VALID")

    y = conv(x, p["w1"]) + p["b1"][None, :, None, None]
    y = conv(y, p["w2"])
    y = pool(elu(bn(y, p["s1"], p["sh1"])), 2)
    y = conv(y, p["w3"])
    y = pool(elu(bn(y, p["s2"], p["sh2"])), 2)
    y = conv(y, p["w4"])
    y = pool(elu(bn(y, p["s3"], p["sh3"])), 2)
    y = conv(y, p["w5"])
    y = pool(elu(bn(y, p["s4"], p["sh4"])), 3)
    return y.reshape(x.shape[0], -1)


# --------------------------------- parameters ---------------------------------
def init_params(key, input_ch):
    ks = jax.random.split(key, 10)
    p = {}
    p["w1"] = jax.random.normal(ks[0], (N_CH1, 1, 1, KT), jnp.float32) / np.sqrt(KT)
    p["b1"] = 0.1 * jax.random.normal(ks[1], (N_CH1,), jnp.float32)
    p["w2"] = jax.random.normal(ks[2], (N_CH1, N_CH1, input_ch, 1),
                                jnp.float32) / np.sqrt(N_CH1 * input_ch)
    p["w3"] = jax.random.normal(ks[3], (N_CH2, N_CH1, 1, KT),
                                jnp.float32) / np.sqrt(N_CH1 * KT)
    p["w4"] = jax.random.normal(ks[4], (N_CH3, N_CH2, 1, KT),
                                jnp.float32) / np.sqrt(N_CH2 * KT)
    p["w5"] = jax.random.normal(ks[5], (N_CH4, N_CH3, 1, KT),
                                jnp.float32) / np.sqrt(N_CH3 * KT)
    # BatchNorm2d (eval mode): gamma, beta, running_mean, running_var -> scale/shift
    for i, c in zip((1, 2, 3, 4), (N_CH1, N_CH2, N_CH3, N_CH4)):
        kg, kb, km, kv = jax.random.split(ks[5 + i], 4)
        gamma = 1.0 + 0.1 * jax.random.normal(kg, (c,), jnp.float32)
        beta = 0.1 * jax.random.normal(kb, (c,), jnp.float32)
        mean = 0.1 * jax.random.normal(km, (c,), jnp.float32)
        var = 1.0 + 0.1 * jnp.abs(jax.random.normal(kv, (c,), jnp.float32))
        scale = gamma / jnp.sqrt(var + 1e-5)
        shift = beta - mean * scale
        p[f"s{i}"], p[f"sh{i}"] = scale, shift
    return p


# ------------------------------------ main -------------------------------------
if __name__ == "__main__":
    # Small Deep4-consistent shapes: batch=2, 1 input map, 4 EEG channels,
    # 200 time samples (small length that still survives the 4 pooling stages).
    N, IN_CH, IN_T = 2, 4, 200

    key = jax.random.PRNGKey(0)
    kp, kx = jax.random.split(key)
    params = init_params(kp, IN_CH)
    x = jax.random.normal(kx, (N, 1, IN_CH, IN_T), jnp.float32)   # NCHW input

    out = jax.block_until_ready(pallas_forward(x, params))
    ref = jax.block_until_ready(reference_forward(x, params))

    assert out.shape == ref.shape, (out.shape, ref.shape)
    np.testing.assert_allclose(np.asarray(out), np.asarray(ref), rtol=5e-2, atol=5e-2)
    print("KERNEL_OK")
</pallas_src>

<mosaic_0001>
module attributes {stable_mosaic.version = 11 : i64} {
  func.func @kernel(%arg0: i32, %arg1: memref<1x4x200xbf16, #tpu.memory_space<vmem>>, %arg2: memref<25x40xbf16, #tpu.memory_space<vmem>>, %arg3: memref<25x1xf32, #tpu.memory_space<vmem>>, %arg4: memref<25x1xf32, #tpu.memory_space<vmem>>, %arg5: memref<189x95xbf16, #tpu.memory_space<vmem>>, %arg6: memref<50x250xbf16, #tpu.memory_space<vmem>>, %arg7: memref<50x1xf32, #tpu.memory_space<vmem>>, %arg8: memref<50x1xf32, #tpu.memory_space<vmem>>, %arg9: memref<83x42xbf16, #tpu.memory_space<vmem>>, %arg10: memref<100x500xbf16, #tpu.memory_space<vmem>>, %arg11: memref<100x1xf32, #tpu.memory_space<vmem>>, %arg12: memref<100x1xf32, #tpu.memory_space<vmem>>, %arg13: memref<31x16xbf16, #tpu.memory_space<vmem>>, %arg14: memref<200x1000xbf16, #tpu.memory_space<vmem>>, %arg15: memref<200x1xf32, #tpu.memory_space<vmem>>, %arg16: memref<200x1xf32, #tpu.memory_space<vmem>>, %arg17: memref<4x2xbf16, #tpu.memory_space<vmem>>, %arg18: memref<1x200x2xf32, #tpu.memory_space<vmem>>) attributes {dimension_semantics = [#tpu.dimension_semantics<parallel>], iteration_bounds = array<i64: 2>, scalar_prefetch = 0 : i64, scratch_operands = 0 : i64, tpu.core_type = #tpu.core_type<tc>, window_params = [{transform_indices = @transform_0, window_bounds = array<i64: 1, 4, 200>}, {pipeline_mode = #tpu.pipeline_mode<synchronous>, transform_indices = @transform_1, window_bounds = array<i64: 25, 40>}, {pipeline_mode = #tpu.pipeline_mode<synchronous>, transform_indices = @transform_2, window_bounds = array<i64: 25, 1>}, {pipeline_mode = #tpu.pipeline_mode<synchronous>, transform_indices = @transform_3, window_bounds = array<i64: 25, 1>}, {pipeline_mode = #tpu.pipeline_mode<synchronous>, transform_indices = @transform_4, window_bounds = array<i64: 189, 95>}, {pipeline_mode = #tpu.pipeline_mode<synchronous>, transform_indices = @transform_5, window_bounds = array<i64: 50, 250>}, {pipeline_mode = #tpu.pipeline_mode<synchronous>, transform_indices = @transform_6, window_bounds = array<i64: 50, 1>}, {pipeline_mode = #tpu.pipeline_mode<synchronous>, transform_indices = @transform_7, window_bounds = array<i64: 50, 1>}, {pipeline_mode = #tpu.pipeline_mode<synchronous>, transform_indices = @transform_8, window_bounds = array<i64: 83, 42>}, {pipeline_mode = #tpu.pipeline_mode<synchronous>, transform_indices = @transform_9, window_bounds = array<i64: 100, 500>}, {pipeline_mode = #tpu.pipeline_mode<synchronous>, transform_indices = @transform_10, window_bounds = array<i64: 100, 1>}, {pipeline_mode = #tpu.pipeline_mode<synchronous>, transform_indices = @transform_11, window_bounds = array<i64: 100, 1>}, {pipeline_mode = #tpu.pipeline_mode<synchronous>, transform_indices = @transform_12, window_bounds = array<i64: 31, 16>}, {pipeline_mode = #tpu.pipeline_mode<synchronous>, transform_indices = @transform_13, window_bounds = array<i64: 200, 1000>}, {pipeline_mode = #tpu.pipeline_mode<synchronous>, transform_indices = @transform_14, window_bounds = array<i64: 200, 1>}, {pipeline_mode = #tpu.pipeline_mode<synchronous>, transform_indices = @transform_15, window_bounds = array<i64: 200, 1>}, {pipeline_mode = #tpu.pipeline_mode<synchronous>, transform_indices = @transform_16, window_bounds = array<i64: 4, 2>}, {transform_indices = @transform_17, window_bounds = array<i64: 1, 200, 2>}]} {
    %c0 = arith.constant 0 : index
    %c0_0 = arith.constant 0 : index
    %c0_1 = arith.constant 0 : index
    %0 = vector.load %arg1[%c0, %c0_0, %c0_1] : memref<1x4x200xbf16, #tpu.memory_space<vmem>>, vector<1x4x200xbf16>
    %1 = vector.shape_cast %0 : vector<1x4x200xbf16> to vector<4x200xbf16>
    %c0_2 = arith.constant 0 : index
    %c0_3 = arith.constant 0 : index
    %2 = vector.load %arg2[%c0_2, %c0_3] : memref<25x40xbf16, #tpu.memory_space<vmem>>, vector<25x40xbf16>
    %c0_4 = arith.constant 0 : index
    %c0_5 = arith.constant 0 : index
    %3 = vector.load %arg3[%c0_4, %c0_5] : memref<25x1xf32, #tpu.memory_space<vmem>>, vector<25x1xf32>
    %c0_6 = arith.constant 0 : index
    %c0_7 = arith.constant 0 : index
    %4 = vector.load %arg4[%c0_6, %c0_7] : memref<25x1xf32, #tpu.memory_space<vmem>>, vector<25x1xf32>
    %c0_8 = arith.constant 0 : index
    %c0_9 = arith.constant 0 : index
    %5 = vector.load %arg5[%c0_8, %c0_9] : memref<189x95xbf16, #tpu.memory_space<vmem>>, vector<189x95xbf16>
    %6 = vector.extract_strided_slice %1 {offsets = [0, 0], sizes = [4, 191], strides = [1, 1]} : vector<4x200xbf16> to vector<4x191xbf16>
    %7 = vector.extract_strided_slice %1 {offsets = [0, 1], sizes = [4, 191], strides = [1, 1]} : vector<4x200xbf16> to vector<4x191xbf16>
    %8 = vector.extract_strided_slice %1 {offsets = [0, 2], sizes = [4, 191], strides = [1, 1]} : vector<4x200xbf16> to vector<4x191xbf16>
    %9 = vector.extract_strided_slice %1 {offsets = [0, 3], sizes = [4, 191], strides = [1, 1]} : vector<4x200xbf16> to vector<4x191xbf16>
    %10 = vector.extract_strided_slice %1 {offsets = [0, 4], sizes = [4, 191], strides = [1, 1]} : vector<4x200xbf16> to vector<4x191xbf16>
    %11 = vector.extract_strided_slice %1 {offsets = [0, 5], sizes = [4, 191], strides = [1, 1]} : vector<4x200xbf16> to vector<4x191xbf16>
    %12 = vector.extract_strided_slice %1 {offsets = [0, 6], sizes = [4, 191], strides = [1, 1]} : vector<4x200xbf16> to vector<4x191xbf16>
    %13 = vector.extract_strided_slice %1 {offsets = [0, 7], sizes = [4, 191], strides = [1, 1]} : vector<4x200xbf16> to vector<4x191xbf16>
    %14 = vector.extract_strided_slice %1 {offsets = [0, 8], sizes = [4, 191], strides = [1, 1]} : vector<4x200xbf16> to vector<4x191xbf16>
    %15 = vector.extract_strided_slice %1 {offsets = [0, 9], sizes = [4, 191], strides = [1, 1]} : vector<4x200xbf16> to vector<4x191xbf16>
    %16 = tpu.concatenate %6, %7, %8, %9, %10, %11, %12, %13, %14, %15 in 0 : vector<4x191xbf16>, vector<4x191xbf16>, vector<4x191xbf16>, vector<4x191xbf16>, vector<4x191xbf16>, vector<4x191xbf16>, vector<4x191xbf16>, vector<4x191xbf16>, vector<4x191xbf16>, vector<4x191xbf16> -> vector<40x191xbf16>
    %cst = arith.constant dense<0.000000e+00> : vector<25x191xf32>
    %17 = tpu.matmul %2, %16, %cst {dimension_numbers = #tpu.dot_dimension_numbers<[1], [0], [0], [1], [0, 0, 1, 1], [], []>} : vector<25x40xbf16>, vector<40x191xbf16>, vector<25x191xf32> -> vector<25x191xf32>
    %18 = vector.broadcast %3 : vector<25x1xf32> to vector<25x191xf32>
    %19 = arith.mulf %17, %18 : vector<25x191xf32>
    %20 = vector.broadcast %4 : vector<25x1xf32> to vector<25x191xf32>
    %21 = arith.addf %19, %20 : vector<25x191xf32>
    %22 = vector.extract_strided_slice %21 {offsets = [0, 0], sizes = [25, 189], strides = [1, 1]} : vector<25x191xf32> to vector<25x189xf32>
    %23 = vector.extract_strided_slice %21 {offsets = [0, 1], sizes = [25, 189], strides = [1, 1]} : vector<25x191xf32> to vector<25x189xf32>
    %24 = arith.maximumf %22, %23 : vector<25x189xf32>
    %25 = vector.extract_strided_slice %21 {offsets = [0, 2], sizes = [25, 189], strides = [1, 1]} : vector<25x191xf32> to vector<25x189xf32>
    %26 = arith.maximumf %24, %25 : vector<25x189xf32>
    %27 = arith.truncf %26 : vector<25x189xf32> to vector<25x189xbf16>
    %cst_10 = arith.constant dense<0.000000e+00> : vector<25x95xf32>
    %28 = tpu.matmul %27, %5, %cst_10 {dimension_numbers = #tpu.dot_dimension_numbers<[1], [0], [0], [1], [0, 0, 1, 1], [], []>} : vector<25x189xbf16>, vector<189x95xbf16>, vector<25x95xf32> -> vector<25x95xf32>
    %cst_11 = arith.constant 0.000000e+00 : f32
    %29 = vector.broadcast %cst_11 : f32 to vector<25x95xf32>
    %30 = arith.cmpf ogt, %28, %29 : vector<25x95xf32>
    %cst_12 = arith.constant 0.000000e+00 : f32
    %31 = vector.broadcast %cst_12 : f32 to vector<25x95xf32>
    %32 = arith.minimumf %28, %31 : vector<25x95xf32>
    %33 = math.exp %32 : vector<25x95xf32>
    %cst_13 = arith.constant 1.000000e+00 : f32
    %34 = vector.broadcast %cst_13 : f32 to vector<25x95xf32>
    %35 = arith.subf %33, %34 : vector<25x95xf32>
    %36 = arith.select %30, %28, %35 : vector<25x95xi1>, vector<25x95xf32>
    %37 = arith.truncf %36 : vector<25x95xf32> to vector<25x95xbf16>
    %c0_14 = arith.constant 0 : index
    %c0_15 = arith.constant 0 : index
    %38 = vector.load %arg6[%c0_14, %c0_15] : memref<50x250xbf16, #tpu.memory_space<vmem>>, vector<50x250xbf16>
    %c0_16 = arith.constant 0 : index
    %c0_17 = arith.constant 0 : index
    %39 = vector.load %arg7[%c0_16, %c0_17] : memref<50x1xf32, #tpu.memory_space<vmem>>, vector<50x1xf32>
    %c0_18 = arith.constant 0 : index
    %c0_19 = arith.constant 0 : index
    %40 = vector.load %arg8[%c0_18, %c0_19] : memref<50x1xf32, #tpu.memory_space<vmem>>, vector<50x1xf32>
    %c0_20 = arith.constant 0 : index
    %c0_21 = arith.constant 0 : index
    %41 = vector.load %arg9[%c0_20, %c0_21] : memref<83x42xbf16, #tpu.memory_space<vmem>>, vector<83x42xbf16>
    %42 = vector.extract_strided_slice %37 {offsets = [0, 0], sizes = [25, 86], strides = [1, 1]} : vector<25x95xbf16> to vector<25x86xbf16>
    %43 = vector.extract_strided_slice %37 {offsets = [0, 1], sizes = [25, 86], strides = [1, 1]} : vector<25x95xbf16> to vector<25x86xbf16>
    %44 = vector.extract_strided_slice %37 {offsets = [0, 2], sizes = [25, 86], strides = [1, 1]} : vector<25x95xbf16> to vector<25x86xbf16>
    %45 = vector.extract_strided_slice %37 {offsets = [0, 3], sizes = [25, 86], strides = [1, 1]} : vector<25x95xbf16> to vector<25x86xbf16>
    %46 = vector.extract_strided_slice %37 {offsets = [0, 4], sizes = [25, 86], strides = [1, 1]} : vector<25x95xbf16> to vector<25x86xbf16>
    %47 = vector.extract_strided_slice %37 {offsets = [0, 5], sizes = [25, 86], strides = [1, 1]} : vector<25x95xbf16> to vector<25x86xbf16>
    %48 = vector.extract_strided_slice %37 {offsets = [0, 6], sizes = [25, 86], strides = [1, 1]} : vector<25x95xbf16> to vector<25x86xbf16>
    %49 = vector.extract_strided_slice %37 {offsets = [0, 7], sizes = [25, 86], strides = [1, 1]} : vector<25x95xbf16> to vector<25x86xbf16>
    %50 = vector.extract_strided_slice %37 {offsets = [0, 8], sizes = [25, 86], strides = [1, 1]} : vector<25x95xbf16> to vector<25x86xbf16>
    %51 = vector.extract_strided_slice %37 {offsets = [0, 9], sizes = [25, 86], strides = [1, 1]} : vector<25x95xbf16> to vector<25x86xbf16>
    %52 = tpu.concatenate %42, %43, %44, %45, %46, %47, %48, %49, %50, %51 in 0 : vector<25x86xbf16>, vector<25x86xbf16>, vector<25x86xbf16>, vector<25x86xbf16>, vector<25x86xbf16>, vector<25x86xbf16>, vector<25x86xbf16>, vector<25x86xbf16>, vector<25x86xbf16>, vector<25x86xbf16> -> vector<250x86xbf16>
    %cst_22 = arith.constant dense<0.000000e+00> : vector<50x86xf32>
    %53 = tpu.matmul %38, %52, %cst_22 {dimension_numbers = #tpu.dot_dimension_numbers<[1], [0], [0], [1], [0, 0, 1, 1], [], []>} : vector<50x250xbf16>, vector<250x86xbf16>, vector<50x86xf32> -> vector<50x86xf32>
    %54 = vector.broadcast %39 : vector<50x1xf32> to vector<50x86xf32>
    %55 = arith.mulf %53, %54 : vector<50x86xf32>
    %56 = vector.broadcast %40 : vector<50x1xf32> to vector<50x86xf32>
    %57 = arith.addf %55, %56 : vector<50x86xf32>
    %58 = vector.extract_strided_slice %57 {offsets = [0, 0], sizes = [50, 84], strides = [1, 1]} : vector<50x86xf32> to vector<50x84xf32>
    %59 = vector.extract_strided_slice %57 {offsets = [0, 1], sizes = [50, 84], strides = [1, 1]} : vector<50x86xf32> to vector<50x84xf32>
    %60 = arith.maximumf %58, %59 : vector<50x84xf32>
    %61 = vector.extract_strided_slice %57 {offsets = [0, 2], sizes = [50, 84], strides = [1, 1]} : vector<50x86xf32> to vector<50x84xf32>
    %62 = arith.maximumf %60, %61 : vector<50x84xf32>
    %63 = vector.extract_strided_slice %62 {offsets = [0, 0], sizes = [50, 83], strides = [1, 1]} : vector<50x84xf32> to vector<50x83xf32>
    %64 = arith.truncf %63 : vector<50x83xf32> to vector<50x83xbf16>
    %cst_23 = arith.constant dense<0.000000e+00> : vector<50x42xf32>
    %65 = tpu.matmul %64, %41, %cst_23 {dimension_numbers = #tpu.dot_dimension_numbers<[1], [0], [0], [1], [0, 0, 1, 1], [], []>} : vector<50x83xbf16>, vector<83x42xbf16>, vector<50x42xf32> -> vector<50x42xf32>
    %cst_24 = arith.constant 0.000000e+00 : f32
    %66 = vector.broadcast %cst_24 : f32 to vector<50x42xf32>
    %67 = arith.cmpf ogt, %65, %66 : vector<50x42xf32>
    %cst_25 = arith.constant 0.000000e+00 : f32
    %68 = vector.broadcast %cst_25 : f32 to vector<50x42xf32>
    %69 = arith.minimumf %65, %68 : vector<50x42xf32>
    %70 = math.exp %69 : vector<50x42xf32>
    %cst_26 = arith.constant 1.000000e+00 : f32
    %71 = vector.broadcast %cst_26 : f32 to vector<50x42xf32>
    %72 = arith.subf %70, %71 : vector<50x42xf32>
    %73 = arith.select %67, %65, %72 : vector<50x42xi1>, vector<50x42xf32>
    %74 = arith.truncf %73 : vector<50x42xf32> to vector<50x42xbf16>
    %c0_27 = arith.constant 0 : index
    %c0_28 = arith.constant 0 : index
    %75 = vector.load %arg10[%c0_27, %c0_28] : memref<100x500xbf16, #tpu.memory_space<vmem>>, vector<100x500xbf16>
    %c0_29 = arith.constant 0 : index
    %c0_30 = arith.constant 0 : index
    %76 = vector.load %arg11[%c0_29, %c0_30] : memref<100x1xf32, #tpu.memory_space<vmem>>, vector<100x1xf32>
    %c0_31 = arith.constant 0 : index
    %c0_32 = arith.constant 0 : index
    %77 = vector.load %arg12[%c0_31, %c0_32] : memref<100x1xf32, #tpu.memory_space<vmem>>, vector<100x1xf32>
    %c0_33 = arith.constant 0 : index
    %c0_34 = arith.constant 0 : index
    %78 = vector.load %arg13[%c0_33, %c0_34] : memref<31x16xbf16, #tpu.memory_space<vmem>>, vector<31x16xbf16>
    %79 = vector.extract_strided_slice %74 {offsets = [0, 0], sizes = [50, 33], strides = [1, 1]} : vector<50x42xbf16> to vector<50x33xbf16>
    %80 = vector.extract_strided_slice %74 {offsets = [0, 1], sizes = [50, 33], strides = [1, 1]} : vector<50x42xbf16> to vector<50x33xbf16>
    %81 = vector.extract_strided_slice %74 {offsets = [0, 2], sizes = [50, 33], strides = [1, 1]} : vector<50x42xbf16> to vector<50x33xbf16>
    %82 = vector.extract_strided_slice %74 {offsets = [0, 3], sizes = [50, 33], strides = [1, 1]} : vector<50x42xbf16> to vector<50x33xbf16>
    %83 = vector.extract_strided_slice %74 {offsets = [0, 4], sizes = [50, 33], strides = [1, 1]} : vector<50x42xbf16> to vector<50x33xbf16>
    %84 = vector.extract_strided_slice %74 {offsets = [0, 5], sizes = [50, 33], strides = [1, 1]} : vector<50x42xbf16> to vector<50x33xbf16>
    %85 = vector.extract_strided_slice %74 {offsets = [0, 6], sizes = [50, 33], strides = [1, 1]} : vector<50x42xbf16> to vector<50x33xbf16>
    %86 = vector.extract_strided_slice %74 {offsets = [0, 7], sizes = [50, 33], strides = [1, 1]} : vector<50x42xbf16> to vector<50x33xbf16>
    %87 = vector.extract_strided_slice %74 {offsets = [0, 8], sizes = [50, 33], strides = [1, 1]} : vector<50x42xbf16> to vector<50x33xbf16>
    %88 = vector.extract_strided_slice %74 {offsets = [0, 9], sizes = [50, 33], strides = [1, 1]} : vector<50x42xbf16> to vector<50x33xbf16>
    %89 = tpu.concatenate %79, %80, %81, %82, %83, %84, %85, %86, %87, %88 in 0 : vector<50x33xbf16>, vector<50x33xbf16>, vector<50x33xbf16>, vector<50x33xbf16>, vector<50x33xbf16>, vector<50x33xbf16>, vector<50x33xbf16>, vector<50x33xbf16>, vector<50x33xbf16>, vector<50x33xbf16> -> vector<500x33xbf16>
    %cst_35 = arith.constant dense<0.000000e+00> : vector<100x33xf32>
    %90 = tpu.matmul %75, %89, %cst_35 {dimension_numbers = #tpu.dot_dimension_numbers<[1], [0], [0], [1], [0, 0, 1, 1], [], []>} : vector<100x500xbf16>, vector<500x33xbf16>, vector<100x33xf32> -> vector<100x33xf32>
    %91 = vector.broadcast %76 : vector<100x1xf32> to vector<100x33xf32>
    %92 = arith.mulf %90, %91 : vector<100x33xf32>
    %93 = vector.broadcast %77 : vector<100x1xf32> to vector<100x33xf32>
    %94 = arith.addf %92, %93 : vector<100x33xf32>
    %95 = vector.extract_strided_slice %94 {offsets = [0, 0], sizes = [100, 31], strides = [1, 1]} : vector<100x33xf32> to vector<100x31xf32>
    %96 = vector.extract_strided_slice %94 {offsets = [0, 1], sizes = [100, 31], strides = [1, 1]} : vector<100x33xf32> to vector<100x31xf32>
    %97 = arith.maximumf %95, %96 : vector<100x31xf32>
    %98 = vector.extract_strided_slice %94 {offsets = [0, 2], sizes = [100, 31], strides = [1, 1]} : vector<100x33xf32> to vector<100x31xf32>
    %99 = arith.maximumf %97, %98 : vector<100x31xf32>
    %100 = arith.truncf %99 : vector<100x31xf32> to vector<100x31xbf16>
    %cst_36 = arith.constant dense<0.000000e+00> : vector<100x16xf32>
    %101 = tpu.matmul %100, %78, %cst_36 {dimension_numbers = #tpu.dot_dimension_numbers<[1], [0], [0], [1], [0, 0, 1, 1], [], []>} : vector<100x31xbf16>, vector<31x16xbf16>, vector<100x16xf32> -> vector<100x16xf32>
    %cst_37 = arith.constant 0.000000e+00 : f32
    %102 = vector.broadcast %cst_37 : f32 to vector<100x16xf32>
    %103 = arith.cmpf ogt, %101, %102 : vector<100x16xf32>
    %cst_38 = arith.constant 0.000000e+00 : f32
    %104 = vector.broadcast %cst_38 : f32 to vector<100x16xf32>
    %105 = arith.minimumf %101, %104 : vector<100x16xf32>
    %106 = math.exp %105 : vector<100x16xf32>
    %cst_39 = arith.constant 1.000000e+00 : f32
    %107 = vector.broadcast %cst_39 : f32 to vector<100x16xf32>
    %108 = arith.subf %106, %107 : vector<100x16xf32>
    %109 = arith.select %103, %101, %108 : vector<100x16xi1>, vector<100x16xf32>
    %110 = arith.truncf %109 : vector<100x16xf32> to vector<100x16xbf16>
    %c0_40 = arith.constant 0 : index
    %c0_41 = arith.constant 0 : index
    %111 = vector.load %arg14[%c0_40, %c0_41] : memref<200x1000xbf16, #tpu.memory_space<vmem>>, vector<200x1000xbf16>
    %c0_42 = arith.constant 0 : index
    %c0_43 = arith.constant 0 : index
    %112 = vector.load %arg15[%c0_42, %c0_43] : memref<200x1xf32, #tpu.memory_space<vmem>>, vector<200x1xf32>
    %c0_44 = arith.constant 0 : index
    %c0_45 = arith.constant 0 : index
    %113 = vector.load %arg16[%c0_44, %c0_45] : memref<200x1xf32, #tpu.memory_space<vmem>>, vector<200x1xf32>
    %c0_46 = arith.constant 0 : index
    %c0_47 = arith.constant 0 : index
    %114 = vector.load %arg17[%c0_46, %c0_47] : memref<4x2xbf16, #tpu.memory_space<vmem>>, vector<4x2xbf16>
    %115 = vector.extract_strided_slice %110 {offsets = [0, 0], sizes = [100, 7], strides = [1, 1]} : vector<100x16xbf16> to vector<100x7xbf16>
    %116 = vector.extract_strided_slice %110 {offsets = [0, 1], sizes = [100, 7], strides = [1, 1]} : vector<100x16xbf16> to vector<100x7xbf16>
    %117 = vector.extract_strided_slice %110 {offsets = [0, 2], sizes = [100, 7], strides = [1, 1]} : vector<100x16xbf16> to vector<100x7xbf16>
    %118 = vector.extract_strided_slice %110 {offsets = [0, 3], sizes = [100, 7], strides = [1, 1]} : vector<100x16xbf16> to vector<100x7xbf16>
    %119 = vector.extract_strided_slice %110 {offsets = [0, 4], sizes = [100, 7], strides = [1, 1]} : vector<100x16xbf16> to vector<100x7xbf16>
    %120 = vector.extract_strided_slice %110 {offsets = [0, 5], sizes = [100, 7], strides = [1, 1]} : vector<100x16xbf16> to vector<100x7xbf16>
    %121 = vector.extract_strided_slice %110 {offsets = [0, 6], sizes = [100, 7], strides = [1, 1]} : vector<100x16xbf16> to vector<100x7xbf16>
    %122 = vector.extract_strided_slice %110 {offsets = [0, 7], sizes = [100, 7], strides = [1, 1]} : vector<100x16xbf16> to vector<100x7xbf16>
    %123 = vector.extract_strided_slice %110 {offsets = [0, 8], sizes = [100, 7], strides = [1, 1]} : vector<100x16xbf16> to vector<100x7xbf16>
    %124 = vector.extract_strided_slice %110 {offsets = [0, 9], sizes = [100, 7], strides = [1, 1]} : vector<100x16xbf16> to vector<100x7xbf16>
    %125 = tpu.concatenate %115, %116, %117, %118, %119, %120, %121, %122, %123, %124 in 0 : vector<100x7xbf16>, vector<100x7xbf16>, vector<100x7xbf16>, vector<100x7xbf16>, vector<100x7xbf16>, vector<100x7xbf16>, vector<100x7xbf16>, vector<100x7xbf16>, vector<100x7xbf16>, vector<100x7xbf16> -> vector<1000x7xbf16>
    %cst_48 = arith.constant dense<0.000000e+00> : vector<200x7xf32>
    %126 = tpu.matmul %111, %125, %cst_48 {dimension_numbers = #tpu.dot_dimension_numbers<[1], [0], [0], [1], [0, 0, 1, 1], [], []>} : vector<200x1000xbf16>, vector<1000x7xbf16>, vector<200x7xf32> -> vector<200x7xf32>
    %127 = vector.broadcast %112 : vector<200x1xf32> to vector<200x7xf32>
    %128 = arith.mulf %126, %127 : vector<200x7xf32>
    %129 = vector.broadcast %113 : vector<200x1xf32> to vector<200x7xf32>
    %130 = arith.addf %128, %129 : vector<200x7xf32>
    %131 = vector.extract_strided_slice %130 {offsets = [0, 0], sizes = [200, 5], strides = [1, 1]} : vector<200x7xf32> to vector<200x5xf32>
    %132 = vector.extract_strided_slice %130 {offsets = [0, 1], sizes = [200, 5], strides = [1, 1]} : vector<200x7xf32> to vector<200x5xf32>
    %133 = arith.maximumf %131, %132 : vector<200x5xf32>
    %134 = vector.extract_strided_slice %130 {offsets = [0, 2], sizes = [200, 5], strides = [1, 1]} : vector<200x7xf32> to vector<200x5xf32>
    %135 = arith.maximumf %133, %134 : vector<200x5xf32>
    %136 = vector.extract_strided_slice %135 {offsets = [0, 0], sizes = [200, 4], strides = [1, 1]} : vector<200x5xf32> to vector<200x4xf32>
    %137 = arith.truncf %136 : vector<200x4xf32> to vector<200x4xbf16>
    %cst_49 = arith.constant dense<0.000000e+00> : vector<200x2xf32>
    %138 = tpu.matmul %137, %114, %cst_49 {dimension_numbers = #tpu.dot_dimension_numbers<[1], [0], [0], [1], [0, 0, 1, 1], [], []>} : vector<200x4xbf16>, vector<4x2xbf16>, vector<200x2xf32> -> vector<200x2xf32>
    %cst_50 = arith.constant 0.000000e+00 : f32
    %139 = vector.broadcast %cst_50 : f32 to vector<200x2xf32>
    %140 = arith.cmpf ogt, %138, %139 : vector<200x2xf32>
    %cst_51 = arith.constant 0.000000e+00 : f32
    %141 = vector.broadcast %cst_51 : f32 to vector<200x2xf32>
    %142 = arith.minimumf %138, %141 : vector<200x2xf32>
    %143 = math.exp %142 : vector<200x2xf32>
    %cst_52 = arith.constant 1.000000e+00 : f32
    %144 = vector.broadcast %cst_52 : f32 to vector<200x2xf32>
    %145 = arith.subf %143, %144 : vector<200x2xf32>
    %146 = arith.select %140, %138, %145 : vector<200x2xi1>, vector<200x2xf32>
    %c0_53 = arith.constant 0 : index
    %c0_54 = arith.constant 0 : index
    %c0_55 = arith.constant 0 : index
    %147 = vector.load %arg18[%c0_53, %c0_54, %c0_55] : memref<1x200x2xf32, #tpu.memory_space<vmem>>, vector<1x200x2xf32>
    %148 = vector.shape_cast %147 : vector<1x200x2xf32> to vector<200x2xf32>
    %149 = vector.shape_cast %146 : vector<200x2xf32> to vector<1x200x2xf32>
    tpu.vector_store %arg18[%c0_53, %c0_54, %c0_55], %149 {strides = array<i32>} : memref<1x200x2xf32, #tpu.memory_space<vmem>>, vector<1x200x2xf32>,
    return
  }
  func.func @transform_0(%arg0: i32) -> (i32, i32, i32) {
    %c0_i32 = arith.constant 0 : i32
    %c0_i32_0 = arith.constant 0 : i32
    %c0_i32_1 = arith.constant 0 : i32
    return %arg0, %c0_i32, %c0_i32_0 : i32, i32, i32
  }
  func.func @transform_1(%arg0: i32) -> (i32, i32) {
    %c0_i32 = arith.constant 0 : i32
    %c0_i32_0 = arith.constant 0 : i32
    %c0_i32_1 = arith.constant 0 : i32
    return %c0_i32, %c0_i32_0 : i32, i32
  }
  func.func @transform_2(%arg0: i32) -> (i32, i32) {
    %c0_i32 = arith.constant 0 : i32
    %c0_i32_0 = arith.constant 0 : i32
    %c0_i32_1 = arith.constant 0 : i32
    return %c0_i32, %c0_i32_0 : i32, i32
  }
  func.func @transform_3(%arg0: i32) -> (i32, i32) {
    %c0_i32 = arith.constant 0 : i32
    %c0_i32_0 = arith.constant 0 : i32
    %c0_i32_1 = arith.constant 0 : i32
    return %c0_i32, %c0_i32_0 : i32, i32
  }
  func.func @transform_4(%arg0: i32) -> (i32, i32) {
    %c0_i32 = arith.constant 0 : i32
    %c0_i32_0 = arith.constant 0 : i32
    %c0_i32_1 = arith.constant 0 : i32
    return %c0_i32, %c0_i32_0 : i32, i32
  }
  func.func @transform_5(%arg0: i32) -> (i32, i32) {
    %c0_i32 = arith.constant 0 : i32
    %c0_i32_0 = arith.constant 0 : i32
    %c0_i32_1 = arith.constant 0 : i32
    return %c0_i32, %c0_i32_0 : i32, i32
  }
  func.func @transform_6(%arg0: i32) -> (i32, i32) {
    %c0_i32 = arith.constant 0 : i32
    %c0_i32_0 = arith.constant 0 : i32
    %c0_i32_1 = arith.constant 0 : i32
    return %c0_i32, %c0_i32_0 : i32, i32
  }
  func.func @transform_7(%arg0: i32) -> (i32, i32) {
    %c0_i32 = arith.constant 0 : i32
    %c0_i32_0 = arith.constant 0 : i32
    %c0_i32_1 = arith.constant 0 : i32
    return %c0_i32, %c0_i32_0 : i32, i32
  }
  func.func @transform_8(%arg0: i32) -> (i32, i32) {
    %c0_i32 = arith.constant 0 : i32
    %c0_i32_0 = arith.constant 0 : i32
    %c0_i32_1 = arith.constant 0 : i32
    return %c0_i32, %c0_i32_0 : i32, i32
  }
  func.func @transform_9(%arg0: i32) -> (i32, i32) {
    %c0_i32 = arith.constant 0 : i32
    %c0_i32_0 = arith.constant 0 : i32
    %c0_i32_1 = arith.constant 0 : i32
    return %c0_i32, %c0_i32_0 : i32, i32
  }
  func.func @transform_10(%arg0: i32) -> (i32, i32) {
    %c0_i32 = arith.constant 0 : i32
    %c0_i32_0 = arith.constant 0 : i32
    %c0_i32_1 = arith.constant 0 : i32
    return %c0_i32, %c0_i32_0 : i32, i32
  }
  func.func @transform_11(%arg0: i32) -> (i32, i32) {
    %c0_i32 = arith.constant 0 : i32
    %c0_i32_0 = arith.constant 0 : i32
    %c0_i32_1 = arith.constant 0 : i32
    return %c0_i32, %c0_i32_0 : i32, i32
  }
  func.func @transform_12(%arg0: i32) -> (i32, i32) {
    %c0_i32 = arith.constant 0 : i32
    %c0_i32_0 = arith.constant 0 : i32
    %c0_i32_1 = arith.constant 0 : i32
    return %c0_i32, %c0_i32_0 : i32, i32
  }
  func.func @transform_13(%arg0: i32) -> (i32, i32) {
    %c0_i32 = arith.constant 0 : i32
    %c0_i32_0 = arith.constant 0 : i32
    %c0_i32_1 = arith.constant 0 : i32
    return %c0_i32, %c0_i32_0 : i32, i32
  }
  func.func @transform_14(%arg0: i32) -> (i32, i32) {
    %c0_i32 = arith.constant 0 : i32
    %c0_i32_0 = arith.constant 0 : i32
    %c0_i32_1 = arith.constant 0 : i32
    return %c0_i32, %c0_i32_0 : i32, i32
  }
  func.func @transform_15(%arg0: i32) -> (i32, i32) {
    %c0_i32 = arith.constant 0 : i32
    %c0_i32_0 = arith.constant 0 : i32
    %c0_i32_1 = arith.constant 0 : i32
    return %c0_i32, %c0_i32_0 : i32, i32
  }
  func.func @transform_16(%arg0: i32) -> (i32, i32) {
    %c0_i32 = arith.constant 0 : i32
    %c0_i32_0 = arith.constant 0 : i32
    %c0_i32_1 = arith.constant 0 : i32
    return %c0_i32, %c0_i32_0 : i32, i32
  }
  func.func @transform_17(%arg0: i32) -> (i32, i32, i32) {
    %c0_i32 = arith.constant 0 : i32
    %c0_i32_0 = arith.constant 0 : i32
    %c0_i32_1 = arith.constant 0 : i32
    return %arg0, %c0_i32, %c0_i32_0 : i32, i32, i32
  }
}

</mosaic_0001>

<bundles_post_ra>
// kernel: tpu_custom_call.1
= control target key start
LH: loop header
LB: loop body
LE: loop exit
PB: predicated region body
PF: predicated region fallthrough
CT: control target
= control target key end

     0   :  { %s8738_s0 = inlined_call_operand.vmem [shape: bf16[2,4,200], index: 0, kind: input, shape index: {}]   ;;  %s8739_s1 = inlined_call_operand.vmem [shape: bf16[25,40], index: 1, kind: input, shape index: {}]   ;;  %s8740_s2 = inlined_call_operand.vmem [shape: f32[25,1], index: 2, kind: input, shape index: {}]   ;;  %s8741_s3 = inlined_call_operand.vmem [shape: f32[25,1], index: 3, kind: input, shape index: {}]   ;;  %s8742_s4 = inlined_call_operand.vmem [shape: bf16[189,95], index: 4, kind: input, shape index: {}]   ;;  %s8743_s5 = inlined_call_operand.hbm [shape: bf16[50,250], index: 5, kind: input, shape index: {}]   ;;  %s8744_s6 = inlined_call_operand.vmem [shape: f32[50,1], index: 6, kind: input, shape index: {}]   ;;  %s8745_s7 = inlined_call_operand.vmem [shape: f32[50,1], index: 7, kind: input, shape index: {}]   ;;  %s8746_s8 = inlined_call_operand.vmem [shape: bf16[83,42], index: 8, kind: input, shape index: {}]   ;;  %s8747_s9 = inlined_call_operand.hbm [shape: bf16[100,500], index: 9, kind: input, shape index: {}]   ;;  %s8748_s10 = inlined_call_operand.vmem [shape: f32[100,1], index: 10, kind: input, shape index: {}]   ;;  %s8749_s11 = inlined_call_operand.vmem [shape: f32[100,1], index: 11, kind: input, shape index: {}]   ;;  %s8750_s12 = inlined_call_operand.vmem [shape: bf16[31,16], index: 12, kind: input, shape index: {}]   ;;  %s8751_s13 = inlined_call_operand.vmem [shape: bf16[200,1000], index: 13, kind: input, shape index: {}]   ;;  %s8752_s14 = inlined_call_operand.vmem [shape: f32[200,1], index: 14, kind: input, shape index: {}]   ;;  %s8753_s15 = inlined_call_operand.vmem [shape: f32[200,1], index: 15, kind: input, shape index: {}]   ;;  %s8754_s16 = inlined_call_operand.vmem [shape: bf16[4,2], index: 16, kind: input, shape index: {}]   ;;  %s8755_s17 = inlined_call_operand.vmem [shape: f32[2,200,2], index: 17, kind: output, shape index: {}]  }
   0x1   :  { %8778 = sst [smem:[#allocation9_spill]] %s8738_s0 }
   0x2   :  { %8779 = sst [smem:[#allocation10_spill]] %s8739_s1 }
   0x3   :  { %8780 = sst [smem:[#allocation11_spill]] %s8740_s2 }
   0x4   :  { %8781 = sst [smem:[#allocation12_spill]] %s8741_s3 }
   0x5   :  { %8782 = sst [smem:[#allocation13_spill]] %s8742_s4 }
   0x6   :  { %8783 = sst [smem:[#allocation14_spill]] %s8743_s5 }
   0x7   :  { %8784 = sst [smem:[#allocation15_spill]] %s8744_s6 }
   0x8   :  { %8785 = sst [smem:[#allocation16_spill]] %s8755_s17 }
   0x9   :  { %22 = vsyncpa [#allocation3], 0 }
   0xa   :  { %23 = vsyncpa [#allocation5], 0  ;;  %s6762_s24 = smov 0  }
   0xb LB: > { %8786 = sst [smem:[#allocation8_spill]] %s6650_s24  ;;  %s6652_s25 = smov [#allocation2]   ;;  %s6650_s24 = sphi %s6762_s24, %s29_s24  }
   0xc   : > { %s446_s26 = sshll.u32 %s6652_s25, 4  ;;  %s6768_s27 = sadd.s32 4294967295, %s6650_s24   ;;  %s447_s26 = int_to_ptr.vmem [resolvable:$true] %s446_s26 }
   0xd   : > { %p5228_p0 = scmp.ge.s32.totalorder %s6650_s24, 1  ;;  %p422_p1 = scmp.lt.s32.totalorder %s6650_s24, 3 }
   0xe   : > { %p8757_p3 = scmp.eq.s32.totalorder %s6768_s27, 0  ;;  %s6653_s29 = smov [#allocation4]  }
   0xf   : > { %p6772_p2 = pnand %p5228_p0, %p422_p1  ;;  %s468_s0 = sshll.u32 %s6653_s29, 4  ;;  %s6785_s0 = int_to_ptr.vmem [resolvable:$true] %s468_s0 }
  0x10   : > { %s8789_s5 = sld [smem:[#allocation14_spill]] }
  0x11   : > { %s8787_s28 = scalar_select %p6772_p2, 1, 0 }
  0x12   : > { %p6109_p4 = pneg %p6772_p2 }
  0x14   : > { %p6781_p5 = pnand %p8757_p3, %p6109_p4 }
  0x16   : > { %s6580_s1 = scalar_lea.hbm %s8789_s5, 896  ;;  %p6582_p7 = pneg %p6781_p5 }
  0x17   : > { %p6581_p6 = scmp.ne.s32.totalorder %s8789_s5, %s6580_s1  ;;  %p6587_p10 = scmp.lt.u32.totalorder %s6580_s1, %s8789_s5 }
  0x19   : > { %p6583_p8 = pnand %p6582_p7, %p6581_p6 }
  0x1b   : > { %p6584_p9 = pneg %p6583_p8 }
  0x1d   : > { %p6589_p11 = pnand %p6587_p10, %p6584_p9 }
  0x1f   : > { %6592 = shalt.err (!%p6589_p11)
}
  0x20   : > { %s6593_s25 = scalar_lea.vmem %s447_s26, 896  ;;  %p6601_p1 = scmp.lt.s32.totalorder %s447_s26, %s447_s26 }
  0x21   : > { %p6594_p12 = scmp.ne.s32.totalorder %s447_s26, %s6593_s25  ;;  %p6602_p4 = scmp.lt.s32.totalorder %s6593_s25, %s6593_s25 }
  0x23   : > { %p6596_p13 = pnand %p6594_p12, %p6582_p7  ;;  %p6603_p3 = por %p6602_p4, %p6601_p1 }
  0x25   : > { %p6597_p0 = pneg %p6596_p13 }
  0x27   : > { %p6604_p2 = pnand %p6603_p3, %p6597_p0 }
  0x29   : > { %6607 = shalt.err (!%p6604_p2)
}
  0x2a   : > { %s6654_s29 = smov 128   ;;  %s6655_s18 = smov 8  }
  0x2b   : > { %6112 = dma.hbm_to_vmem [thread:$0]  (!%p6781_p5), %s8789_s5, 896, %s447_s26, [#allocation3], %s6654_s29, %s6654_s29, %s6655_s18  }
  0x2c   : > { %s6608_s22 = scalar_lea.hbm %s8747_s9, 3328 }
  0x2d   : > { %p6609_p6 = scmp.ne.s32.totalorder %s8747_s9, %s6608_s22  ;;  %p6615_p8 = scmp.lt.u32.totalorder %s6608_s22, %s8747_s9 }
  0x2f   : > { %p6611_p2 = pnand %p6609_p6, %p6582_p7 }
  0x31   : > { %p6612_p3 = pneg %p6611_p2 }
  0x33   : > { %p6617_p9 = pnand %p6615_p8, %p6612_p3 }
  0x35   : > { %6620 = shalt.err (!%p6617_p9)
}
  0x36   : > { %s6621_s26 = scalar_lea.vmem %s6785_s0, 3328  ;;  %p6629_p13 = scmp.lt.s32.totalorder %s6785_s0, %s6785_s0 }
  0x37   : > { %p6622_p10 = scmp.ne.s32.totalorder %s6785_s0, %s6621_s26  ;;  %p6630_p0 = scmp.lt.s32.totalorder %s6621_s26, %s6621_s26 }
  0x39   : > { %p6624_p11 = pnand %p6622_p10, %p6582_p7  ;;  %p6631_p1 = por %p6630_p0, %p6629_p13 }
  0x3b   : > { %p6625_p12 = pneg %p6624_p11 }
  0x3d   : > { %p6632_p4 = pnand %p6631_p1, %p6625_p12 }
  0x3f   : > { %6635 = shalt.err (!%p6632_p4)
}
  0x40   : > { %s6656_s17 = smov 256   ;;  %s6657_s24 = smov 16  }
  0x41   : > { %6115 = dma.hbm_to_vmem [thread:$0]  (!%p6781_p5), %s8747_s9, 3328, %s6785_s0, [#allocation5], %s6656_s17, %s6656_s17, %s6657_s24  }
  0x42   : > { %p8790_p6 = scmp.ne.s32.totalorder %s8787_s28, 0 }
  0x43   : > { %p8791_p7 = scmp.eq.s32.totalorder (!%p8790_p6), %s6768_s27, 0 }
  0x44   : > { %513 = sbr.rel (%p8790_p6) target bundleno = 3405 (0xd4d), region = 88 }
  0x4b   : > { %6641 = dma.done.wait (%p8791_p7), [#allocation3], 896   ;;  %p8792_p2 = pmov %p8791_p7 }
  0x4d   : > { %6643 = vsyncadd (%p8792_p2), [#allocation3], 4294966400  ;;  %p8793_p3 = pmov %p8792_p2 }
  0x4e   : > { %p8794_p8 = pmov %p8792_p2 }
  0x4f   : > { %6645 = dma.done.wait (%p8793_p3), [#allocation5], 3328  }
  0x50   : > { %6647 = vsyncadd (%p8794_p8), [#allocation5], 4294963968  ;;  %p569_p9 = scmp.lt.s32.totalorder %s6768_s27, 1  ;;  %v621_v0 = vlaneseq  ;;  %v6658_v1 = vmov 1983009808   ;;  %s8795_s19 = sld [smem:[#allocation9_spill]] }
  0x51   : > { %v619_v2 = vunpack.c.l.s4 %v6658_v1  ;;  %s8760_s20 = smov 124   ;;  %s8774_s21 = smov 126   ;;  %v6665_v14 = vmov 0   ;;  %vm639_vm0 = vcmask 1039360   ;;  %vm691_vm1 = vcmask 1041408  }
  0x52   : > { %s8814_s27 = smov (!%p569_p9, %s6768_s27), 1  ;;  %v622_v3 = vshrl.u32 %v621_v0, 7  ;;  %s8776_s22 = smov 127   ;;  %785 = vmatprep.mubr.bf16.mxu0 %v6665_v14  ;;  %6149 = vset.pattern.permute.xlu1 %v6665_v14  ;;  %vm698_vm2 = vcmask 1043456   ;;  %vm703_vm3 = vcmask 1045504   ;;  %vm646_vm4 = vcmask 1031168  }
  0x53   : > { %v620_v4 = vunpack.c.0.s8 %v619_v2  ;;  %s5504_s28 = sshll.u32 %s8814_s27, 2  ;;  %s8762_s23 = smov 125   ;;  %6148 = vset.pattern.permute.xlu0 %v6665_v14  ;;  %1032 = vmatprep.subr.bf16.mxu1 %v6665_v14  ;;  %vm653_vm5 = vcmask 1022976   ;;  %vm665_vm6 = vcmask 1006592   ;;  %vm671_vm7 = vcmask 998400  }
  0x54   : > { %s8772_s25 = smov 123   ;;  %s8770_s26 = smov 122   ;;  %vm659_vm8 = vcmask 1014784   ;;  %vm677_vm9 = vcmask 990208   ;;  %vm683_vm10 = vcmask 982016   ;;  %vm689_vm11 = vcmask 973824  }
  0x55   : > { %v623_v5 = vsub.s32 %v620_v4, %v622_v3  ;;  %s8768_s17 = smov 121   ;;  %s8766_s24 = smov 120   ;;  %vm742_vm12 = vcmask 326656   ;;  %vm1026_vm13 = vcmask 1046528   ;;  %vm1019_vm14 = vcmask 498688  }
  0x56   : > { %s573_s1 = scalar_lea.vmem %s8795_s19, %s5504_s28  ;;  %s8764_s29 = smov 119  }
  0x57   : > { %v580_v6 = vld [vmem:[%s573_s1] sm:$0xf]  ;;  %s8796_s2 = sld [smem:[#allocation11_spill]]  ;;  %s8797_s3 = sld [smem:[#allocation12_spill]] }
  0x58   : > { %v6852_v7 = vrot.slane %v580_v6, %v623_v5  ;;  %v626_v8 = vcombine.low %v580_v6, %v580_v6  ;;  %s8800_s4 = sld [smem:[#allocation13_spill]]  ;;  %s8802_s18 = smov 125  }
  0x59   : > { %s8803_s28 = smov 119   ;;  %s8804_s0 = smov 124  }
  0x5a   : > { %655 = vrot.lane.b32.xlu0 %v6852_v7, %s8760_s20  ;;  %644 = vrot.lane.b32.xlu1 %v6852_v7, %s8774_s21  ;;  %v633_v9 = vrot.slane %v626_v8, %v623_v5  ;;  %v641_v10 = vcombine.low %v6852_v7, %v6852_v7  ;;  %v625_v13 = vcombine.high %v6852_v7, %v6852_v7  ;;  %s8805_s6 = sld [smem:[#allocation15_spill]]  ;;  %s8807_s19 = smov 126  }
  0x5b   : > { %s8808_s1 = smov 122  }
  0x5c   : > { %v634_v11 = vcombine.high %v633_v9, %v633_v9  ;;  %v648_v12 = vcombine.low %v633_v9, %v633_v9 }
  0x5d   : > { %v585_v15 = vld [vmem:[%s8796_s2] sm:$0xff]  ;;  %v586_v16 = vld [vmem:[%s8796_s2 + $0x8] sm:$0xff]  ;;  %v588_v19 = vld [vmem:[%s8796_s2 + $0x18] sm:$0x1] }
  0x5e   : > { %635 = vrot.lane.b32.xlu0 %v633_v9, %s8776_s22  ;;  %642 = vrot.lane.b32.xlu1 %v641_v10, %s8774_s21  ;;  %v590_v17 = vld [vmem:[%s8797_s3 + $0x8] sm:$0xff]  ;;  %v589_v18 = vld [vmem:[%s8797_s3] sm:$0xff] }
  0x5f   : > { %v587_v20 = vld [vmem:[%s8796_s2 + $0x10] sm:$0xff]  ;;  %v592_v21 = vld [vmem:[%s8797_s3 + $0x18] sm:$0x1]  ;;  %v6403_v3 = vld [vmem:[%s8800_s4] sm:$0xff]  }
  0x60   : > { %v591_v22 = vld [vmem:[%s8797_s3 + $0x10] sm:$0xff]  ;;  %1033 = vmatpush1.bf16.msra.mxu1 %v6403_v3  ;;  %v6404_v4 = vld [vmem:[%s8800_s4 + $0x8] sm:$0xff]   ;;  %v6406_v6 = vld [vmem:[%s8800_s4 + $0x18] sm:$0xff]  }
  0x61   : > { %1034 = vmatprep.subr.bf16.mxu1 %v6665_v14  ;;  %v6405_v5 = vld [vmem:[%s8800_s4 + $0x10] sm:$0xff]   ;;  %v6408_v8 = vld [vmem:[%s8800_s4 + $0x28] sm:$0xff]  }
  0x62   : > { %637 = vrot.lane.b32.xlu0 %v634_v11, %s8776_s22  ;;  %651 = vrot.lane.b32.xlu1 %v633_v9, %s8762_s23 }
  0x64   : > { %1035 = vmatpush1.bf16.msra.mxu1 %v6404_v4 }
  0x65   : > { %1036 = vmatprep.subr.bf16.mxu1 %v6665_v14 }
  0x66   : > { %649 = vrot.lane.b32.xlu0 %v648_v12, %s8762_s23  ;;  %657 = vrot.lane.b32.xlu1 %v625_v13, %s8760_s20  ;;  %s8809_s20 = smov 121  }
  0x68   : > { %1037 = vmatpush1.bf16.msra.mxu1 %v6405_v5 }
  0x69   : > { %1038 = vmatprep.subr.bf16.mxu1 %v6665_v14 }
  0x6a   : > { %661 = vrot.lane.b32.xlu0 %v633_v9, %s8772_s25  ;;  %663 = vrot.lane.b32.xlu1 %v634_v11, %s8772_s25 }
  0x6c   : > { %1039 = vmatpush1.bf16.msra.mxu1 %v6406_v6 }
  0x6d   : > { %1040 = vmatprep.subr.bf16.mxu1 %v6665_v14 }
  0x6e   : > { %667 = vrot.lane.b32.xlu0 %v641_v10, %s8770_s26  ;;  %669 = vrot.lane.b32.xlu1 %v6852_v7, %s8770_s26  ;;  %v6410_v10 = vld [vmem:[%s8800_s4 + $0x38] sm:$0xff]  }
  0x72   : > { %673 = vrot.lane.b32.xlu0 %v648_v12, %s8768_s17  ;;  %675 = vrot.lane.b32.xlu1 %v633_v9, %s8768_s17 }
  0x76   : > { %679 = vrot.lane.b32.xlu0 %v6852_v7, %s8766_s24  ;;  %681 = vrot.lane.b32.xlu1 %v625_v13, %s8766_s24  ;;  %s8798_s24 = sld [smem:[#allocation10_spill]] }
  0x7a   : > { %685 = vrot.lane.b32.xlu0 %v633_v9, %s8764_s29  ;;  %687 = vrot.lane.b32.xlu1 %v634_v11, %s8764_s29  ;;  %v6409_v9 = vld [vmem:[%s8800_s4 + $0x30] sm:$0xff]   ;;  %v6411_v11 = vld [vmem:[%s8800_s4 + $0x40] sm:$0xff]  }
  0x7c   : > { %s8799_s29 = smov %s8798_s24  ;;  %v6401_v1 = vld [vmem:[%s8798_s24] sm:$0xff]   ;;  %s8801_s24 = smov 120  }
  0x7d   : > { %v6402_v2 = vld [vmem:[%s8799_s29 + $0x8] sm:$0x1f]  }
  0x7e   : > { %808 = vperm.xlu0 %6148, %v585_v15   ;;  %813 = vperm.xlu1 %6149, %v586_v16   ;;  %v6412_v15 = vld [vmem:[%s8800_s4 + $0x48] sm:$0xff]  }
  0x82   : > { %841 = vperm.xlu0 %6148, %v590_v17   ;;  %836 = vperm.xlu1 %6149, %v589_v18   ;;  %v6413_v17 = vld [vmem:[%s8800_s4 + $0x50] sm:$0xff]  }
  0x86   : > { %823 = vperm.xlu0 %6148, %v588_v19   ;;  %818 = vperm.xlu1 %6149, %v587_v20  }
  0x8a   : > { %851 = vperm.xlu0 %6148, %v592_v21   ;;  %846 = vperm.xlu1 %6149, %v591_v22   ;;  %v6414_v22 = vld [vmem:[%s8800_s4 + $0x58] sm:$0x7f]  }
  0xcc   : > { %v656_v23 = vpop.permute.xlu0 %655  ;;  %v645_v24 = vpop.permute.xlu1 %644 }
  0xd0   : > { %v636_v25 = vpop.permute.xlu0 %635  ;;  %v643_v26 = vpop.permute.xlu1 %642 }
  0xd1   : > { %v647_v34 = vsel %vm646_vm4, %v643_v26, %v645_v24 }
  0xd4   : > { %v638_v27 = vpop.permute.xlu0 %637  ;;  %v652_v28 = vpop.permute.xlu1 %651 }
  0xd5   : > { %v640_v29 = vsel %vm639_vm0, %v636_v25, %v638_v27  ;;  %v697_v30 = vsel %vm691_vm1, %v625_v13, %v638_v27 }
  0xd6   : > { %v702_v31 = vsel %vm698_vm2, %v697_v30, %v645_v24  ;;  %v694_v32 = vsel %vm691_vm1, %v6852_v7, %v640_v29  ;;  %v6407_v7 = vld [vmem:[%s8800_s4 + $0x20] sm:$0xff]  }
  0xd7   : > { %v708_v33 = vsel %vm703_vm3, %v702_v31, %v652_v28  ;;  %v700_v38 = vsel %vm698_vm2, %v694_v32, %v647_v34  ;;  %1041 = vmatpush1.bf16.msra.mxu1 %v6407_v7 }
  0xd8   : > { %v650_v35 = vpop.permute.xlu0 %649  ;;  %v658_v36 = vpop.permute.xlu1 %657  ;;  %753 = vmatprep.subr.bf16.mxu0 %v708_v33  ;;  %1042 = vmatprep.subr.bf16.mxu1 %v6665_v14 }
  0xd9   : > { %v654_v37 = vsel %vm653_vm5, %v650_v35, %v652_v28  ;;  %v660_v46 = vsel %vm659_vm8, %v656_v23, %v658_v36  ;;  %v6669_v23 = vmov 65535   ;;  %vm1226_vm8 = vsmask.f32 7424 }
  0xda   : > { %v705_v39 = vsel %vm703_vm3, %v700_v38, %v654_v37  ;;  %v1027_v24 = vsel %vm703_vm3, 4294967295, %v6669_v23 }
  0xdb   : > { %754 = vmatpush1.bf16.msra.mxu0 %v705_v39  ;;  %1043 = vmatpush1.bf16.msra.mxu1 %v6408_v8  ;;  %v1028_v27 = vsel %vm1026_vm13, %v1027_v24, 0 }
  0xdc   : > { %v662_v40 = vpop.permute.xlu0 %661  ;;  %v664_v41 = vpop.permute.xlu1 %663  ;;  %1044 = vmatprep.subr.bf16.mxu1 %v6665_v14  ;;  %v1030_v31 = vand.u32 %v6414_v22, %v1028_v27 }
  0xdd   : > { %v666_v44 = vsel %vm665_vm6, %v662_v40, %v664_v41  ;;  %v715_v47 = vsel %vm691_vm1, %v658_v36, %v664_v41  ;;  %vm1217_vm6 = vcmask 1042432  }
  0xde   : > { %v712_v48 = vsel %vm691_vm1, %v660_v46, %v666_v44 }
  0xdf   : > { %1045 = vmatpush1.bf16.msra.mxu1 %v6409_v9 }
  0xe0   : > { %v668_v42 = vpop.permute.xlu0 %667  ;;  %v670_v43 = vpop.permute.xlu1 %669  ;;  %1046 = vmatprep.subr.bf16.mxu1 %v6665_v14 }
  0xe1   : > { %v672_v45 = vsel %vm671_vm7, %v668_v42, %v670_v43  ;;  %v719_v49 = vsel %vm698_vm2, %v715_v47, %v670_v43 }
  0xe2   : > { %v717_v54 = vsel %vm698_vm2, %v712_v48, %v672_v45 }
  0xe3   : > { %1047 = vmatpush1.bf16.msra.mxu1 %v6410_v10 }
  0xe4   : > { %v674_v50 = vpop.permute.xlu0 %673  ;;  %v676_v51 = vpop.permute.xlu1 %675  ;;  %1048 = vmatprep.subr.bf16.mxu1 %v6665_v14 }
  0xe5   : > { %v678_v52 = vsel %vm677_vm9, %v674_v50, %v676_v51  ;;  %v724_v53 = vsel %vm703_vm3, %v719_v49, %v676_v51  ;;  %vm1201_vm9 = vsmask.f32 6400 }
  0xe6   : > { %755 = vmatprep.subr.bf16.mxu0 %v724_v53  ;;  %v721_v55 = vsel %vm703_vm3, %v717_v54, %v678_v52 }
  0xe7   : > { %756 = vmatpush1.bf16.msra.mxu0 %v721_v55  ;;  %1049 = vmatpush1.bf16.msra.mxu1 %v6411_v11 }
  0xe8   : > { %v680_v56 = vpop.permute.xlu0 %679  ;;  %v682_v57 = vpop.permute.xlu1 %681  ;;  %1050 = vmatprep.subr.bf16.mxu1 %v6665_v14 }
  0xe9   : > { %v684_v60 = vsel %vm683_vm10, %v680_v56, %v682_v57  ;;  %vm1167_vm10 = vcmask 1040384  }
  0xeb   : > { %1051 = vmatpush1.bf16.msra.mxu1 %v6412_v15 }
  0xec   : > { %v686_v58 = vpop.permute.xlu0 %685  ;;  %v688_v59 = vpop.permute.xlu1 %687  ;;  %1052 = vmatprep.subr.bf16.mxu1 %v6665_v14 }
  0xed   : > { %v690_v61 = vsel %vm689_vm11, %v686_v58, %v688_v59  ;;  %v731_v62 = vsel %vm691_vm1, %v682_v57, %v688_v59  ;;  %vm1139_vm11 = vsmask.f32 4352 }
  0xee   : > { %5240 = vmatprep.subr.msk.bf16.mxu0 %vm698_vm2, %v731_v62  ;;  %v728_v63 = vsel %vm691_vm1, %v684_v60, %v690_v61 }
  0xef   : > { %v749_v0 = vsel %vm698_vm2, %v728_v63, 0  ;;  %1053 = vmatpush1.bf16.msra.mxu1 %v6413_v17 }
  0xf0   : > { %758 = vmatpush1.bf16.msra.mxu0 %v749_v0  ;;  %1054 = vmatprep.subr.bf16.mxu1 %v6665_v14 }
  0xf3   : > { %5241 = vmatmul.mubr.msk.bf16.vlgmr.msra.gmra.mrb[0].mxu0 %vm742_vm12, %v6401_v1  ;;  %1055 = vmatpush1.bf16.msra.mxu1 %v1030_v31 }
  0xf4   : > { %795 = vmatprep.mubr.bf16.mxu0 %v6665_v14 }
  0xfb   : > { %5242 = vmatmul.mubr.msk.bf16.gmra.mrb[4].mxu0 %vm742_vm12, %v6402_v2  ;;  %vm1176_vm12 = vsmask.f32 5376 }
  0xfd   : > { %v814_v12 = vpop.permute.xlu1 %813  ;;  %v809_v13 = vpop.permute.xlu0 %808 }
 0x101   : > { %v837_v16 = vpop.permute.xlu1 %836  ;;  %v842_v18 = vpop.permute.xlu0 %841 }
 0x105   : > { %v819_v32 = vpop.permute.xlu1 %818  ;;  %v824_v36 = vpop.permute.xlu0 %823 }
 0x109   : > { %v847_v43 = vpop.permute.xlu1 %846  ;;  %v852_v49 = vpop.permute.xlu0 %851 }
 0x1c6   : > { %v787_v19 = vpop.f32.mrb[0].mxu0 }
 0x1c7   : > { %v826_v20 = vmul.f32 %v809_v13, %v787_v19  ;;  %v789_v21 = vpop.f32.mrb[1].mxu0 }
 0x1c8   : > { %v827_v25 = vmul.f32 %v809_v13, %v789_v21  ;;  %v791_v26 = vpop.f32.mrb[2].mxu0 }
 0x1c9   : > { %v6985_v28 = vadd.f32 %v837_v16, %v826_v20  ;;  %v828_v29 = vmul.f32 %v814_v12, %v791_v26  ;;  %v793_v30 = vpop.f32.mrb[3].mxu0 }
 0x1ca   : > { %v855_v33 = vadd.f32 %v837_v16, %v827_v25  ;;  %v829_v34 = vmul.f32 %v814_v12, %v793_v30 }
 0x1cb   : > { %v856_v35 = vadd.f32 %v842_v18, %v828_v29 }
 0x1cc   : > { %v857_v37 = vadd.f32 %v842_v18, %v829_v34  ;;  %v6150_v38 = vpack.i.bf16 %v855_v33, %v6985_v28 }
 0x1ce   : > { %6151 = vrot.lane.b32.xlu1 %v6150_v38, %s8776_s22  ;;  %v797_v39 = vpop.f32.mrb[4].mxu0  ;;  %v6160_v40 = vpack.i.bf16 %v857_v37, %v856_v35 }
 0x1cf   : > { %v830_v41 = vmul.f32 %v819_v32, %v797_v39  ;;  %v799_v42 = vpop.f32.mrb[5].mxu0 }
 0x1d0   : > { %v831_v44 = vmul.f32 %v819_v32, %v799_v42  ;;  %6161 = vrot.lane.b32.xlu0 %v6160_v40, %s8776_s22  ;;  %v801_v45 = vpop.f32.mrb[6].mxu0 }
 0x1d1   : > { %v6990_v46 = vadd.f32 %v847_v43, %v830_v41  ;;  %v832_v47 = vmul.f32 %v824_v36, %v801_v45  ;;  %v803_v48 = vpop.f32.mrb[7].mxu0 }
 0x1d2   : > { %v859_v50 = vadd.f32 %v847_v43, %v831_v44  ;;  %v833_v51 = vmul.f32 %v824_v36, %v803_v48  ;;  %6156 = vrot.lane.b32.xlu1 %v6150_v38, %s8774_s21 }
 0x1d3   : > { %v860_v52 = vadd.f32 %v852_v49, %v832_v47 }
 0x1d4   : > { %v861_v53 = vadd.f32 %v852_v49, %v833_v51  ;;  %6166 = vrot.lane.b32.xlu0 %v6160_v40, %s8774_s21  ;;  %v6170_v54 = vpack.i.bf16 %v859_v50, %v6990_v46 }
 0x1d6   : > { %6171 = vrot.lane.b32.xlu1 %v6170_v54, %s8776_s22  ;;  %v6180_v55 = vpack.i.bf16 %v861_v53, %v860_v52 }
 0x1d8   : > { %6181 = vrot.lane.b32.xlu0 %v6180_v55, %s8776_s22 }
 0x1da   : > { %6176 = vrot.lane.b32.xlu1 %v6170_v54, %s8774_s21 }
 0x1dc   : > { %6186 = vrot.lane.b32.xlu0 %v6180_v55, %s8774_s21 }
 0x240   : > { %v6152_v56 = vpop.permute.xlu1 %6151 }
 0x241   : > { %v6154_v57 = vunpack.i.h.bf16 %v6152_v56  ;;  %v6153_v58 = vunpack.i.l.bf16 %v6152_v56 }
 0x242   : > { %v6162_v59 = vpop.permute.xlu0 %6161 }
 0x243   : > { %v6164_v60 = vunpack.i.h.bf16 %v6162_v59  ;;  %v6163_v61 = vunpack.i.l.bf16 %v6162_v59  ;;  %v887_v63 = vsel %vm639_vm0, %v6153_v58, %v6154_v57  ;;  %v900_v9 = vmax.f32 %v855_v33, %v6154_v57 }
 0x244   : > { %v6157_v62 = vpop.permute.xlu1 %6156  ;;  %v899_v10 = vmax.f32 %v6985_v28, %v887_v63 }
 0x245   : > { %v888_v0 = vsel %vm639_vm0, %v6163_v61, %v6164_v60  ;;  %v6159_v1 = vunpack.i.h.bf16 %v6157_v62  ;;  %v6158_v2 = vunpack.i.l.bf16 %v6157_v62  ;;  %v902_v6 = vmax.f32 %v857_v37, %v6164_v60 }
 0x246   : > { %v6167_v3 = vpop.permute.xlu0 %6166  ;;  %v901_v11 = vmax.f32 %v856_v35, %v888_v0 }
 0x247   : > { %v6169_v4 = vunpack.i.h.bf16 %v6167_v3  ;;  %v6168_v5 = vunpack.i.l.bf16 %v6167_v3  ;;  %v924_v7 = vsel %vm646_vm4, %v6158_v2, %v6159_v1  ;;  %v937_v18 = vmax.f32 %v900_v9, %v6159_v1 }
 0x248   : > { %v6172_v8 = vpop.permute.xlu1 %6171  ;;  %v936_v19 = vmax.f32 %v899_v10, %v924_v7 }
 0x249   : > { %v6174_v12 = vunpack.i.h.bf16 %v6172_v8  ;;  %v6173_v13 = vunpack.i.l.bf16 %v6172_v8  ;;  %v939_v15 = vmax.f32 %v902_v6, %v6169_v4  ;;  %v925_v16 = vsel %vm646_vm4, %v6168_v5, %v6169_v4 }
 0x24a   : > { %v6182_v17 = vpop.permute.xlu0 %6181  ;;  %v938_v20 = vmax.f32 %v901_v11, %v925_v16 }
 0x24b   : > { %v6184_v21 = vunpack.i.h.bf16 %v6182_v17  ;;  %v6183_v22 = vunpack.i.l.bf16 %v6182_v17  ;;  %v945_v25 = vpack.c.bf16 %v939_v15, %v937_v18  ;;  %v889_v27 = vsel %vm639_vm0, %v6173_v13, %v6174_v12 }
 0x24c   : > { %v6177_v24 = vpop.permute.xlu1 %6176  ;;  %v944_v26 = vpack.c.bf16 %v938_v20, %v936_v19  ;;  %v904_v31 = vmax.f32 %v859_v50, %v6174_v12  ;;  %v903_v37 = vmax.f32 %v6990_v46, %v889_v27 }
 0x24d   : > { %v890_v28 = vsel %vm639_vm0, %v6183_v22, %v6184_v21  ;;  %v6179_v29 = vunpack.i.h.bf16 %v6177_v24  ;;  %v6178_v30 = vunpack.i.l.bf16 %v6177_v24  ;;  %5255 = vmatprep.mubr.msk.bf16.mxu1 %vm1019_vm14, %v945_v25  ;;  %v906_v33 = vmax.f32 %v861_v53, %v6184_v21 }
 0x24e   : > { %v6187_v32 = vpop.permute.xlu0 %6186  ;;  %1065 = vmatmul.mubr.bf16.vlgmr.msra.gmra.mrb[0].mxu1 %v944_v26  ;;  %v905_v38 = vmax.f32 %v860_v52, %v890_v28 }
 0x24f   : > { %v6189_v34 = vunpack.i.h.bf16 %v6187_v32  ;;  %v6188_v35 = vunpack.i.l.bf16 %v6187_v32  ;;  %v926_v36 = vsel %vm646_vm4, %v6178_v30, %v6179_v29  ;;  %v941_v39 = vmax.f32 %v904_v31, %v6179_v29 }
 0x250   : > { %v940_v42 = vmax.f32 %v903_v37, %v926_v36 }
 0x251   : > { %v943_v40 = vmax.f32 %v906_v33, %v6189_v34  ;;  %v927_v41 = vsel %vm646_vm4, %v6188_v35, %v6189_v34 }
 0x252   : > { %v942_v43 = vmax.f32 %v905_v38, %v927_v41 }
 0x253   : > { %v947_v44 = vpack.c.bf16 %v943_v40, %v941_v39 }
 0x254   : > { %v946_v45 = vpack.c.bf16 %v942_v43, %v940_v42 }
 0x255   : > { %5256 = vmatprep.mubr.msk.bf16.mxu1 %vm1019_vm14, %v947_v44  ;;  %vm1252_vm14 = vsmask.f32 256 }
 0x256   : > { %1073 = vmatmul.mubr.bf16.gmra.mrb[4].mxu1 %v946_v45 }
 0x321   : > { %v1066_v47 = vpop.f32.mrb[0].mxu1 }
 0x322   : > { %v1085_v48 = vmin.f32 %v1066_v47, 0.0  ;;  %v1068_v49 = vpop.f32.mrb[1].mxu1  ;;  %vm1081_vm15 = vcmp.gt.f32.partialorder %v1066_v47, 0.0 }
 0x323   : > { %v1069_v50 = vpop.f32.mrb[2].mxu1 }
 0x324   : > { %v1089_v51 = vmul.f32 1.442695, %v1085_v48  ;;  %v1086_v53 = vmin.f32 %v1069_v50, 0.0  ;;  %v1071_v54 = vpop.f32.mrb[3].mxu1  ;;  %vm1082_vm0 = vcmp.gt.f32.partialorder %v1069_v50, 0.0 }
 0x326   : > { %6482 = vpow2.f32 %v1089_v51  ;;  %v1091_v46 = vmul.f32 1.442695, %v1086_v53 }
 0x328   : > { %6484 = vpow2.f32 %v1091_v46 }
 0x329   : > { %v1074_v52 = vpop.f32.mrb[4].mxu1 }
 0x32a   : > { %v1087_v55 = vmin.f32 %v1074_v52, 0.0  ;;  %v1076_v56 = vpop.f32.mrb[5].mxu1  ;;  %vm1083_vm4 = vcmp.gt.f32.partialorder %v1074_v52, 0.0 }
 0x32b   : > { %v1077_v57 = vpop.f32.mrb[6].mxu1 }
 0x32c   : > { %v1093_v58 = vmul.f32 1.442695, %v1087_v55  ;;  %v1088_v59 = vmin.f32 %v1077_v57, 0.0  ;;  %v1079_v60 = vpop.f32.mrb[7].mxu1  ;;  %vm1084_vm5 = vcmp.gt.f32.partialorder %v1077_v57, 0.0 }
 0x32e   : > { %6486 = vpow2.f32 %v1093_v58  ;;  %v1095_v61 = vmul.f32 1.442695, %v1088_v59 }
 0x330   : > { %v6483_v62 = vpop.eup %6482  ;;  %6488 = vpow2.f32 %v1095_v61 }
 0x331   : > { %v5257_v63 = vadd.f32 -1.0, %v6483_v62  ;;  %v1114_v62 = vld [vmem:[%s8805_s6] sm:$0xff] }
 0x332   : > { %v6485_v0 = vpop.eup %6484 }
 0x333   : > { %v5258_v1 = vadd.f32 -1.0, %v6485_v0  ;;  %v1101_v2 = vsel %vm1081_vm15, %v1066_v47, %v5257_v63  ;;  %v1115_v63 = vld [vmem:[%s8805_s6 + $0x8] sm:$0xff]  ;;  %v1116_v0 = vld [vmem:[%s8805_s6 + $0x10] sm:$0xff]  ;;  %vm1263_vm15 = vcmask 1044480  }
 0x335   : > { %v1102_v3 = vsel %vm1082_vm0, %v1069_v50, %v5258_v1  ;;  %v1117_v1 = vld [vmem:[%s8805_s6 + $0x18] sm:$0xff]  ;;  %vm1286_vm0 = vcmask 1047552  }
 0x336   : > { %v7011_v4 = vpack.c.bf16 %v1102_v3, %v1101_v2  ;;  %v1121_v2 = vld [vmem:[%s8745_s7] sm:$0xff]  ;;  %v1122_v3 = vld [vmem:[%s8745_s7 + $0x8] sm:$0xff] }
 0x338   : > { %v6487_v5 = vpop.eup %6486  ;;  %v1218_v6 = vrot.slane %v7011_v4, 5  ;;  %v7015_v7 = vshrl.u32 %v7011_v4, 16  ;;  %v7018_v8 = vshll.u32 %v7011_v4, 16  ;;  %v1168_v16 = vrot.slane %v7011_v4, 7 }
 0x339   : > { %v5259_v9 = vadd.f32 -1.0, %v6487_v5  ;;  %v1241_v40 = vrot.slane %v7011_v4, 4  ;;  %v1193_v58 = vrot.slane %v7011_v4, 6  ;;  %v1123_v5 = vld [vmem:[%s8745_s7 + $0x10] sm:$0xff] }
 0x33a   : > { %v6489_v10 = vpop.eup %6488  ;;  %1221 = vrot.lane.b32.xlu1 %v1218_v6, %s8770_s26  ;;  %v1227_v11 = vrot.slane %v7018_v8, 1  ;;  %v1143_v12 = vrot.slane %v7015_v7, 3  ;;  %v1146_v13 = vrot.slane %v7018_v8, 4  ;;  %v1202_v32 = vrot.slane %v7015_v7, 1 }
 0x33b   : > { %v5260_v15 = vadd.f32 -1.0, %v6489_v10  ;;  %v1103_v17 = vsel %vm1083_vm4, %v1074_v52, %v5259_v9  ;;  %v1203_v33 = vrot.slane %v7018_v8, 2  ;;  %v1177_v43 = vrot.slane %v7015_v7, 2  ;;  %v6418_v52 = vld [vmem:[#allocation2 + $0x4] ss:$8 sps:$4 sm:$0xff]   ;;  %vm1264_vm4 = vmand %vm1263_vm15, %vm1139_vm11 }
 0x33c   : > { %1232 = vrot.lane.b32.xlu0 %v1227_v11, %s8768_s17  ;;  %v1147_v20 = vor.u32 %v1146_v13, %v1143_v12  ;;  %v1228_v25 = vor.u32 %v1227_v11, %v7015_v7  ;;  %v1178_v44 = vrot.slane %v7018_v8, 3  ;;  %v1253_v49 = vrot.slane %v7015_v7, 7  ;;  %5269 = vmatprep.mubr.msk.bf16.mxu0 %vm671_vm7, %v6418_v52  ;;  %v1118_v7 = vld [vmem:[%s8805_s6 + $0x20] sm:$0xff]  ;;  %v1120_v9 = vld [vmem:[%s8805_s6 + $0x30] sm:$0x3]  ;;  %v1126_v11 = vld [vmem:[%s8745_s7 + $0x28] sm:$0xff] }
 0x33d   : > { %v1104_v18 = vsel %vm1084_vm5, %v1077_v57, %v5260_v15  ;;  %v1204_v35 = vor.u32 %v1203_v33, %v1202_v32  ;;  %v1125_v10 = vld [vmem:[%s8745_s7 + $0x20] sm:$0xff]  ;;  %v1127_v12 = vld [vmem:[%s8745_s7 + $0x30] sm:$0x3]  ;;  %vm1287_vm5 = vmand %vm1286_vm0, %vm1226_vm8 }
 0x33e   : > { %v7026_v19 = vpack.c.bf16 %v1104_v18, %v1103_v17  ;;  %1171 = vrot.lane.b32.xlu1 %v1168_v16, %s8774_s21  ;;  %v1179_v48 = vor.u32 %v1178_v44, %v1177_v43  ;;  %v1254_v54 = vor.u32 %v1253_v49, %v7018_v8  ;;  %v1119_v8 = vld [vmem:[%s8805_s6 + $0x28] sm:$0xff]  ;;  %v6427_v52 = vld [vmem:[%s8746_s8] sm:$0xff]  }
 0x33f   : > { %5976 = vmatprep.subr.bf16.mxu1 %v6427_v52 }
 0x340   : > { %1157 = vrot.lane.b32.xlu0 %v1147_v20, %s8776_s22  ;;  %v1219_v21 = vrot.slane %v7026_v19, 5  ;;  %v1152_v22 = vshll.u32 %v7026_v19, 16  ;;  %v1149_v24 = vshrl.u32 %v7026_v19, 16  ;;  %v1169_v37 = vrot.slane %v7026_v19, 7  ;;  %5977 = vmatpush3.bf16.msra.mxu1 %v6427_v52 }
 0x341   : > { %v1242_v47 = vrot.slane %v7026_v19, 4  ;;  %v1194_v56 = vrot.slane %v7026_v19, 6 }
 0x342   : > { %v1220_v26 = vsel %vm1217_vm6, %v1218_v6, %v1219_v21  ;;  %v1229_v27 = vrot.slane %v1152_v22, 1  ;;  %v1205_v28 = vrot.slane %v1149_v24, 1  ;;  %v1206_v29 = vrot.slane %v1152_v22, 2  ;;  %v1124_v6 = vld [vmem:[%s8745_s7 + $0x18] sm:$0xff] }
 0x343   : > { %1223 = vrot.lane.b32.xlu1 %v1220_v26, %s8770_s26  ;;  %v1151_v38 = vrot.slane %v1149_v24, 3  ;;  %v1154_v39 = vrot.slane %v1152_v22, 4  ;;  %v1170_v41 = vsel %vm1167_vm10, %v1168_v16, %v1169_v37  ;;  %v1180_v50 = vrot.slane %v1149_v24, 2 }
 0x344   : > { %v1230_v30 = vsel %vm1226_vm8, %v1228_v25, %v1229_v27  ;;  %v1231_v31 = vor.u32 %v1229_v27, %v1149_v24  ;;  %v1207_v34 = vor.u32 %v1206_v29, %v1205_v28  ;;  %v1181_v51 = vrot.slane %v1152_v22, 3  ;;  %vm1293_vm8 = vmand %vm1167_vm10, %vm1252_vm14 }
 0x345   : > { %1234 = vrot.lane.b32.xlu0 %v1230_v30, %s8768_s17  ;;  %v1155_v42 = vor.u32 %v1154_v39, %v1151_v38  ;;  %v1243_v53 = vsel %vm698_vm2, %v1241_v40, %v1242_v47  ;;  %v1255_v57 = vrot.slane %v1149_v24, 7  ;;  %v1195_v59 = vsel %vm691_vm1, %v1193_v58, %v1194_v56 }
 0x346   : > { %v1208_v36 = vsel %vm1201_vm9, %v1204_v35, %v1207_v34  ;;  %v1182_v46 = vor.u32 %v1181_v51, %v1180_v50  ;;  %v6422_v50 = vld [vmem:[#allocation2 + $0x24] ss:$8 sps:$4 sm:$0xff]   ;;  %v1113_v51 = vld [vmem:[#allocation2 + $0x30] sm:$0x11] }
 0x347   : > { %1236 = vrot.lane.b32.xlu1 %v1231_v31, %s8768_s17  ;;  %v1156_v45 = vsel %vm1139_vm11, %v1147_v20, %v1155_v42  ;;  %v1256_v60 = vor.u32 %v1255_v57, %v1152_v22  ;;  %vm1272_vm11 = vmand %vm703_vm3, %vm1176_vm12  ;;  %s8810_s17 = smov 123  }
 0x348   : > { %v1183_v55 = vsel %vm1176_vm12, %v1179_v48, %v1182_v46  ;;  %vm1279_vm12 = vmand %vm1026_vm13, %vm1201_vm9 }
 0x349   : > { %1213 = vrot.lane.b32.xlu0 %v1207_v34, %s8772_s25  ;;  %v1257_v61 = vsel %vm1252_vm14, %v1253_v49, %v1256_v60  ;;  %v6421_v49 = vld [vmem:[#allocation2 + $0x10] ss:$8 sps:$4 sm:$0xff]  }
 0x34b   : > { %1211 = vrot.lane.b32.xlu1 %v1208_v36, %s8772_s25 }
 0x34d   : > { %1244 = vrot.lane.b32.xlu0 %v1241_v40, %s8801_s24 }
 0x34f   : > { %1173 = vrot.lane.b32.xlu1 %v1170_v41, %s8774_s21  ;;  %s8806_s21 = smov 127  }
 0x351   : > { %1161 = vrot.lane.b32.xlu0 %v1155_v42, %s8776_s22 }
 0x353   : > { %1159 = vrot.lane.b32.xlu1 %v1156_v45, %s8776_s22 }
 0x355   : > { %1184 = vrot.lane.b32.xlu0 %v1179_v48, %s8802_s18  ;;  %v6419_v48 = vld [vmem:[#allocation2 + $0x14] ss:$8 sps:$4 sm:$0xff]  }
 0x357   : > { %1246 = vrot.lane.b32.xlu1 %v1243_v53, %s8801_s24  ;;  %v6424_v53 = vld [vmem:[#allocation2 + $0x20] ss:$8 sps:$4 sm:$0xff]  }
 0x359   : > { %1258 = vrot.lane.b32.xlu0 %v1254_v54, %s8803_s28  ;;  %v5268_v54 = vcombine.high %v1113_v51, %v1113_v51 }
 0x35b   : > { %1248 = vrot.lane.b32.xlu1 %v1242_v47, %s8801_s24  ;;  %v6416_v47 = vld [vmem:[#allocation2] ss:$8 sps:$4 sm:$0xff]  }
 0x35d   : > { %1186 = vrot.lane.b32.xlu0 %v1183_v55, %s8802_s18  ;;  %v6428_v55 = vld [vmem:[%s8746_s8 + $0x8] sm:$0xff]  }
 0x35e   : > { %5978 = vmatprep.subr.bf16.mxu1 %v6428_v55 }
 0x35f   : > { %1188 = vrot.lane.b32.xlu1 %v1182_v46, %s8802_s18  ;;  %v5267_v46 = vcombine.low %v1113_v51, %v1113_v51  ;;  %5979 = vmatpush3.bf16.msra.mxu1 %v6428_v55 }
 0x361   : > { %1196 = vrot.lane.b32.xlu0 %v1193_v58, %s8804_s0 }
 0x363   : > { %1198 = vrot.lane.b32.xlu1 %v1195_v59, %s8804_s0 }
 0x365   : > { %1209 = vrot.lane.b32.xlu0 %v1204_v35, %s8772_s25 }
 0x367   : > { %1260 = vrot.lane.b32.xlu1 %v1257_v61, %s8803_s28 }
 0x369   : > { %1411 = vperm.xlu0 %6148, %v1114_v62  }
 0x36b   : > { %1416 = vperm.xlu1 %6149, %v1115_v63   ;;  %v6429_v63 = vld [vmem:[%s8746_s8 + $0x10] sm:$0xff]  }
 0x36c   : > { %5980 = vmatprep.subr.bf16.mxu1 %v6429_v63 }
 0x36d   : > { %1421 = vperm.xlu0 %6148, %v1116_v0   ;;  %5981 = vmatpush3.bf16.msra.mxu1 %v6429_v63 }
 0x36f   : > { %1426 = vperm.xlu1 %6149, %v1117_v1  }
 0x371   : > { %1453 = vperm.xlu0 %6148, %v1121_v2  }
 0x373   : > { %1458 = vperm.xlu1 %6149, %v1122_v3  }
 0x375   : > { %1463 = vperm.xlu0 %6148, %v1123_v5  }
 0x377   : > { %1468 = vperm.xlu1 %6149, %v1124_v6  }
 0x379   : > { %1431 = vperm.xlu0 %6148, %v1118_v7  }
 0x37b   : > { %1436 = vperm.xlu1 %6149, %v1119_v8   ;;  %v6430_v8 = vld [vmem:[%s8746_s8 + $0x18] sm:$0xff]  }
 0x37c   : > { %5982 = vmatprep.subr.bf16.mxu1 %v6430_v8 }
 0x37d   : > { %1441 = vperm.xlu0 %6148, %v1120_v9   ;;  %5983 = vmatpush3.bf16.msra.mxu1 %v6430_v8 }
 0x37f   : > { %1473 = vperm.xlu1 %6149, %v1125_v10  }
 0x381   : > { %1478 = vperm.xlu0 %6148, %v1126_v11  }
 0x383   : > { %1483 = vperm.xlu1 %6149, %v1127_v12  }
 0x3ac   : > { %v1222_v13 = vpop.permute.xlu1 %1221 }
 0x3ae   : > { %v1233_v15 = vpop.permute.xlu0 %1232 }
 0x3b0   : > { %v1172_v16 = vpop.permute.xlu1 %1171 }
 0x3b2   : > { %v1158_v17 = vpop.permute.xlu0 %1157 }
 0x3b3   : > { %v1265_v28 = vsel %vm1264_vm4, %v7026_v19, %v1158_v17 }
 0x3b5   : > { %v1224_v18 = vpop.permute.xlu1 %1223 }
 0x3b6   : > { %v1288_v30 = vsel %vm1287_vm5, %v1224_v18, %v1233_v15  ;;  %v6431_v15 = vld [vmem:[%s8746_s8 + $0x20] sm:$0xff]  }
 0x3b7   : > { %v1235_v20 = vpop.permute.xlu0 %1234  ;;  %5984 = vmatprep.subr.bf16.mxu1 %v6431_v15 }
 0x3b8   : > { %5985 = vmatpush3.bf16.msra.mxu1 %v6431_v15 }
 0x3b9   : > { %v1237_v21 = vpop.permute.xlu1 %1236 }
 0x3bb   : > { %v1214_v22 = vpop.permute.xlu0 %1213 }
 0x3bc   : > { %v1284_v26 = vsel %vm1217_vm6, %v1214_v22, %v1222_v13 }
 0x3bd   : > { %v1212_v24 = vpop.permute.xlu1 %1211 }
 0x3be   : > { %5505 = vmatprep.subr.bf16.mxu0 %v1212_v24 }
 0x3bf   : > { %v1245_v25 = vpop.permute.xlu0 %1244  ;;  %5506 = vmatpush3.bf16.msra.mxu0 %v7011_v4 }
 0x3c0   : > { %5507 = vmatprep.subr.bf16.mxu0 %v1284_v26  ;;  %v1291_v35 = vsel %vm698_vm2, %v1237_v21, %v1245_v25  ;;  %v6432_v26 = vld [vmem:[%s8746_s8 + $0x28] ss:$0 sps:$4 sm:$0x33]  }
 0x3c1   : > { %v1174_v27 = vpop.permute.xlu1 %1173 }
 0x3c3   : > { %5508 = vmatpush3.bf16.msra.mxu0 %v1265_v28  ;;  %v1162_v29 = vpop.permute.xlu0 %1161 }
 0x3c4   : > { %5509 = vmatprep.subr.bf16.mxu0 %v1288_v30  ;;  %v1269_v4 = vsel %vm1167_vm10, %v1162_v29, %v1172_v16 }
 0x3c5   : > { %v1160_v31 = vpop.permute.xlu1 %1159 }
 0x3c7   : > { %v1185_v32 = vpop.permute.xlu0 %1184  ;;  %5510 = vmatpush3.bf16.msra.mxu0 %v1160_v31 }
 0x3c8   : > { %5511 = vmatprep.subr.bf16.mxu0 %v1235_v20  ;;  %v1273_v36 = vsel %vm1272_vm11, %v1174_v27, %v1185_v32  ;;  %v1606_v27 = vsel %vm1167_vm10, 4294967295, %v6669_v23 }
 0x3c9   : > { %v1247_v33 = vpop.permute.xlu1 %1246  ;;  %v1607_v28 = vsel %vm691_vm1, %v1606_v27, 0 }
 0x3ca   : > { %v1609_v30 = vand.u32 %v6432_v26, %v1607_v28 }
 0x3cb   : > { %v1259_v34 = vpop.permute.xlu0 %1258  ;;  %5512 = vmatpush3.bf16.msra.mxu0 %v1269_v4 }
 0x3cc   : > { %5513 = vmatprep.subr.bf16.mxu0 %v1291_v35  ;;  %5986 = vmatprep.subr.bf16.mxu1 %v1609_v30 }
 0x3cd   : > { %v1249_v19 = vpop.permute.xlu1 %1248  ;;  %5987 = vmatpush3.bf16.msra.mxu1 %v1609_v30 }
 0x3ce   : > { %v1294_v40 = vsel %vm1293_vm8, %v1249_v19, %v1259_v34 }
 0x3cf   : > { %v1187_v37 = vpop.permute.xlu0 %1186  ;;  %5514 = vmatpush3.bf16.msra.mxu0 %v1273_v36 }
 0x3d0   : > { %5515 = vmatprep.subr.bf16.mxu0 %v1247_v33 }
 0x3d1   : > { %v1189_v38 = vpop.permute.xlu1 %1188 }
 0x3d3   : > { %v1197_v39 = vpop.permute.xlu0 %1196  ;;  %5516 = vmatpush3.bf16.msra.mxu0 %v1187_v37 }
 0x3d4   : > { %5517 = vmatprep.subr.bf16.mxu0 %v1294_v40  ;;  %v1276_v42 = vsel %vm691_vm1, %v1189_v38, %v1197_v39 }
 0x3d5   : > { %v1199_v41 = vpop.permute.xlu1 %1198 }
 0x3d7   : > { %v1210_v43 = vpop.permute.xlu0 %1209  ;;  %5518 = vmatpush3.bf16.msra.mxu0 %v1276_v42 }
 0x3d8   : > { %v1280_v45 = vsel %vm1279_vm12, %v1199_v41, %v1210_v43 }
 0x3d9   : > { %v1261_v44 = vpop.permute.xlu1 %1260 }
 0x3da   : > { %6098 = vmatprep.subr.msk.bf16.mxu0 %vm1263_vm15, %v1261_v44 }
 0x3db   : > { %5520 = vmatpush3.bf16.msra.mxu0 %v1280_v45 }
 0x3de   : > { %1378 = vmatmul.mubr.bf16.vlgmr.msra.gmra.mrb[8].mxu0 %v6416_v47 }
 0x3df   : > { %5270 = vmatprep.mubr.msk.bf16.mxu0 %vm671_vm7, %v6419_v48 }
 0x3e6   : > { %1386 = vmatmul.mubr.bf16.gmra.mrb[12].mxu0 %v6421_v49 }
 0x3e7   : > { %5271 = vmatprep.mubr.msk.bf16.mxu0 %vm671_vm7, %v6422_v50 }
 0x3e8   : > { %v1412_v56 = vpop.permute.xlu0 %1411 }
 0x3ea   : > { %v1417_v57 = vpop.permute.xlu1 %1416 }
 0x3ec   : > { %v1422_v58 = vpop.permute.xlu0 %1421 }
 0x3ee   : > { %1394 = vmatmul.mubr.bf16.gmra.mrb[16].mxu0 %v6424_v53  ;;  %v1427_v59 = vpop.permute.xlu1 %1426 }
 0x3ef   : > { %5272 = vmatprep.mubr.msk.bf16.mxu0 %vm671_vm7, %v5268_v54  ;;  %vm1593_vm7 = vcmask 678912  }
 0x3f0   : > { %v1454_v60 = vpop.permute.xlu0 %1453 }
 0x3f2   : > { %v1459_v3 = vpop.permute.xlu1 %1458 }
 0x3f4   : > { %v1464_v7 = vpop.permute.xlu0 %1463 }
 0x3f6   : > { %1402 = vmatmul.mubr.bf16.gmra.mrb[20].mxu0 %v5267_v46  ;;  %v1469_v16 = vpop.permute.xlu1 %1468 }
 0x3f8   : > { %v1432_v21 = vpop.permute.xlu0 %1431 }
 0x3fa   : > { %v1437_v31 = vpop.permute.xlu1 %1436 }
 0x3fc   : > { %v1442_v34 = vpop.permute.xlu0 %1441 }
 0x3fe   : > { %v1474_v42 = vpop.permute.xlu1 %1473 }
 0x400   : > { %v1479_v43 = vpop.permute.xlu0 %1478 }
 0x402   : > { %v1484_v46 = vpop.permute.xlu1 %1483 }
 0x4b1   : > { %v5521_v61 = vpop.f32.mrb[8].mxu0 }
 0x4b2   : > { %v5522_v62 = vpop.f32.mrb[9].mxu0 }
 0x4b3   : > { %v5523_v0 = vadd.f32 %v5522_v62, %v5521_v61  ;;  %v5524_v1 = vpop.f32.mrb[10].mxu0 }
 0x4b4   : > { %v5525_v2 = vpop.f32.mrb[11].mxu0 }
 0x4b5   : > { %v1444_v5 = vmul.f32 %v5523_v0, %v1412_v56  ;;  %v5526_v6 = vadd.f32 %v5525_v2, %v5524_v1 }
 0x4b7   : > { %v1445_v9 = vmul.f32 %v5526_v6, %v1417_v57  ;;  %v1486_v10 = vadd.f32 %v1454_v60, %v1444_v5 }
 0x4b9   : > { %v1487_v11 = vadd.f32 %v1459_v3, %v1445_v9  ;;  %v5527_v12 = vpop.f32.mrb[12].mxu0 }
 0x4ba   : > { %v5528_v13 = vpop.f32.mrb[13].mxu0 }
 0x4bb   : > { %v5529_v17 = vadd.f32 %v5528_v13, %v5527_v12  ;;  %v5530_v18 = vpop.f32.mrb[14].mxu0  ;;  %v6190_v20 = vpack.i.bf16 %v1487_v11, %v1486_v10 }
 0x4bc   : > { %v5531_v22 = vpop.f32.mrb[15].mxu0 }
 0x4bd   : > { %v1446_v24 = vmul.f32 %v5529_v17, %v1422_v58  ;;  %v5532_v25 = vadd.f32 %v5531_v22, %v5530_v18  ;;  %6191 = vrot.lane.b32.xlu0 %v6190_v20, %s8806_s21 }
 0x4bf   : > { %v1447_v29 = vmul.f32 %v5532_v25, %v1427_v59  ;;  %v1488_v32 = vadd.f32 %v1464_v7, %v1446_v24 }
 0x4c1   : > { %v1489_v33 = vadd.f32 %v1469_v16, %v1447_v29  ;;  %v5533_v4 = vpop.f32.mrb[16].mxu0  ;;  %6196 = vrot.lane.b32.xlu0 %v6190_v20, %s8807_s19 }
 0x4c2   : > { %v5534_v35 = vpop.f32.mrb[17].mxu0 }
 0x4c3   : > { %v5535_v19 = vadd.f32 %v5534_v35, %v5533_v4  ;;  %v5536_v36 = vpop.f32.mrb[18].mxu0  ;;  %v6200_v37 = vpack.i.bf16 %v1489_v33, %v1488_v32 }
 0x4c4   : > { %v5537_v38 = vpop.f32.mrb[19].mxu0 }
 0x4c5   : > { %v1448_v39 = vmul.f32 %v5535_v19, %v1432_v21  ;;  %v5538_v40 = vadd.f32 %v5537_v38, %v5536_v36  ;;  %6201 = vrot.lane.b32.xlu1 %v6200_v37, %s8806_s21 }
 0x4c7   : > { %v1449_v41 = vmul.f32 %v5538_v40, %v1437_v31  ;;  %v1490_v44 = vadd.f32 %v1474_v42, %v1448_v39 }
 0x4c9   : > { %v1491_v45 = vadd.f32 %v1479_v43, %v1449_v41  ;;  %v5539_v47 = vpop.f32.mrb[20].mxu0  ;;  %6206 = vrot.lane.b32.xlu1 %v6200_v37, %s8807_s19 }
 0x4ca   : > { %v5540_v48 = vpop.f32.mrb[21].mxu0 }
 0x4cb   : > { %v5541_v49 = vadd.f32 %v5540_v48, %v5539_v47  ;;  %v6210_v50 = vpack.i.bf16 %v1491_v45, %v1490_v44  ;;  %v5542_v51 = vpop.f32.mrb[22].mxu0 }
 0x4cc   : > { %v5543_v53 = vpop.f32.mrb[23].mxu0 }
 0x4cd   : > { %v1450_v54 = vmul.f32 %v5541_v49, %v1442_v34  ;;  %6211 = vrot.lane.b32.xlu0 %v6210_v50, %s8806_s21 }
 0x4cf   : > { %v1492_v52 = vadd.f32 %v1484_v46, %v1450_v54 }
 0x4d1   : > { %6216 = vrot.lane.b32.xlu0 %v6210_v50, %s8807_s19  ;;  %1512 = vrot.lane.b32.xlu1 %v1492_v52, %s8806_s21 }
 0x4d5   : > { %1540 = vrot.lane.b32.xlu1 %v1492_v52, %s8807_s19 }
 0x52f   : > { %v6192_v55 = vpop.permute.xlu0 %6191 }
 0x530   : > { %v6194_v56 = vunpack.i.h.bf16 %v6192_v55  ;;  %v6193_v57 = vunpack.i.l.bf16 %v6192_v55 }
 0x532   : > { %v1522_v59 = vmax.f32 %v1487_v11, %v6194_v56  ;;  %v1521_v60 = vmax.f32 %v1486_v10, %v6193_v57 }
 0x533   : > { %v6197_v58 = vpop.permute.xlu0 %6196 }
 0x534   : > { %v6199_v61 = vunpack.i.h.bf16 %v6197_v58  ;;  %v6198_v62 = vunpack.i.l.bf16 %v6197_v58 }
 0x536   : > { %v1549_v63 = vmax.f32 %v1521_v60, %v6198_v62  ;;  %v1550_v0 = vmax.f32 %v1522_v59, %v6199_v61 }
 0x537   : > { %v6202_v1 = vpop.permute.xlu1 %6201 }
 0x538   : > { %v6204_v2 = vunpack.i.h.bf16 %v6202_v1  ;;  %v6203_v3 = vunpack.i.l.bf16 %v6202_v1  ;;  %v1556_v5 = vpack.c.bf16 %v1550_v0, %v1549_v63 }
 0x53a   : > { %5988 = vmatprep.mubr.msk.bf16.mxu1 %vm1593_vm7, %v1556_v5  ;;  %v1524_v7 = vmax.f32 %v1489_v33, %v6204_v2  ;;  %v1523_v8 = vmax.f32 %v1488_v32, %v6203_v3 }
 0x53b   : > { %v6207_v6 = vpop.permute.xlu1 %6206 }
 0x53c   : > { %v6209_v9 = vunpack.i.h.bf16 %v6207_v6  ;;  %v6208_v12 = vunpack.i.l.bf16 %v6207_v6 }
 0x53e   : > { %v1551_v13 = vmax.f32 %v1523_v8, %v6208_v12  ;;  %v1552_v15 = vmax.f32 %v1524_v7, %v6209_v9 }
 0x53f   : > { %v6212_v11 = vpop.permute.xlu0 %6211 }
 0x540   : > { %v1557_v10 = vpack.c.bf16 %v1552_v15, %v1551_v13  ;;  %v6214_v16 = vunpack.i.h.bf16 %v6212_v11  ;;  %v6213_v17 = vunpack.i.l.bf16 %v6212_v11 }
 0x542   : > { %5989 = vmatmul.mubr.msk.bf16.vlgmr.msra.gmra.mrb[8].mxu1 %vm1593_vm7, %v1557_v10  ;;  %v1526_v21 = vmax.f32 %v1491_v45, %v6214_v16  ;;  %v1525_v22 = vmax.f32 %v1490_v44, %v6213_v17 }
 0x543   : > { %v6217_v18 = vpop.permute.xlu0 %6216  ;;  %v1513_v20 = vpop.permute.xlu1 %1512 }
 0x544   : > { %v6219_v24 = vunpack.i.h.bf16 %v6217_v18  ;;  %v6218_v25 = vunpack.i.l.bf16 %v6217_v18  ;;  %v1527_v28 = vmax.f32 %v1492_v52, %v1513_v20 }
 0x546   : > { %v1553_v26 = vmax.f32 %v1525_v22, %v6218_v25  ;;  %v1554_v27 = vmax.f32 %v1526_v21, %v6219_v24 }
 0x547   : > { %v1541_v29 = vpop.permute.xlu1 %1540 }
 0x548   : > { %v1555_v30 = vmax.f32 %v1527_v28, %v1541_v29  ;;  %v1558_v31 = vpack.c.bf16 %v1554_v27, %v1553_v26 }
 0x54a   : > { %v1559_v32 = vpack.c.bf16 %v1555_v30, %v1555_v30  ;;  %5992 = vmatprep.mubr.msk.bf16.mxu1 %vm1593_vm7, %v1558_v31 }
 0x54c   : > { %5993 = vmatmul.mubr.msk.bf16.gmra.mrb[12].mxu1 %vm1593_vm7, %v1559_v32  ;;  %vm2081_vm7 = vcmask 949248  }
 0x615   : > { %v5990_v33 = vpop.f32.mrb[8].mxu1 }
 0x616   : > { %v1684_v4 = vmin.f32 %v5990_v33, 0.0  ;;  %v1645_v34 = vpop.f32.mrb[9].mxu1  ;;  %vm1677_vm9 = vcmp.gt.f32.partialorder %v5990_v33, 0.0 }
 0x617   : > { %v1682_v35 = vmin.f32 %v1645_v34, 0.0  ;;  %v5991_v19 = vpop.f32.mrb[10].mxu1  ;;  %vm1675_vm4 = vcmp.gt.f32.partialorder %v1645_v34, 0.0 }
 0x618   : > { %v1693_v36 = vmul.f32 1.442695, %v1684_v4  ;;  %v1685_v37 = vmin.f32 %v5991_v19, 0.0  ;;  %v1648_v38 = vpop.f32.mrb[11].mxu1  ;;  %vm1678_vm14 = vcmp.gt.f32.partialorder %v5991_v19, 0.0 }
 0x619   : > { %v1689_v39 = vmul.f32 1.442695, %v1682_v35  ;;  %v1683_v40 = vmin.f32 %v1648_v38, 0.0  ;;  %vm1676_vm5 = vcmp.gt.f32.partialorder %v1648_v38, 0.0 }
 0x61a   : > { %6490 = vpow2.f32 %v1693_v36  ;;  %v1695_v41 = vmul.f32 1.442695, %v1685_v37 }
 0x61b   : > { %6492 = vpow2.f32 %v1689_v39  ;;  %v1691_v42 = vmul.f32 1.442695, %v1683_v40 }
 0x61c   : > { %6494 = vpow2.f32 %v1695_v41 }
 0x61d   : > { %6496 = vpow2.f32 %v1691_v42 }
 0x61f   : > { %v7169_v43 = vpop.f32.mrb[12].mxu1 }
 0x620   : > { %v1661_v44 = vpop.f32.mrb[13].mxu1  ;;  %v1688_v1 = vmin.f32 %v7169_v43, 0.0  ;;  %vm1681_vm12 = vcmp.gt.f32.partialorder %v7169_v43, 0.0 }
 0x621   : > { %v1686_v45 = vmin.f32 %v1661_v44, 0.0  ;;  %v5995_v47 = vpop.f32.mrb[14].mxu1  ;;  %vm1679_vm11 = vcmp.gt.f32.partialorder %v1661_v44, 0.0 }
 0x622   : > { %v1664_v48 = vpop.f32.mrb[15].mxu1  ;;  %v1701_v5 = vmul.f32 1.442695, %v1688_v1 }
 0x623   : > { %v1697_v49 = vmul.f32 1.442695, %v1686_v45  ;;  %v1687_v50 = vmin.f32 %v1664_v48, 0.0  ;;  %vm1680_vm8 = vcmp.gt.f32.partialorder %v1664_v48, 0.0 }
 0x624   : > { %v6491_v51 = vpop.eup %6490 }
 0x625   : > { %v6493_v53 = vpop.eup %6492  ;;  %v5285_v54 = vadd.f32 -1.0, %v6491_v51  ;;  %6498 = vpow2.f32 %v1697_v49  ;;  %v1699_v46 = vmul.f32 1.442695, %v1687_v50 }
 0x626   : > { %v6495_v52 = vpop.eup %6494  ;;  %v5283_v55 = vadd.f32 -1.0, %v6493_v53 }
 0x627   : > { %v6497_v56 = vpop.eup %6496  ;;  %v5286_v57 = vadd.f32 -1.0, %v6495_v52  ;;  %6500 = vpow2.f32 %v1699_v46  ;;  %v1712_v59 = vsel %vm1677_vm9, %v5990_v33, %v5285_v54 }
 0x628   : > { %v5284_v58 = vadd.f32 -1.0, %v6497_v56  ;;  %v1710_v61 = vsel %vm1675_vm4, %v1645_v34, %v5283_v55  ;;  %6502 = vpow2.f32 %v1701_v5 }
 0x629   : > { %v1713_v60 = vsel %vm1678_vm14, %v5991_v19, %v5286_v57 }
 0x62a   : > { %v7171_v62 = vpack.c.bf16 %v1713_v60, %v1712_v59  ;;  %v1711_v63 = vsel %vm1676_vm5, %v1648_v38, %v5284_v58  ;;  %v6435_v60 = vld [vmem:[#allocation4 + $0x4] ss:$16 sps:$4 sm:$0xff]  }
 0x62b   : > { %v7173_v0 = vpack.c.bf16 %v1711_v63, %v1710_v61  ;;  %2138 = vmatprep.mubr.bf16.mxu0 %v6435_v60  ;;  %v6438_v63 = vld [vmem:[#allocation4 + $0xc] ss:$16 sps:$4 sm:$0xff]  }
 0x62c   : > { %1903 = vrot.lane.b32.xlu0 %v7171_v62, %s8801_s24  ;;  %v1850_v18 = vrot.slane %v7171_v62, 3  ;;  %v1816_v20 = vrot.slane %v7171_v62, 5  ;;  %v1867_v22 = vrot.slane %v7171_v62, 2  ;;  %v1782_v25 = vrot.slane %v7171_v62, 7  ;;  %5318 = vmatprep.mubr.msk.bf16.mxu1 %vm2081_vm7, %v6438_v63 }
 0x62d   : > { %1901 = vrot.lane.b32.xlu1 %v7173_v0, %s8801_s24  ;;  %v1815_v2 = vrot.slane %v7173_v0, 5  ;;  %v1866_v6 = vrot.slane %v7173_v0, 2  ;;  %v1832_v12 = vrot.slane %v7173_v0, 4  ;;  %v1781_v13 = vrot.slane %v7173_v0, 7 }
 0x62e   : > { %v1883_v16 = vrot.slane %v7173_v0, 1  ;;  %v1849_v17 = vrot.slane %v7173_v0, 3  ;;  %v1833_v30 = vrot.slane %v7171_v62, 4  ;;  %v1799_v4 = vrot.slane %v7171_v62, 6 }
 0x62f   : > { %v6499_v3 = vpop.eup %6498  ;;  %v1817_v24 = vsel %vm1217_vm6, %v1815_v2, %v1816_v20  ;;  %v1868_v27 = vsel %vm703_vm3, %v1866_v6, %v1867_v22  ;;  %v1783_v29 = vsel %vm1167_vm10, %v1781_v13, %v1782_v25  ;;  %v1884_v19 = vrot.slane %v7171_v62, 1 }
 0x630   : > { %v5287_v7 = vadd.f32 -1.0, %v6499_v3  ;;  %1822 = vrot.lane.b32.xlu0 %v1815_v2, %s8802_s18  ;;  %v1851_v21 = vsel %vm1263_vm15, %v1849_v17, %v1850_v18  ;;  %v1834_v33 = vsel %vm698_vm2, %v1832_v12, %v1833_v30  ;;  %v1798_v49 = vrot.slane %v7173_v0, 6 }
 0x631   : > { %v6501_v8 = vpop.eup %6500  ;;  %1873 = vrot.lane.b32.xlu1 %v1866_v6, %s8808_s1  ;;  %v1885_v36 = vsel %vm1026_vm13, %v1883_v16, %v1884_v19  ;;  %v1747_v6 = vld [vmem:[%s8748_s10] sm:$0xff] }
 0x632   : > { %v5288_v9 = vadd.f32 -1.0, %v6501_v8  ;;  %v1714_v15 = vsel %vm1679_vm11, %v1661_v44, %v5287_v7  ;;  %v6503_v26 = vpop.eup %6502  ;;  %v1800_v3 = vsel %vm691_vm1, %v1798_v49, %v1799_v4  ;;  %v1748_v7 = vld [vmem:[%s8748_s10 + $0x8] sm:$0xff]  ;;  %v1760_v8 = vld [vmem:[%s8749_s11] sm:$0xff] }
 0x633   : > { %v5289_v28 = vadd.f32 -1.0, %v6503_v26  ;;  %v1755_v26 = vld [vmem:[%s8748_s10 + $0x40] sm:$0xff] }
 0x634   : > { %v1715_v11 = vsel %vm1680_vm8, %v1664_v48, %v5288_v9  ;;  %1839 = vrot.lane.b32.xlu0 %v1832_v12, %s8804_s0  ;;  %v1761_v9 = vld [vmem:[%s8749_s11 + $0x8] sm:$0xff]  ;;  %v1749_v12 = vld [vmem:[%s8748_s10 + $0x10] sm:$0xff] }
 0x635   : > { %v7187_v10 = vpack.c.bf16 %v1715_v11, %v1714_v15  ;;  %1788 = vrot.lane.b32.xlu1 %v1781_v13, %s8806_s21  ;;  %v1716_v32 = vsel %vm1681_vm12, %v7169_v43, %v5289_v28  ;;  %v1762_v15 = vld [vmem:[%s8749_s11 + $0x10] sm:$0xff]  ;;  %v1763_v11 = vld [vmem:[%s8749_s11 + $0x18] sm:$0xff]  ;;  %v1768_v28 = vld [vmem:[%s8749_s11 + $0x40] sm:$0xff] }
 0x636   : > { %v7216_v34 = vpack.c.bf16 %v1716_v32, %v1716_v32  ;;  %v1770_v32 = vld [vmem:[%s8749_s11 + $0x50] sm:$0xff] }
 0x637   : > { %v1801_v31 = vrot.slane %v7187_v10, 6  ;;  %v1852_v37 = vrot.slane %v7187_v10, 3  ;;  %v1886_v38 = vrot.slane %v7187_v10, 1  ;;  %v1818_v45 = vrot.slane %v7187_v10, 5 }
 0x638   : > { %1912 = vrot.lane.b32.xlu0 %v1781_v13, %s8803_s28  ;;  %v1888_v39 = vrot.slane %v7216_v34, 1  ;;  %v1854_v42 = vrot.slane %v7216_v34, 3  ;;  %v1803_v43 = vrot.slane %v7216_v34, 6  ;;  %v1869_v50 = vrot.slane %v7187_v10, 2  ;;  %v1750_v13 = vld [vmem:[%s8748_s10 + $0x18] sm:$0xff] }
 0x639   : > { %1890 = vrot.lane.b32.xlu1 %v1883_v16, %s8809_s20  ;;  %v1802_v35 = vsel %vm691_vm1, %v1799_v4, %v1801_v31  ;;  %v1853_v40 = vsel %vm1263_vm15, %v1850_v18, %v1852_v37  ;;  %v1819_v48 = vsel %vm1217_vm6, %v1816_v20, %v1818_v45  ;;  %v1820_v51 = vrot.slane %v7216_v34, 5  ;;  %v1751_v16 = vld [vmem:[%s8748_s10 + $0x20] sm:$0xff]  ;;  %v1765_v20 = vld [vmem:[%s8749_s11 + $0x28] sm:$0xff]  ;;  %v1771_v4 = vld [vmem:[%s8749_s11 + $0x58] sm:$0xff] }
 0x63a   : > { %v1889_v41 = vsel %vm1026_vm13, %v1886_v38, %v1888_v39  ;;  %v1855_v44 = vsel %vm1263_vm15, %v1852_v37, %v1854_v42  ;;  %v1804_v47 = vsel %vm691_vm1, %v1801_v31, %v1803_v43  ;;  %v1870_v53 = vsel %vm703_vm3, %v1867_v22, %v1869_v50  ;;  %v1764_v18 = vld [vmem:[%s8749_s11 + $0x20] sm:$0xff]  ;;  %v1754_v22 = vld [vmem:[%s8748_s10 + $0x38] sm:$0xff] }
 0x63b   : > { %v1821_v54 = vsel %vm1217_vm6, %v1818_v45, %v1820_v51  ;;  %v1784_v46 = vrot.slane %v7187_v10, 7  ;;  %v1871_v52 = vrot.slane %v7216_v34, 2  ;;  %v1786_v57 = vrot.slane %v7216_v34, 7  ;;  %v1758_v31 = vld [vmem:[%s8748_s10 + $0x58] sm:$0xff]  ;;  %v1772_v37 = vld [vmem:[%s8749_s11 + $0x60] sm:$0xf] }
 0x63c   : > { %1858 = vrot.lane.b32.xlu0 %v1851_v21, %s8810_s17  ;;  %v1835_v59 = vrot.slane %v7187_v10, 4  ;;  %v1837_v61 = vrot.slane %v7216_v34, 4  ;;  %v1887_v5 = vsel %vm1026_vm13, %v1884_v19, %v1886_v38  ;;  %v1753_v21 = vld [vmem:[%s8748_s10 + $0x30] sm:$0xff]  ;;  %v1759_v19 = vld [vmem:[%s8748_s10 + $0x60] sm:$0xf] }
 0x63d   : > { %1824 = vrot.lane.b32.xlu1 %v1817_v24, %s8802_s18  ;;  %v1872_v55 = vsel %vm703_vm3, %v1869_v50, %v1871_v52  ;;  %v1785_v56 = vsel %vm1167_vm10, %v1782_v25, %v1784_v46  ;;  %v1787_v58 = vsel %vm1167_vm10, %v1784_v46, %v1786_v57  ;;  %v1766_v24 = vld [vmem:[%s8749_s11 + $0x30] sm:$0xff]  ;;  %v1767_v25 = vld [vmem:[%s8749_s11 + $0x38] sm:$0xff] }
 0x63e   : > { %v1836_v1 = vsel %vm698_vm2, %v1833_v30, %v1835_v59  ;;  %v1838_v2 = vsel %vm698_vm2, %v1835_v59, %v1837_v61  ;;  %v1757_v30 = vld [vmem:[%s8748_s10 + $0x50] sm:$0xff] }
 0x640   : > { %1875 = vrot.lane.b32.xlu0 %v1868_v27, %s8808_s1  ;;  %v1756_v27 = vld [vmem:[%s8748_s10 + $0x48] sm:$0xff] }
 0x641   : > { %1790 = vrot.lane.b32.xlu1 %v1783_v29, %s8806_s21 }
 0x644   : > { %1914 = vrot.lane.b32.xlu0 %v1783_v29, %s8803_s28  ;;  %v1769_v29 = vld [vmem:[%s8749_s11 + $0x48] sm:$0xff] }
 0x645   : > { %1841 = vrot.lane.b32.xlu1 %v1834_v33, %s8804_s0 }
 0x648   : > { %1809 = vrot.lane.b32.xlu0 %v1802_v35, %s8807_s19 }
 0x649   : > { %1907 = vrot.lane.b32.xlu1 %v7216_v34, %s8801_s24 }
 0x64c   : > { %1892 = vrot.lane.b32.xlu0 %v1885_v36, %s8809_s20 }
 0x64d   : > { %1905 = vrot.lane.b32.xlu1 %v7187_v10, %s8801_s24 }
 0x650   : > { %1860 = vrot.lane.b32.xlu0 %v1853_v40, %s8810_s17 }
 0x651   : > { %1896 = vrot.lane.b32.xlu1 %v1889_v41, %s8809_s20 }
 0x654   : > { %1862 = vrot.lane.b32.xlu0 %v1855_v44, %s8810_s17 }
 0x655   : > { %1811 = vrot.lane.b32.xlu1 %v1804_v47, %s8807_s19 }
 0x658   : > { %1826 = vrot.lane.b32.xlu0 %v1819_v48, %s8802_s18 }
 0x659   : > { %1805 = vrot.lane.b32.xlu1 %v1798_v49, %s8807_s19 }
 0x65c   : > { %1877 = vrot.lane.b32.xlu0 %v1870_v53, %s8808_s1 }
 0x65d   : > { %1828 = vrot.lane.b32.xlu1 %v1821_v54, %s8802_s18 }
 0x660   : > { %1879 = vrot.lane.b32.xlu0 %v1872_v55, %s8808_s1 }
 0x661   : > { %1792 = vrot.lane.b32.xlu1 %v1785_v56, %s8806_s21 }
 0x664   : > { %1794 = vrot.lane.b32.xlu0 %v1787_v58, %s8806_s21 }
 0x665   : > { %1916 = vrot.lane.b32.xlu1 %v1785_v56, %s8803_s28 }
 0x668   : > { %1843 = vrot.lane.b32.xlu0 %v1836_v1, %s8804_s0 }
 0x669   : > { %1845 = vrot.lane.b32.xlu1 %v1838_v2, %s8804_s0 }
 0x66c   : > { %1856 = vrot.lane.b32.xlu0 %v1849_v17, %s8810_s17  ;;  %v1752_v17 = vld [vmem:[%s8748_s10 + $0x28] sm:$0xff] }
 0x66d   : > { %1918 = vrot.lane.b32.xlu1 %v1787_v58, %s8803_s28 }
 0x670   : > { %1807 = vrot.lane.b32.xlu0 %v1800_v3, %s8807_s19 }
 0x671   : > { %1894 = vrot.lane.b32.xlu1 %v1887_v5, %s8809_s20 }
 0x674   : > { %2284 = vperm.xlu0 %6148, %v1747_v6  }
 0x675   : > { %2289 = vperm.xlu1 %6149, %v1748_v7  }
 0x678   : > { %2362 = vperm.xlu0 %6148, %v1760_v8  }
 0x679   : > { %2367 = vperm.xlu1 %6149, %v1761_v9  }
 0x67c   : > { %2294 = vperm.xlu0 %6148, %v1749_v12  }
 0x67d   : > { %2299 = vperm.xlu1 %6149, %v1750_v13  }
 0x680   : > { %2372 = vperm.xlu0 %6148, %v1762_v15  }
 0x681   : > { %2377 = vperm.xlu1 %6149, %v1763_v11   ;;  %v6433_v11 = vld [vmem:[#allocation4] ss:$16 sps:$4 sm:$0xff]  }
 0x684   : > { %2304 = vperm.xlu0 %6148, %v1751_v16  }
 0x685   : > { %2309 = vperm.xlu1 %6149, %v1752_v17   ;;  %v6436_v17 = vld [vmem:[#allocation4 + $0x8] ss:$16 sps:$4 sm:$0xff]  }
 0x688   : > { %2382 = vperm.xlu0 %6148, %v1764_v18   ;;  %v6439_v18 = vld [vmem:[#allocation4 + $0x24] ss:$16 sps:$4 sm:$0xff]  }
 0x689   : > { %2387 = vperm.xlu1 %6149, %v1765_v20   ;;  %v6442_v20 = vld [vmem:[#allocation4 + $0x2c] ss:$16 sps:$4 sm:$0xff]  }
 0x68c   : > { %2314 = vperm.xlu0 %6148, %v1753_v21   ;;  %v6441_v21 = vld [vmem:[#allocation4 + $0x20] ss:$16 sps:$4 sm:$0xff]  }
 0x68d   : > { %2319 = vperm.xlu1 %6149, %v1754_v22   ;;  %v6444_v22 = vld [vmem:[#allocation4 + $0x28] ss:$16 sps:$4 sm:$0xff]  }
 0x690   : > { %2392 = vperm.xlu0 %6148, %v1766_v24   ;;  %v6445_v24 = vld [vmem:[#allocation4 + $0x44] ss:$16 sps:$4 sm:$0xff]  }
 0x691   : > { %2397 = vperm.xlu1 %6149, %v1767_v25   ;;  %v6448_v25 = vld [vmem:[#allocation4 + $0x4c] ss:$16 sps:$4 sm:$0xff]  }
 0x694   : > { %2324 = vperm.xlu0 %6148, %v1755_v26   ;;  %v6447_v26 = vld [vmem:[#allocation4 + $0x40] ss:$16 sps:$4 sm:$0xff]  }
 0x695   : > { %2329 = vperm.xlu1 %6149, %v1756_v27   ;;  %v6450_v27 = vld [vmem:[#allocation4 + $0x48] ss:$16 sps:$4 sm:$0xff]  }
 0x698   : > { %2402 = vperm.xlu0 %6148, %v1768_v28   ;;  %v6451_v28 = vld [vmem:[#allocation4 + $0x64] ss:$16 sps:$4 sm:$0xff]  }
 0x699   : > { %2407 = vperm.xlu1 %6149, %v1769_v29   ;;  %v6454_v29 = vld [vmem:[#allocation4 + $0x6c] ss:$16 sps:$4 sm:$0xff]  }
 0x69c   : > { %2334 = vperm.xlu0 %6148, %v1757_v30   ;;  %v6453_v30 = vld [vmem:[#allocation4 + $0x60] ss:$16 sps:$4 sm:$0xff]  }
 0x69d   : > { %2339 = vperm.xlu1 %6149, %v1758_v31   ;;  %v6456_v31 = vld [vmem:[#allocation4 + $0x68] ss:$16 sps:$4 sm:$0xff]  }
 0x69e   : > { %v1904_v33 = vpop.permute.xlu0 %1903 }
 0x69f   : > { %v1902_v35 = vpop.permute.xlu1 %1901 }
 0x6a0   : > { %2412 = vperm.xlu0 %6148, %v1770_v32   ;;  %v6457_v32 = vld [vmem:[#allocation4 + $0x84] ss:$16 sps:$4 sm:$0xff]  }
 0x6a1   : > { %2417 = vperm.xlu1 %6149, %v1771_v4   ;;  %v6459_v4 = vld [vmem:[#allocation4 + $0x80] ss:$16 sps:$4 sm:$0xff]  }
 0x6a2   : > { %v1823_v36 = vpop.permute.xlu0 %1822 }
 0x6a3   : > { %v1874_v38 = vpop.permute.xlu1 %1873 }
 0x6a4   : > { %2344 = vperm.xlu0 %6148, %v1759_v19   ;;  %v6463_v19 = vld [vmem:[#allocation4 + $0xa4] ss:$16 sps:$4 sm:$0xff]  }
 0x6a5   : > { %2422 = vperm.xlu1 %6149, %v1772_v37   ;;  %v1745_v37 = vld [vmem:[#allocation4 + $0xc0] sm:$0x33] }
 0x6a6   : > { %v1840_v39 = vpop.permute.xlu0 %1839 }
 0x6a7   : > { %v1789_v40 = vpop.permute.xlu1 %1788 }
 0x6a8   : > { %v1924_v63 = vsel %vm1167_vm10, %v7216_v34, %v1789_v40  ;;  %v6468_v40 = vld [vmem:[#allocation4 + $0xa8] ss:$16 sps:$4 sm:$0xff]  }
 0x6aa   : > { %v1913_v41 = vpop.permute.xlu0 %1912 }
 0x6ab   : > { %v1891_v42 = vpop.permute.xlu1 %1890 }
 0x6ae   : > { %v1859_v43 = vpop.permute.xlu0 %1858 }
 0x6af   : > { %v1825_v44 = vpop.permute.xlu1 %1824 }
 0x6b2   : > { %v1876_v45 = vpop.permute.xlu0 %1875 }
 0x6b3   : > { %v1791_v47 = vpop.permute.xlu1 %1790 }
 0x6b6   : > { %v1915_v48 = vpop.permute.xlu0 %1914 }
 0x6b7   : > { %v1842_v49 = vpop.permute.xlu1 %1841 }
 0x6ba   : > { %v1810_v50 = vpop.permute.xlu0 %1809 }
 0x6bb   : > { %v1908_v51 = vpop.permute.xlu1 %1907  ;;  %5555 = vmatprep.subr.bf16.mxu0 %v1810_v50  ;;  %v6670_v50 = vmov 0.0  }
 0x6bc   : > { %5556 = vmatpush3.bf16.msra.mxu0 %v7173_v0  ;;  %v1952_v1 = vsel %vm1167_vm10, %v1908_v51, %v1913_v41  ;;  %v5315_v41 = vcombine.high %v1745_v37, %v1745_v37 }
 0x6be   : > { %v1893_v53 = vpop.permute.xlu0 %1892 }
 0x6bf   : > { %v1906_v54 = vpop.permute.xlu1 %1905 }
 0x6c2   : > { %v1861_v46 = vpop.permute.xlu0 %1860 }
 0x6c3   : > { %v1897_v52 = vpop.permute.xlu1 %1896 }
 0x6c4   : > { %5613 = vmatprep.subr.bf16.mxu1 %v1897_v52 }
 0x6c5   : > { %5614 = vmatpush3.bf16.msra.mxu1 %v1859_v43  ;;  %v5314_v43 = vcombine.low %v1745_v37, %v1745_v37 }
 0x6c6   : > { %5615 = vmatprep.subr.bf16.mxu1 %v1902_v35  ;;  %v1863_v55 = vpop.permute.xlu0 %1862  ;;  %v6462_v35 = vld [vmem:[#allocation4 + $0x88] ss:$16 sps:$4 sm:$0xff]  }
 0x6c7   : > { %v1812_v56 = vpop.permute.xlu1 %1811  ;;  %v1944_v0 = vsel %vm703_vm3, %v1863_v55, %v1874_v38  ;;  %v1746_v38 = vld [vmem:[#allocation4 + $0xc8] sm:$0x33] }
 0x6c8   : > { %v1932_v57 = vsel %vm1217_vm6, %v1812_v56, %v1823_v36  ;;  %v6466_v36 = vld [vmem:[#allocation4 + $0xac] ss:$16 sps:$4 sm:$0xff]   ;;  %vm2573_vm6 = vcmask 252928  }
 0x6c9   : > { %5557 = vmatprep.subr.bf16.mxu0 %v1932_v57  ;;  %5616 = vmatpush3.bf16.msra.mxu1 %v1861_v46 }
 0x6ca   : > { %5558 = vmatpush3.bf16.msra.mxu0 %v7171_v62  ;;  %5617 = vmatprep.subr.bf16.mxu1 %v1904_v33  ;;  %v1827_v58 = vpop.permute.xlu0 %1826  ;;  %v6460_v33 = vld [vmem:[#allocation4 + $0x8c] ss:$16 sps:$4 sm:$0xff]  }
 0x6cb   : > { %v1806_v59 = vpop.permute.xlu1 %1805  ;;  %5559 = vmatprep.subr.bf16.mxu0 %v1825_v44  ;;  %v5316_v44 = vcombine.low %v1746_v38, %v1746_v38 }
 0x6cd   : > { %5618 = vmatpush3.bf16.msra.mxu1 %v1944_v0 }
 0x6ce   : > { %5560 = vmatpush3.bf16.msra.mxu0 %v7187_v10  ;;  %5619 = vmatprep.subr.bf16.mxu1 %v1906_v54  ;;  %v1878_v60 = vpop.permute.xlu0 %1877 }
 0x6cf   : > { %v1829_v61 = vpop.permute.xlu1 %1828  ;;  %5561 = vmatprep.subr.bf16.mxu0 %v1827_v58 }
 0x6d0   : > { %v1936_v2 = vsel %vm698_vm2, %v1829_v61, %v1840_v39  ;;  %v6465_v39 = vld [vmem:[#allocation4 + $0xa0] ss:$16 sps:$4 sm:$0xff]  }
 0x6d1   : > { %5620 = vmatpush3.bf16.msra.mxu1 %v1876_v45  ;;  %v2596_v45 = vsel %vm1026_vm13, 4294967295, %v6669_v23 }
 0x6d2   : > { %5562 = vmatpush3.bf16.msra.mxu0 %v1924_v63  ;;  %5621 = vmatprep.subr.bf16.mxu1 %v1952_v1  ;;  %v1880_v62 = vpop.permute.xlu0 %1879 }
 0x6d3   : > { %5563 = vmatprep.subr.bf16.mxu0 %v1936_v2  ;;  %v1793_v3 = vpop.permute.xlu1 %1792  ;;  %v1948_v6 = vsel %vm1026_vm13, %v1880_v62, %v1891_v42  ;;  %v5317_v42 = vcombine.high %v1746_v38, %v1746_v38  ;;  %vm6671_vm13 = vmmov 0  }
 0x6d5   : > { %5622 = vmatpush3.bf16.msra.mxu1 %v1878_v60 }
 0x6d6   : > { %5564 = vmatpush3.bf16.msra.mxu0 %v1791_v47  ;;  %5623 = vmatprep.subr.bf16.mxu1 %v1915_v48  ;;  %v1795_v10 = vpop.permute.xlu0 %1794  ;;  %v6415_v47 = vld [vmem:[%s8750_s12 + $0x8] sm:$0xff]   ;;  %v2597_v48 = vsel %vm1286_vm0, %v2596_v45, 0 }
 0x6d7   : > { %5565 = vmatprep.subr.bf16.mxu0 %v1842_v49  ;;  %v1917_v5 = vpop.permute.xlu1 %1916  ;;  %v1928_v8 = vsel %vm691_vm1, %v1795_v10, %v1806_v59  ;;  %v6473_v49 = vld [vmem:[%s8750_s12] sm:$0xff]   ;;  %v2599_v51 = vand.u32 %v6415_v47, %v2597_v48 }
 0x6d9   : > { %5624 = vmatpush3.bf16.msra.mxu1 %v1948_v6 }
 0x6da   : > { %v1844_v34 = vpop.permute.xlu0 %1843  ;;  %5566 = vmatpush3.bf16.msra.mxu0 %v1793_v3  ;;  %5625 = vmatprep.subr.bf16.mxu1 %v1917_v5 }
 0x6db   : > { %5567 = vmatprep.subr.bf16.mxu0 %v1844_v34  ;;  %v1846_v7 = vpop.permute.xlu1 %1845 }
 0x6dd   : > { %5626 = vmatpush3.bf16.msra.mxu1 %v1893_v53 }
 0x6de   : > { %v1857_v9 = vpop.permute.xlu0 %1856  ;;  %5568 = vmatpush3.bf16.msra.mxu0 %v1928_v8 }
 0x6df   : > { %v1919_v12 = vpop.permute.xlu1 %1918  ;;  %v1940_v13 = vsel %vm1263_vm15, %v1846_v7, %v1857_v9 }
 0x6e0   : > { %5569 = vmatprep.subr.bf16.mxu0 %v1940_v13  ;;  %6099 = vmatprep.subr.msk.bf16.mxu1 %vm691_vm1, %v1919_v12 }
 0x6e2   : > { %v1808_v15 = vpop.permute.xlu0 %1807 }
 0x6e3   : > { %5570 = vmatpush3.bf16.msra.mxu0 %v1808_v15  ;;  %v1895_v16 = vpop.permute.xlu1 %1894 }
 0x6e4   : > { %5628 = vmatpush3.bf16.msra.mxu1 %v1895_v16  ;;  %5996 = vmatprep.subr.bf16.mxu0 %v6670_v50 }
 0x6e6   : > { %2139 = vmatmul.mubr.bf16.vlgmr.msra.gmra.mrb[24].mxu0 %v6433_v11 }
 0x6e7   : > { %2227 = vmatmul.mubr.bf16.vlgmr.msra.gmra.mrb[16].mxu1 %v6436_v17  ;;  %2146 = vmatprep.mubr.bf16.mxu0 %v6439_v18 }
 0x6e8   : > { %5319 = vmatprep.mubr.msk.bf16.mxu1 %vm2081_vm7, %v6442_v20  ;;  %5997 = vmatpush3.bf16.msra.mxu0 %v6473_v49 }
 0x6e9   : > { %5998 = vmatprep.subr.bf16.mxu0 %v6670_v50 }
 0x6ec   : > { %5999 = vmatpush3.bf16.msra.mxu0 %v2599_v51 }
 0x6ee   : > { %2147 = vmatmul.mubr.bf16.gmra.mrb[28].mxu0 %v6441_v21 }
 0x6ef   : > { %2235 = vmatmul.mubr.bf16.gmra.mrb[20].mxu1 %v6444_v22  ;;  %2154 = vmatprep.mubr.bf16.mxu0 %v6445_v24 }
 0x6f0   : > { %5320 = vmatprep.mubr.msk.bf16.mxu1 %vm2081_vm7, %v6448_v25 }
 0x6f3   : > { %v2285_v53 = vpop.permute.xlu0 %2284 }
 0x6f4   : > { %v2290_v23 = vpop.permute.xlu1 %2289 }
 0x6f6   : > { %2155 = vmatmul.mubr.bf16.gmra.mrb[32].mxu0 %v6447_v26 }
 0x6f7   : > { %2243 = vmatmul.mubr.bf16.gmra.mrb[24].mxu1 %v6450_v27  ;;  %2162 = vmatprep.mubr.bf16.mxu0 %v6451_v28  ;;  %v2363_v54 = vpop.permute.xlu0 %2362 }
 0x6f8   : > { %5321 = vmatprep.mubr.msk.bf16.mxu1 %vm2081_vm7, %v6454_v29  ;;  %v2368_v46 = vpop.permute.xlu1 %2367 }
 0x6fb   : > { %v2295_v52 = vpop.permute.xlu0 %2294 }
 0x6fc   : > { %v2300_v55 = vpop.permute.xlu1 %2299 }
 0x6fe   : > { %2163 = vmatmul.mubr.bf16.gmra.mrb[36].mxu0 %v6453_v30 }
 0x6ff   : > { %2251 = vmatmul.mubr.bf16.gmra.mrb[28].mxu1 %v6456_v31  ;;  %2170 = vmatprep.mubr.bf16.mxu0 %v6457_v32  ;;  %v2373_v56 = vpop.permute.xlu0 %2372 }
 0x700   : > { %5322 = vmatprep.mubr.msk.bf16.mxu1 %vm2081_vm7, %v6460_v33  ;;  %v2378_v57 = vpop.permute.xlu1 %2377 }
 0x703   : > { %v7384_v58 = vpop.permute.xlu0 %2304 }
 0x704   : > { %v7386_v59 = vpop.permute.xlu1 %2309 }
 0x706   : > { %2171 = vmatmul.mubr.bf16.gmra.mrb[40].mxu0 %v6459_v4 }
 0x707   : > { %2259 = vmatmul.mubr.bf16.gmra.mrb[32].mxu1 %v6462_v35  ;;  %2178 = vmatprep.mubr.bf16.mxu0 %v6463_v19  ;;  %v7388_v0 = vpop.permute.xlu0 %2382 }
 0x708   : > { %5323 = vmatprep.mubr.msk.bf16.mxu1 %vm2081_vm7, %v6466_v36  ;;  %v7390_v60 = vpop.permute.xlu1 %2387 }
 0x70b   : > { %v7392_v12 = vpop.permute.xlu0 %2314 }
 0x70c   : > { %v7394_v11 = vpop.permute.xlu1 %2319 }
 0x70e   : > { %2179 = vmatmul.mubr.bf16.gmra.mrb[44].mxu0 %v6465_v39 }
 0x70f   : > { %2267 = vmatmul.mubr.bf16.gmra.mrb[36].mxu1 %v6468_v40  ;;  %2186 = vmatprep.mubr.bf16.mxu0 %v5315_v41  ;;  %v2393_v35 = vpop.permute.xlu0 %2392 }
 0x710   : > { %5324 = vmatprep.mubr.msk.bf16.mxu1 %vm2081_vm7, %v5317_v42  ;;  %v2398_v37 = vpop.permute.xlu1 %2397 }
 0x716   : > { %2187 = vmatmul.mubr.bf16.gmra.mrb[48].mxu0 %v5314_v43 }
 0x717   : > { %2275 = vmatmul.mubr.bf16.gmra.mrb[40].mxu1 %v5316_v44  ;;  %6000 = vmatprep.mubr.msk.bf16.mxu0 %vm6671_vm13, %v6670_v50 }
 0x7b9   : > { %v5571_v61 = vpop.f32.mrb[24].mxu0 }
 0x7ba   : > { %v5572_v63 = vpop.f32.mrb[25].mxu0  ;;  %v5629_v1 = vpop.f32.mrb[16].mxu1 }
 0x7bb   : > { %v5573_v62 = vadd.f32 %v5572_v63, %v5571_v61  ;;  %v5574_v2 = vpop.f32.mrb[26].mxu0  ;;  %v5630_v3 = vpop.f32.mrb[17].mxu1 }
 0x7bc   : > { %v5631_v10 = vadd.f32 %v5630_v3, %v5629_v1  ;;  %v5575_v5 = vpop.f32.mrb[27].mxu0  ;;  %v5632_v6 = vpop.f32.mrb[18].mxu1 }
 0x7bd   : > { %v5576_v34 = vadd.f32 %v5575_v5, %v5574_v2  ;;  %v5633_v7 = vpop.f32.mrb[19].mxu1 }
 0x7be   : > { %v2229_v8 = vadd.f32 %v5631_v10, %v5573_v62  ;;  %v5634_v9 = vadd.f32 %v5633_v7, %v5632_v6 }
 0x7c0   : > { %v2347_v13 = vmul.f32 %v2285_v53, %v2229_v8  ;;  %v2232_v15 = vadd.f32 %v5634_v9, %v5576_v34 }
 0x7c1   : > { %v5577_v16 = vpop.f32.mrb[28].mxu0 }
 0x7c2   : > { %v2348_v17 = vmul.f32 %v2290_v23, %v2232_v15  ;;  %v5578_v18 = vpop.f32.mrb[29].mxu0  ;;  %v5635_v20 = vpop.f32.mrb[20].mxu1  ;;  %v7398_v25 = vadd.f32 %v2363_v54, %v2347_v13 }
 0x7c3   : > { %v5579_v21 = vadd.f32 %v5578_v18, %v5577_v16  ;;  %v5580_v22 = vpop.f32.mrb[30].mxu0  ;;  %v5636_v24 = vpop.f32.mrb[21].mxu1 }
 0x7c4   : > { %v7400_v26 = vadd.f32 %v2368_v46, %v2348_v17  ;;  %v5637_v27 = vadd.f32 %v5636_v24, %v5635_v20  ;;  %v5581_v28 = vpop.f32.mrb[31].mxu0  ;;  %v5638_v29 = vpop.f32.mrb[22].mxu1 }
 0x7c5   : > { %v5582_v30 = vadd.f32 %v5581_v28, %v5580_v22  ;;  %v5639_v31 = vpop.f32.mrb[23].mxu1 }
 0x7c6   : > { %v2237_v32 = vadd.f32 %v5637_v27, %v5579_v21  ;;  %v5640_v33 = vadd.f32 %v5639_v31, %v5638_v29  ;;  %v6225_v4 = vpack.i.bf16 %v7400_v26, %v7398_v25 }
 0x7c8   : > { %v2349_v19 = vmul.f32 %v2295_v52, %v2237_v32  ;;  %v2240_v36 = vadd.f32 %v5640_v33, %v5582_v30  ;;  %6226 = vrot.lane.b32.xlu1 %v6225_v4, %s8807_s19  ;;  %6221 = vrot.lane.b32.xlu0 %v6225_v4, %s8806_s21 }
 0x7c9   : > { %v5583_v38 = vpop.f32.mrb[32].mxu0 }
 0x7ca   : > { %v2350_v39 = vmul.f32 %v2300_v55, %v2240_v36  ;;  %v5584_v40 = vpop.f32.mrb[33].mxu0  ;;  %v5641_v41 = vpop.f32.mrb[24].mxu1  ;;  %v7406_v45 = vadd.f32 %v2373_v56, %v2349_v19 }
 0x7cb   : > { %v5585_v42 = vadd.f32 %v5584_v40, %v5583_v38  ;;  %v5586_v43 = vpop.f32.mrb[34].mxu0  ;;  %v5642_v44 = vpop.f32.mrb[25].mxu1 }
 0x7cc   : > { %v7408_v47 = vadd.f32 %v2378_v57, %v2350_v39  ;;  %v5643_v48 = vadd.f32 %v5642_v44, %v5641_v41  ;;  %v5587_v49 = vpop.f32.mrb[35].mxu0  ;;  %v5644_v51 = vpop.f32.mrb[26].mxu1 }
 0x7cd   : > { %v5588_v53 = vadd.f32 %v5587_v49, %v5586_v43  ;;  %v5645_v23 = vpop.f32.mrb[27].mxu1  ;;  %v2325_v55 = vpop.permute.xlu0 %2324 }
 0x7ce   : > { %v2245_v54 = vadd.f32 %v5643_v48, %v5585_v42  ;;  %v5646_v46 = vadd.f32 %v5645_v23, %v5644_v51  ;;  %v6235_v52 = vpack.i.bf16 %v7408_v47, %v7406_v45  ;;  %v2330_v56 = vpop.permute.xlu1 %2329 }
 0x7d0   : > { %v2351_v61 = vmul.f32 %v7384_v58, %v2245_v54  ;;  %v2248_v63 = vadd.f32 %v5646_v46, %v5588_v53  ;;  %6236 = vrot.lane.b32.xlu1 %v6235_v52, %s8807_s19  ;;  %6231 = vrot.lane.b32.xlu0 %v6235_v52, %s8806_s21 }
 0x7d1   : > { %v5589_v57 = vpop.f32.mrb[36].mxu0  ;;  %v2403_v17 = vpop.permute.xlu0 %2402 }
 0x7d2   : > { %v2352_v1 = vmul.f32 %v7386_v59, %v2248_v63  ;;  %v5590_v62 = vpop.f32.mrb[37].mxu0  ;;  %v5647_v2 = vpop.f32.mrb[28].mxu1  ;;  %v7417_v6 = vadd.f32 %v7388_v0, %v2351_v61 }
 0x7d3   : > { %v5591_v3 = vadd.f32 %v5590_v62, %v5589_v57  ;;  %v5592_v10 = vpop.f32.mrb[38].mxu0  ;;  %v5648_v5 = vpop.f32.mrb[29].mxu1 }
 0x7d4   : > { %v7420_v34 = vadd.f32 %v7390_v60, %v2352_v1  ;;  %v5649_v58 = vadd.f32 %v5648_v5, %v5647_v2  ;;  %v5593_v7 = vpop.f32.mrb[39].mxu0  ;;  %v5650_v8 = vpop.f32.mrb[30].mxu1 }
 0x7d5   : > { %v5594_v9 = vadd.f32 %v5593_v7, %v5592_v10  ;;  %v5651_v13 = vpop.f32.mrb[31].mxu1  ;;  %v2408_v0 = vpop.permute.xlu1 %2407 }
 0x7d6   : > { %v2253_v15 = vadd.f32 %v5649_v58, %v5591_v3  ;;  %v5652_v16 = vadd.f32 %v5651_v13, %v5650_v8  ;;  %v6245_v59 = vpack.i.bf16 %v7420_v34, %v7417_v6 }
 0x7d8   : > { %v2353_v18 = vmul.f32 %v7392_v12, %v2253_v15  ;;  %v2256_v20 = vadd.f32 %v5652_v16, %v5594_v9  ;;  %6246 = vrot.lane.b32.xlu1 %v6245_v59, %s8807_s19  ;;  %6241 = vrot.lane.b32.xlu0 %v6245_v59, %s8806_s21 }
 0x7d9   : > { %v5595_v60 = vpop.f32.mrb[40].mxu0 }
 0x7da   : > { %v2354_v21 = vmul.f32 %v7394_v11, %v2256_v20  ;;  %v5596_v22 = vpop.f32.mrb[41].mxu0  ;;  %v5653_v24 = vpop.f32.mrb[32].mxu1  ;;  %v7428_v30 = vadd.f32 %v2393_v35, %v2353_v18 }
 0x7db   : > { %v5597_v27 = vadd.f32 %v5596_v22, %v5595_v60  ;;  %v5598_v28 = vpop.f32.mrb[42].mxu0  ;;  %v5654_v29 = vpop.f32.mrb[33].mxu1 }
 0x7dc   : > { %v7430_v31 = vadd.f32 %v2398_v37, %v2354_v21  ;;  %v5655_v32 = vadd.f32 %v5654_v29, %v5653_v24  ;;  %v5599_v12 = vpop.f32.mrb[43].mxu0  ;;  %v5656_v33 = vpop.f32.mrb[34].mxu1 }
 0x7dd   : > { %v5600_v4 = vadd.f32 %v5599_v12, %v5598_v28  ;;  %v5657_v19 = vpop.f32.mrb[35].mxu1  ;;  %v2335_v11 = vpop.permute.xlu0 %2334 }
 0x7de   : > { %v2261_v36 = vadd.f32 %v5655_v32, %v5597_v27  ;;  %v5658_v38 = vadd.f32 %v5657_v19, %v5656_v33  ;;  %v6255_v39 = vpack.i.bf16 %v7430_v31, %v7428_v30  ;;  %v2340_v35 = vpop.permute.xlu1 %2339 }
 0x7e0   : > { %v2355_v40 = vmul.f32 %v2325_v55, %v2261_v36  ;;  %v2264_v41 = vadd.f32 %v5658_v38, %v5600_v4  ;;  %6256 = vrot.lane.b32.xlu1 %v6255_v39, %s8807_s19  ;;  %6251 = vrot.lane.b32.xlu0 %v6255_v39, %s8806_s21 }
 0x7e1   : > { %v5601_v37 = vpop.f32.mrb[44].mxu0 }
 0x7e2   : > { %v2356_v42 = vmul.f32 %v2330_v56, %v2264_v41  ;;  %v5602_v43 = vpop.f32.mrb[45].mxu0  ;;  %v5659_v44 = vpop.f32.mrb[36].mxu1  ;;  %v7436_v53 = vadd.f32 %v2403_v17, %v2355_v40 }
 0x7e3   : > { %v5603_v48 = vadd.f32 %v5602_v43, %v5601_v37  ;;  %v5604_v49 = vpop.f32.mrb[46].mxu0  ;;  %v5660_v51 = vpop.f32.mrb[37].mxu1 }
 0x7e4   : > { %v7438_v23 = vadd.f32 %v2408_v0, %v2356_v42  ;;  %v5661_v54 = vadd.f32 %v5660_v51, %v5659_v44  ;;  %v5605_v46 = vpop.f32.mrb[47].mxu0  ;;  %v5662_v52 = vpop.f32.mrb[38].mxu1 }
 0x7e5   : > { %v5606_v55 = vadd.f32 %v5605_v46, %v5604_v49  ;;  %v5663_v61 = vpop.f32.mrb[39].mxu1  ;;  %v2413_v56 = vpop.permute.xlu0 %2412 }
 0x7e6   : > { %v2269_v63 = vadd.f32 %v5661_v54, %v5603_v48  ;;  %v5664_v57 = vadd.f32 %v5663_v61, %v5662_v52  ;;  %v6265_v1 = vpack.i.bf16 %v7438_v23, %v7436_v53  ;;  %v2418_v3 = vpop.permute.xlu1 %2417 }
 0x7e8   : > { %v2357_v62 = vmul.f32 %v2335_v11, %v2269_v63  ;;  %v2272_v2 = vadd.f32 %v5664_v57, %v5606_v55  ;;  %6266 = vrot.lane.b32.xlu1 %v6265_v1, %s8807_s19  ;;  %6261 = vrot.lane.b32.xlu0 %v6265_v1, %s8806_s21 }
 0x7e9   : > { %v5607_v10 = vpop.f32.mrb[48].mxu0  ;;  %v2345_v21 = vpop.permute.xlu0 %2344 }
 0x7ea   : > { %v2358_v5 = vmul.f32 %v2340_v35, %v2272_v2  ;;  %v5665_v58 = vpop.f32.mrb[40].mxu1  ;;  %v5608_v7 = vpop.f32.mrb[49].mxu0  ;;  %v7444_v15 = vadd.f32 %v2413_v56, %v2357_v62 }
 0x7eb   : > { %v5609_v8 = vadd.f32 %v5608_v7, %v5607_v10  ;;  %v5666_v9 = vpop.f32.mrb[41].mxu1  ;;  %v5610_v13 = vpop.f32.mrb[50].mxu0 }
 0x7ec   : > { %v7446_v16 = vadd.f32 %v2418_v3, %v2358_v5  ;;  %v5667_v59 = vadd.f32 %v5666_v9, %v5665_v58  ;;  %v5668_v17 = vpop.f32.mrb[42].mxu1  ;;  %v5611_v18 = vpop.f32.mrb[51].mxu0 }
 0x7ed   : > { %v5669_v20 = vpop.f32.mrb[43].mxu1  ;;  %v2423_v24 = vpop.permute.xlu1 %2422 }
 0x7ee   : > { %v2277_v0 = vadd.f32 %v5667_v59, %v5609_v8  ;;  %v6275_v60 = vpack.i.bf16 %v7446_v16, %v7444_v15 }
 0x7f0   : > { %v2359_v22 = vmul.f32 %v2345_v21, %v2277_v0  ;;  %6276 = vrot.lane.b32.xlu1 %v6275_v60, %s8807_s19  ;;  %6271 = vrot.lane.b32.xlu0 %v6275_v60, %s8806_s21 }
 0x7f2   : > { %v7452_v27 = vadd.f32 %v2423_v24, %v2359_v22 }
 0x7f4   : > { %2527 = vrot.lane.b32.xlu1 %v7452_v27, %s8807_s19  ;;  %2475 = vrot.lane.b32.xlu0 %v7452_v27, %s8806_s21 }
 0x83a   : > { %v6222_v28 = vpop.permute.xlu0 %6221  ;;  %v6227_v29 = vpop.permute.xlu1 %6226 }
 0x83b   : > { %v6224_v32 = vunpack.i.h.bf16 %v6222_v28  ;;  %v6223_v12 = vunpack.i.l.bf16 %v6222_v28  ;;  %v6229_v19 = vunpack.i.h.bf16 %v6227_v29  ;;  %v6228_v36 = vunpack.i.l.bf16 %v6227_v29 }
 0x83d   : > { %v2491_v33 = vmax.f32 %v7400_v26, %v6224_v32  ;;  %v2490_v4 = vmax.f32 %v7398_v25, %v6223_v12 }
 0x83f   : > { %v2543_v38 = vmax.f32 %v2491_v33, %v6229_v19  ;;  %v2542_v39 = vmax.f32 %v2490_v4, %v6228_v36 }
 0x841   : > { %v2555_v11 = vpack.c.bf16 %v2543_v38, %v2542_v39 }
 0x842   : > { %v6232_v40 = vpop.permute.xlu0 %6231  ;;  %v6237_v41 = vpop.permute.xlu1 %6236 }
 0x843   : > { %v6234_v35 = vunpack.i.h.bf16 %v6232_v40  ;;  %v6233_v37 = vunpack.i.l.bf16 %v6232_v40  ;;  %6001 = vmatmul.mubr.msk.bf16.vlgmr.msra.gmra.mrb[52].mxu0 %vm2573_vm6, %v2555_v11  ;;  %v6239_v25 = vunpack.i.h.bf16 %v6237_v41  ;;  %v6238_v43 = vunpack.i.l.bf16 %v6237_v41 }
 0x844   : > { %6004 = vmatprep.mubr.msk.bf16.mxu0 %vm6671_vm13, %v6670_v50 }
 0x845   : > { %v2493_v42 = vmax.f32 %v7408_v47, %v6234_v35  ;;  %v2492_v26 = vmax.f32 %v7406_v45, %v6233_v37 }
 0x847   : > { %v2545_v44 = vmax.f32 %v2493_v42, %v6239_v25  ;;  %v2544_v48 = vmax.f32 %v2492_v26, %v6238_v43 }
 0x849   : > { %v2556_v49 = vpack.c.bf16 %v2545_v44, %v2544_v48 }
 0x84a   : > { %v6242_v51 = vpop.permute.xlu0 %6241  ;;  %v6247_v54 = vpop.permute.xlu1 %6246 }
 0x84b   : > { %v6244_v46 = vunpack.i.h.bf16 %v6242_v51  ;;  %v6243_v52 = vunpack.i.l.bf16 %v6242_v51  ;;  %6005 = vmatmul.mubr.msk.bf16.gmra.mrb[56].mxu0 %vm2573_vm6, %v2556_v49  ;;  %v6249_v61 = vunpack.i.h.bf16 %v6247_v54  ;;  %v6248_v45 = vunpack.i.l.bf16 %v6247_v54 }
 0x84c   : > { %6008 = vmatprep.mubr.msk.bf16.mxu0 %vm6671_vm13, %v6670_v50 }
 0x84d   : > { %v2495_v55 = vmax.f32 %v7420_v34, %v6244_v46  ;;  %v2494_v47 = vmax.f32 %v7417_v6, %v6243_v52 }
 0x84f   : > { %v2547_v63 = vmax.f32 %v2495_v55, %v6249_v61  ;;  %v2546_v57 = vmax.f32 %v2494_v47, %v6248_v45 }
 0x851   : > { %v2557_v1 = vpack.c.bf16 %v2547_v63, %v2546_v57 }
 0x852   : > { %v6252_v56 = vpop.permute.xlu0 %6251  ;;  %v6257_v62 = vpop.permute.xlu1 %6256 }
 0x853   : > { %v6254_v2 = vunpack.i.h.bf16 %v6252_v56  ;;  %v6253_v3 = vunpack.i.l.bf16 %v6252_v56  ;;  %6009 = vmatmul.mubr.msk.bf16.gmra.mrb[60].mxu0 %vm2573_vm6, %v2557_v1  ;;  %v6259_v5 = vunpack.i.h.bf16 %v6257_v62  ;;  %v6258_v6 = vunpack.i.l.bf16 %v6257_v62 }
 0x854   : > { %6012 = vmatprep.mubr.msk.bf16.mxu0 %vm6671_vm13, %v6670_v50 }
 0x855   : > { %v2497_v10 = vmax.f32 %v7430_v31, %v6254_v2  ;;  %v2496_v34 = vmax.f32 %v7428_v30, %v6253_v3 }
 0x857   : > { %v2549_v58 = vmax.f32 %v2497_v10, %v6259_v5  ;;  %v2548_v7 = vmax.f32 %v2496_v34, %v6258_v6 }
 0x859   : > { %v2558_v8 = vpack.c.bf16 %v2549_v58, %v2548_v7 }
 0x85a   : > { %v6262_v9 = vpop.permute.xlu0 %6261  ;;  %v6267_v13 = vpop.permute.xlu1 %6266 }
 0x85b   : > { %v6264_v59 = vunpack.i.h.bf16 %v6262_v9  ;;  %v6263_v17 = vunpack.i.l.bf16 %v6262_v9  ;;  %6013 = vmatmul.mubr.msk.bf16.gmra.mrb[64].mxu0 %vm2573_vm6, %v2558_v8  ;;  %v6269_v20 = vunpack.i.h.bf16 %v6267_v13  ;;  %v6268_v30 = vunpack.i.l.bf16 %v6267_v13 }
 0x85c   : > { %6016 = vmatprep.mubr.msk.bf16.mxu0 %vm6671_vm13, %v6670_v50 }
 0x85d   : > { %v2499_v18 = vmax.f32 %v7438_v23, %v6264_v59  ;;  %v2498_v31 = vmax.f32 %v7436_v53, %v6263_v17 }
 0x85f   : > { %v2551_v0 = vmax.f32 %v2499_v18, %v6269_v20  ;;  %v2550_v60 = vmax.f32 %v2498_v31, %v6268_v30 }
 0x861   : > { %v2559_v21 = vpack.c.bf16 %v2551_v0, %v2550_v60 }
 0x862   : > { %v6272_v22 = vpop.permute.xlu0 %6271  ;;  %v6277_v24 = vpop.permute.xlu1 %6276 }
 0x863   : > { %v6274_v28 = vunpack.i.h.bf16 %v6272_v22  ;;  %v6273_v29 = vunpack.i.l.bf16 %v6272_v22  ;;  %6017 = vmatmul.mubr.msk.bf16.gmra.mrb[68].mxu0 %vm2573_vm6, %v2559_v21  ;;  %v6279_v12 = vunpack.i.h.bf16 %v6277_v24  ;;  %v6278_v53 = vunpack.i.l.bf16 %v6277_v24 }
 0x864   : > { %6020 = vmatprep.mubr.msk.bf16.mxu0 %vm6671_vm13, %v6670_v50 }
 0x865   : > { %v2501_v32 = vmax.f32 %v7446_v16, %v6274_v28  ;;  %v2500_v23 = vmax.f32 %v7444_v15, %v6273_v29 }
 0x866   : > { %v2476_v33 = vpop.permute.xlu0 %2475  ;;  %v2528_v39 = vpop.permute.xlu1 %2527 }
 0x867   : > { %v2553_v4 = vmax.f32 %v2501_v32, %v6279_v12  ;;  %v2552_v19 = vmax.f32 %v2500_v23, %v6278_v53  ;;  %v2502_v36 = vmax.f32 %v7452_v27, %v2476_v33 }
 0x869   : > { %v2560_v38 = vpack.c.bf16 %v2553_v4, %v2552_v19  ;;  %v2554_v11 = vmax.f32 %v2502_v36, %v2528_v39 }
 0x86b   : > { %6021 = vmatmul.mubr.msk.bf16.gmra.mrb[72].mxu0 %vm2573_vm6, %v2560_v38  ;;  %v2561_v40 = vpack.c.bf16 %v2554_v11, %v2554_v11 }
 0x86c   : > { %6024 = vmatprep.mubr.msk.bf16.mxu0 %vm6671_vm13, %v6670_v50 }
 0x873   : > { %6025 = vmatmul.mubr.msk.bf16.gmra.mrb[76].mxu0 %vm2573_vm6, %v2561_v40 }
 0x916   : > { %v2635_v16 = vpop.f32.mrb[52].mxu0 }
 0x917   : > { %v2702_v15 = vmin.f32 %v2635_v16, 0.0  ;;  %v6002_v41 = vpop.f32.mrb[53].mxu0  ;;  %vm2689_vm10 = vcmp.gt.f32.partialorder %v2635_v16, 0.0 }
 0x918   : > { %v2638_v35 = vpop.f32.mrb[54].mxu0 }
 0x919   : > { %v2715_v37 = vmul.f32 1.442695, %v2702_v15  ;;  %v2703_v42 = vmin.f32 %v2638_v35, 0.0  ;;  %v6003_v26 = vpop.f32.mrb[55].mxu0  ;;  %vm2690_vm15 = vcmp.gt.f32.partialorder %v2638_v35, 0.0 }
 0x91b   : > { %6504 = vpow2.f32 %v2715_v37  ;;  %v2717_v27 = vmul.f32 1.442695, %v2703_v42 }
 0x91d   : > { %6506 = vpow2.f32 %v2717_v27 }
 0x91e   : > { %v2643_v25 = vpop.f32.mrb[56].mxu0 }
 0x91f   : > { %v2704_v43 = vmin.f32 %v2643_v25, 0.0  ;;  %v6006_v44 = vpop.f32.mrb[57].mxu0  ;;  %vm2691_vm0 = vcmp.gt.f32.partialorder %v2643_v25, 0.0 }
 0x920   : > { %v2646_v48 = vpop.f32.mrb[58].mxu0 }
 0x921   : > { %v2719_v49 = vmul.f32 1.442695, %v2704_v43  ;;  %v2705_v51 = vmin.f32 %v2646_v48, 0.0  ;;  %v6007_v54 = vpop.f32.mrb[59].mxu0  ;;  %vm2692_vm9 = vcmp.gt.f32.partialorder %v2646_v48, 0.0 }
 0x923   : > { %6508 = vpow2.f32 %v2719_v49  ;;  %v2721_v46 = vmul.f32 1.442695, %v2705_v51 }
 0x925   : > { %v6505_v52 = vpop.eup %6504  ;;  %6510 = vpow2.f32 %v2721_v46 }
 0x926   : > { %v5334_v55 = vadd.f32 -1.0, %v6505_v52  ;;  %v2651_v47 = vpop.f32.mrb[60].mxu0 }
 0x927   : > { %v6507_v61 = vpop.eup %6506  ;;  %v2706_v45 = vmin.f32 %v2651_v47, 0.0  ;;  %v6010_v63 = vpop.f32.mrb[61].mxu0  ;;  %vm2693_vm14 = vcmp.gt.f32.partialorder %v2651_v47, 0.0 }
 0x928   : > { %v5335_v57 = vadd.f32 -1.0, %v6507_v61  ;;  %v2654_v1 = vpop.f32.mrb[62].mxu0  ;;  %v2754_v3 = vsel %vm2689_vm10, %v2635_v16, %v5334_v55 }
 0x929   : > { %v2723_v56 = vmul.f32 1.442695, %v2706_v45  ;;  %v2707_v62 = vmin.f32 %v2654_v1, 0.0  ;;  %v6011_v2 = vpop.f32.mrb[63].mxu0  ;;  %vm2694_vm4 = vcmp.gt.f32.partialorder %v2654_v1, 0.0 }
 0x92a   : > { %v2755_v10 = vsel %vm2690_vm15, %v2638_v35, %v5335_v57 }
 0x92b   : > { %v7490_v34 = vpack.c.bf16 %v2755_v10, %v2754_v3  ;;  %6512 = vpow2.f32 %v2723_v56  ;;  %v2725_v5 = vmul.f32 1.442695, %v2707_v62 }
 0x92d   : > { %v6509_v6 = vpop.eup %6508  ;;  %6514 = vpow2.f32 %v2725_v5 }
 0x92e   : > { %v5336_v58 = vadd.f32 -1.0, %v6509_v6  ;;  %v2659_v7 = vpop.f32.mrb[64].mxu0 }
 0x92f   : > { %v6511_v8 = vpop.eup %6510  ;;  %v2708_v9 = vmin.f32 %v2659_v7, 0.0  ;;  %v6014_v13 = vpop.f32.mrb[65].mxu0  ;;  %vm2695_vm5 = vcmp.gt.f32.partialorder %v2659_v7, 0.0 }
 0x930   : > { %v5337_v59 = vadd.f32 -1.0, %v6511_v8  ;;  %v2662_v17 = vpop.f32.mrb[66].mxu0  ;;  %v2756_v30 = vsel %vm2691_vm0, %v2643_v25, %v5336_v58 }
 0x931   : > { %v2727_v18 = vmul.f32 1.442695, %v2708_v9  ;;  %v2709_v31 = vmin.f32 %v2662_v17, 0.0  ;;  %v6015_v20 = vpop.f32.mrb[67].mxu0  ;;  %vm2696_vm11 = vcmp.gt.f32.partialorder %v2662_v17, 0.0 }
 0x932   : > { %v2757_v0 = vsel %vm2692_vm9, %v2646_v48, %v5337_v59 }
 0x933   : > { %v7492_v60 = vpack.c.bf16 %v2757_v0, %v2756_v30  ;;  %6516 = vpow2.f32 %v2727_v18  ;;  %v2729_v21 = vmul.f32 1.442695, %v2709_v31 }
 0x935   : > { %v6513_v22 = vpop.eup %6512  ;;  %6518 = vpow2.f32 %v2729_v21  ;;  %v2933_v16 = vrot.slane %v7492_v60, 6 }
 0x936   : > { %v5338_v24 = vadd.f32 -1.0, %v6513_v22  ;;  %v2667_v28 = vpop.f32.mrb[68].mxu0 }
 0x937   : > { %v6515_v29 = vpop.eup %6514  ;;  %v2710_v32 = vmin.f32 %v2667_v28, 0.0  ;;  %v6018_v23 = vpop.f32.mrb[69].mxu0  ;;  %vm2697_vm8 = vcmp.gt.f32.partialorder %v2667_v28, 0.0 }
 0x938   : > { %v5339_v12 = vadd.f32 -1.0, %v6515_v29  ;;  %v2670_v53 = vpop.f32.mrb[70].mxu0  ;;  %v2758_v36 = vsel %vm2693_vm14, %v2651_v47, %v5338_v24  ;;  %v7532_v29 = vrot.slane %v7490_v34, 4 }
 0x939   : > { %v2731_v33 = vmul.f32 1.442695, %v2710_v32  ;;  %v2711_v4 = vmin.f32 %v2670_v53, 0.0  ;;  %v6019_v19 = vpop.f32.mrb[71].mxu0  ;;  %vm2698_vm12 = vcmp.gt.f32.partialorder %v2670_v53, 0.0 }
 0x93a   : > { %v2759_v38 = vsel %vm2694_vm4, %v2654_v1, %v5339_v12  ;;  %v2965_v12 = vrot.slane %v7492_v60, 4 }
 0x93b   : > { %v7494_v39 = vpack.c.bf16 %v2759_v38, %v2758_v36  ;;  %6520 = vpow2.f32 %v2731_v33  ;;  %v2733_v11 = vmul.f32 1.442695, %v2711_v4  ;;  %v7557_v36 = vld [vmem:[%s8751_s13] sm:$0xff] }
 0x93c   : > { %v7551_v4 = vsel %vm698_vm2, %v7532_v29, %v2965_v12  ;;  %v7562_v38 = vld [vmem:[%s8751_s13 + $0x20] sm:$0xff] }
 0x93d   : > { %v6517_v40 = vpop.eup %6516  ;;  %6522 = vpow2.f32 %v2733_v11  ;;  %v2935_v15 = vrot.slane %v7494_v39, 6  ;;  %v2967_v19 = vrot.slane %v7494_v39, 4  ;;  %v5347_v11 = vcombine.low %v7557_v36, %v7562_v38 }
 0x93e   : > { %v5340_v41 = vadd.f32 -1.0, %v6517_v40  ;;  %v2675_v35 = vpop.f32.mrb[72].mxu0  ;;  %v5348_v40 = vcombine.high %v7557_v36, %v7562_v38  ;;  %v2794_v36 = vld [vmem:[%s8751_s13 + $0xa0] sm:$0xff] }
 0x93f   : > { %v6519_v37 = vpop.eup %6518  ;;  %v2712_v42 = vmin.f32 %v2675_v35, 0.0  ;;  %v6022_v26 = vpop.f32.mrb[73].mxu0  ;;  %v7501_v27 = vsel %vm691_vm1, %v2933_v16, %v2935_v15  ;;  %vm2699_vm7 = vcmp.gt.f32.partialorder %v2675_v35, 0.0 }
 0x940   : > { %v5341_v25 = vadd.f32 -1.0, %v6519_v37  ;;  %2949 = vrot.lane.b32.xlu0 %v7501_v27, %s8806_s21  ;;  %v2678_v43 = vpop.f32.mrb[74].mxu0  ;;  %v2760_v51 = vsel %vm2695_vm5, %v2659_v7, %v5340_v41  ;;  %3744 = vmatprep.mubr.bf16.mxu0 %v5348_v40  ;;  %v7573_v41 = vsel %vm698_vm2, %v2965_v12, %v2967_v19  ;;  %v2902_v12 = vld [vmem:[%s8753_s15 + $0x18] sm:$0xff]  ;;  %v2903_v40 = vld [vmem:[%s8753_s15 + $0x20] sm:$0xff] }
 0x941   : > { %v2735_v44 = vmul.f32 1.442695, %v2712_v42  ;;  %v2713_v48 = vmin.f32 %v2678_v43, 0.0  ;;  %v6023_v49 = vpop.f32.mrb[75].mxu0  ;;  %vm2700_vm6 = vcmp.gt.f32.partialorder %v2678_v43, 0.0 }
 0x942   : > { %v2761_v54 = vsel %vm2696_vm11, %v2662_v17, %v5341_v25 }
 0x943   : > { %v7505_v46 = vpack.c.bf16 %v2761_v54, %v2760_v51  ;;  %6524 = vpow2.f32 %v2735_v44  ;;  %v2737_v52 = vmul.f32 1.442695, %v2713_v48  ;;  %v2997_v51 = vrot.slane %v7492_v60, 2 }
 0x944   : > { %v2996_v54 = vrot.slane %v7490_v34, 2 }
 0x945   : > { %v6521_v55 = vpop.eup %6520  ;;  %6526 = vpow2.f32 %v2737_v52  ;;  %v2937_v47 = vrot.slane %v7505_v46, 6  ;;  %v2969_v33 = vrot.slane %v7505_v46, 4 }
 0x946   : > { %v5342_v61 = vadd.f32 -1.0, %v6521_v55  ;;  %v2683_v45 = vpop.f32.mrb[76].mxu0  ;;  %v2998_v52 = vsel %vm703_vm3, %v2996_v54, %v2997_v51  ;;  %v2999_v55 = vrot.slane %v7494_v39, 2 }
 0x947   : > { %v6523_v63 = vpop.eup %6522  ;;  %v2714_v57 = vmin.f32 %v2683_v45, 0.0  ;;  %v6026_v1 = vpop.f32.mrb[77].mxu0  ;;  %v7509_v56 = vsel %vm691_vm1, %v2935_v15, %v2937_v47  ;;  %vm2701_vm10 = vcmp.gt.f32.partialorder %v2683_v45, 0.0  ;;  %v2970_v15 = vsel %vm698_vm2, %v2967_v19, %v2969_v33 }
 0x948   : > { %v5343_v62 = vadd.f32 -1.0, %v6523_v63  ;;  %2951 = vrot.lane.b32.xlu1 %v7509_v56, %s8806_s21  ;;  %v2686_v2 = vpop.f32.mrb[78].mxu0  ;;  %v2762_v5 = vsel %vm2697_vm8, %v2667_v28, %v5342_v61  ;;  %v3001_v61 = vrot.slane %v7505_v46, 2  ;;  %v7620_v63 = vld [vmem:[%s8751_s13 + $0x120] sm:$0xff] }
 0x949   : > { %v2739_v3 = vmul.f32 1.442695, %v2714_v57  ;;  %v6027_v10 = vpop.f32.mrb[79].mxu0 }
 0x94a   : > { %v2763_v6 = vsel %vm2698_vm12, %v2670_v53, %v5343_v62  ;;  %v7544_v53 = vrot.slane %v7490_v34, 6  ;;  %v3002_v62 = vsel %vm703_vm3, %v2999_v55, %v3001_v61 }
 0x94b   : > { %v7513_v58 = vpack.c.bf16 %v2763_v6, %v2762_v5  ;;  %6528 = vpow2.f32 %v2739_v3 }
 0x94c   : > { %v7584_v37 = vsel %vm691_vm1, %v7544_v53, %v2933_v16 }
 0x94d   : > { %v6525_v7 = vpop.eup %6524  ;;  %v2939_v8 = vrot.slane %v7513_v58, 6  ;;  %v2971_v26 = vrot.slane %v7513_v58, 4  ;;  %v3003_v2 = vrot.slane %v7513_v58, 2 }
 0x94e   : > { %v5344_v9 = vadd.f32 -1.0, %v6525_v7 }
 0x94f   : > { %v6527_v13 = vpop.eup %6526  ;;  %v7517_v59 = vsel %vm691_vm1, %v2937_v47, %v2939_v8  ;;  %v3000_v47 = vsel %vm703_vm3, %v2997_v51, %v2999_v55  ;;  %v3004_v3 = vsel %vm703_vm3, %v3001_v61, %v3003_v2  ;;  %v2905_v51 = vld [vmem:[%s8753_s15 + $0x30] sm:$0xff]  ;;  %v2802_v61 = vld [vmem:[%s8751_s13 + $0xe0] sm:$0xff] }
 0x950   : > { %v5345_v17 = vadd.f32 -1.0, %v6527_v13  ;;  %2953 = vrot.lane.b32.xlu0 %v7517_v59, %s8806_s21  ;;  %v2764_v18 = vsel %vm2699_vm7, %v2675_v35, %v5344_v9  ;;  %v2875_v9 = vld [vmem:[%s8752_s14 + $0x8] sm:$0xff] }
 0x952   : > { %v2765_v31 = vsel %vm2700_vm6, %v2678_v43, %v5345_v17  ;;  %v2972_v43 = vsel %vm698_vm2, %v2969_v33, %v2971_v26  ;;  %v2876_v17 = vld [vmem:[%s8752_s14 + $0x10] sm:$0xff] }
 0x953   : > { %v7521_v20 = vpack.c.bf16 %v2765_v31, %v2764_v18  ;;  %v2900_v18 = vld [vmem:[%s8753_s15 + $0x8] sm:$0xff] }
 0x955   : > { %v6529_v30 = vpop.eup %6528  ;;  %v2941_v0 = vrot.slane %v7521_v20, 6  ;;  %v3005_v42 = vrot.slane %v7521_v20, 2  ;;  %v2973_v44 = vrot.slane %v7521_v20, 4 }
 0x956   : > { %v5346_v21 = vadd.f32 -1.0, %v6529_v30 }
 0x957   : > { %v7525_v22 = vsel %vm691_vm1, %v2939_v8, %v2941_v0  ;;  %v2974_v48 = vsel %vm698_vm2, %v2971_v26, %v2973_v44  ;;  %v3006_v10 = vsel %vm703_vm3, %v3003_v2, %v3005_v42  ;;  %v2830_v2 = vld [vmem:[%s8751_s13 + $0x1c0] sm:$0xff] }
 0x958   : > { %v2766_v24 = vsel %vm2701_vm10, %v2683_v45, %v5346_v21  ;;  %2955 = vrot.lane.b32.xlu1 %v7525_v22, %s8806_s21  ;;  %v7615_v45 = vld [vmem:[%s8751_s13 + $0x100] sm:$0xff]  ;;  %v2877_v21 = vld [vmem:[%s8752_s14 + $0x18] sm:$0xff] }
 0x959   : > { %v7529_v28 = vpack.c.bf16 %v2766_v24, %v2766_v24  ;;  %v5379_v57 = vcombine.low %v7615_v45, %v7620_v63  ;;  %v5380_v1 = vcombine.high %v7615_v45, %v7620_v63  ;;  %v2786_v24 = vld [vmem:[%s8751_s13 + $0x60] sm:$0xff] }
 0x95a   : > { %v2882_v63 = vld [vmem:[%s8752_s14 + $0x40] sm:$0xff] }
 0x95b   : > { %v2943_v32 = vrot.slane %v7529_v28, 6  ;;  %v3007_v35 = vrot.slane %v7529_v28, 2  ;;  %v2975_v16 = vrot.slane %v7529_v28, 4  ;;  %3776 = vmatprep.mubr.bf16.mxu1 %v5380_v1  ;;  %v2906_v1 = vld [vmem:[%s8753_s15 + $0x38] sm:$0xff] }
 0x95c   : > { %2977 = vrot.lane.b32.xlu1 %v7532_v29, %s8807_s19 }
 0x95d   : > { %v7538_v23 = vsel %vm691_vm1, %v2941_v0, %v2943_v32  ;;  %v3008_v25 = vsel %vm703_vm3, %v3005_v42, %v3007_v35  ;;  %v2976_v49 = vsel %vm698_vm2, %v2973_v44, %v2975_v16  ;;  %v2901_v0 = vld [vmem:[%s8753_s15 + $0x10] sm:$0xff]  ;;  %v2814_v32 = vld [vmem:[%s8751_s13 + $0x140] sm:$0xff]  ;;  %v2904_v42 = vld [vmem:[%s8753_s15 + $0x28] sm:$0xff] }
 0x95e   : > { %2957 = vrot.lane.b32.xlu0 %v7538_v23, %s8806_s21  ;;  %v2790_v35 = vld [vmem:[%s8751_s13 + $0x80] sm:$0xff] }
 0x95f   : > { %v5364_v26 = vcombine.high %v2790_v35, %v2794_v36 }
 0x960   : > { %2945 = vrot.lane.b32.xlu1 %v7544_v53, %s8806_s21 }
 0x962   : > { %2979 = vrot.lane.b32.xlu0 %v7551_v4, %s8807_s19 }
 0x964   : > { %2983 = vrot.lane.b32.xlu1 %v2970_v15, %s8807_s19 }
 0x966   : > { %2981 = vrot.lane.b32.xlu0 %v7573_v41, %s8807_s19 }
 0x968   : > { %3029 = vrot.lane.b32.xlu1 %v7490_v34, %s8804_s0 }
 0x96a   : > { %2947 = vrot.lane.b32.xlu0 %v7584_v37, %s8806_s21 }
 0x96c   : > { %3021 = vrot.lane.b32.xlu1 %v3008_v25, %s8802_s18 }
 0x96e   : > { %2985 = vrot.lane.b32.xlu0 %v2972_v43, %s8807_s19 }
 0x970   : > { %3031 = vrot.lane.b32.xlu1 %v7492_v60, %s8804_s0 }
 0x972   : > { %2987 = vrot.lane.b32.xlu0 %v2974_v48, %s8807_s19 }
 0x974   : > { %2989 = vrot.lane.b32.xlu1 %v2976_v49, %s8807_s19 }
 0x976   : > { %3009 = vrot.lane.b32.xlu0 %v2996_v54, %s8802_s18 }
 0x978   : > { %3011 = vrot.lane.b32.xlu1 %v2998_v52, %s8802_s18 }
 0x97a   : > { %3033 = vrot.lane.b32.xlu0 %v7494_v39, %s8804_s0 }
 0x97c   : > { %3013 = vrot.lane.b32.xlu1 %v3000_v47, %s8802_s18 }
 0x97e   : > { %3035 = vrot.lane.b32.xlu0 %v7505_v46, %s8804_s0 }
 0x980   : > { %3015 = vrot.lane.b32.xlu1 %v3002_v62, %s8802_s18 }
 0x982   : > { %3037 = vrot.lane.b32.xlu0 %v7513_v58, %s8804_s0 }
 0x984   : > { %3017 = vrot.lane.b32.xlu1 %v3004_v3, %s8802_s18 }
 0x986   : > { %3039 = vrot.lane.b32.xlu0 %v7521_v20, %s8804_s0 }
 0x988   : > { %3049 = vrot.lane.b32.xlu1 %v7544_v53, %s8810_s17 }
 0x98a   : > { %3041 = vrot.lane.b32.xlu0 %v7529_v28, %s8804_s0 }
 0x98c   : > { %3097 = vrot.lane.b32.xlu1 %v3006_v10, %s8809_s20 }
 0x98e   : > { %3019 = vrot.lane.b32.xlu0 %v3006_v10, %s8802_s18 }
 0x990   : > { %3107 = vrot.lane.b32.xlu1 %v7490_v34, %s8801_s24 }
 0x992   : > { %3109 = vrot.lane.b32.xlu0 %v7492_v60, %s8801_s24 }
 0x994   : > { %3111 = vrot.lane.b32.xlu1 %v7494_v39, %s8801_s24 }
 0x996   : > { %3113 = vrot.lane.b32.xlu0 %v7505_v46, %s8801_s24 }
 0x998   : > { %3074 = vrot.lane.b32.xlu1 %v2970_v15, %s8808_s1  ;;  %v2879_v15 = vld [vmem:[%s8752_s14 + $0x28] sm:$0xff] }
 0x99a   : > { %3051 = vrot.lane.b32.xlu0 %v7584_v37, %s8810_s17 }
 0x99c   : > { %3115 = vrot.lane.b32.xlu1 %v7513_v58, %s8801_s24 }
 0x99e   : > { %3099 = vrot.lane.b32.xlu0 %v3008_v25, %s8809_s20  ;;  %v2822_v25 = vld [vmem:[%s8751_s13 + $0x180] sm:$0xff] }
 0x9a0   : > { %3053 = vrot.lane.b32.xlu1 %v7501_v27, %s8810_s17 }
 0x9a2   : > { %3076 = vrot.lane.b32.xlu0 %v2972_v43, %s8808_s1  ;;  %v2826_v43 = vld [vmem:[%s8751_s13 + $0x1a0] sm:$0xff] }
 0x9a4   : > { %3078 = vrot.lane.b32.xlu1 %v2974_v48, %s8808_s1 }
 0x9a6   : > { %3117 = vrot.lane.b32.xlu0 %v7521_v20, %s8801_s24 }
 0x9a8   : > { %3119 = vrot.lane.b32.xlu1 %v7529_v28, %s8801_s24 }
 0x9aa   : > { %3055 = vrot.lane.b32.xlu0 %v7509_v56, %s8810_s17 }
 0x9ac   : > { %3057 = vrot.lane.b32.xlu1 %v7517_v59, %s8810_s17 }
 0x9ae   : > { %3127 = vrot.lane.b32.xlu0 %v7544_v53, %s8803_s28 }
 0x9b0   : > { %3089 = vrot.lane.b32.xlu1 %v2998_v52, %s8809_s20  ;;  %v2881_v52 = vld [vmem:[%s8752_s14 + $0x38] sm:$0xff] }
 0x9b2   : > { %v2950_v5 = vpop.permute.xlu0 %2949  ;;  %3087 = vrot.lane.b32.xlu0 %v2996_v54, %s8809_s20  ;;  %v5396_v54 = vcombine.high %v2822_v25, %v2826_v43 }
 0x9b3   : > { %5680 = vmatprep.subr.bf16.mxu0 %v2950_v5  ;;  %6082 = vmatprep.subr.bf16.mxu1 %v2950_v5  ;;  %v5395_v5 = vcombine.low %v2822_v25, %v2826_v43  ;;  %v2791_v25 = vld [vmem:[%s8751_s13 + $0x88] sm:$0xff] }
 0x9b4   : > { %5681 = vmatpush3.bf16.msra.mxu0 %v7490_v34  ;;  %6090 = vmatpush3.bf16.msra.mxu1 %v7490_v34  ;;  %v2795_v43 = vld [vmem:[%s8751_s13 + $0xa8] sm:$0xff] }
 0x9b5   : > { %3131 = vrot.lane.b32.xlu1 %v7501_v27, %s8803_s28  ;;  %v2874_v27 = vld [vmem:[%s8752_s14] sm:$0xff] }
 0x9b6   : > { %3129 = vrot.lane.b32.xlu0 %v7584_v37, %s8803_s28 }
 0x9b9   : > { %3080 = vrot.lane.b32.xlu1 %v2976_v49, %s8808_s1 }
 0x9ba   : > { %v2952_v6 = vpop.permute.xlu1 %2951  ;;  %3059 = vrot.lane.b32.xlu0 %v7525_v22, %s8810_s17 }
 0x9bb   : > { %5682 = vmatprep.subr.bf16.mxu0 %v2952_v6  ;;  %6083 = vmatprep.subr.bf16.mxu1 %v2952_v6 }
 0x9bc   : > { %5683 = vmatpush3.bf16.msra.mxu0 %v7492_v60  ;;  %6091 = vmatpush3.bf16.msra.mxu1 %v7492_v60 }
 0x9bd   : > { %3068 = vrot.lane.b32.xlu1 %v7532_v29, %s8808_s1  ;;  %v2878_v29 = vld [vmem:[%s8752_s14 + $0x20] sm:$0xff] }
 0x9be   : > { %3091 = vrot.lane.b32.xlu0 %v3000_v47, %s8809_s20  ;;  %v2798_v47 = vld [vmem:[%s8751_s13 + $0xc0] sm:$0xff] }
 0x9c1   : > { %3133 = vrot.lane.b32.xlu1 %v7509_v56, %s8803_s28 }
 0x9c2   : > { %v2954_v34 = vpop.permute.xlu0 %2953  ;;  %3061 = vrot.lane.b32.xlu0 %v7538_v23, %s8810_s17 }
 0x9c3   : > { %5684 = vmatprep.subr.bf16.mxu0 %v2954_v34  ;;  %6084 = vmatprep.subr.bf16.mxu1 %v2954_v34  ;;  %v2907_v34 = vld [vmem:[%s8753_s15 + $0x40] sm:$0xff] }
 0x9c4   : > { %5685 = vmatpush3.bf16.msra.mxu0 %v7494_v39  ;;  %6092 = vmatpush3.bf16.msra.mxu1 %v7494_v39 }
 0x9c5   : > { %3070 = vrot.lane.b32.xlu1 %v7551_v4, %s8808_s1 }
 0x9c6   : > { %3093 = vrot.lane.b32.xlu0 %v3002_v62, %s8809_s20  ;;  %v5372_v62 = vcombine.high %v2798_v47, %v2802_v61 }
 0x9c9   : > { %3095 = vrot.lane.b32.xlu1 %v3004_v3, %s8809_s20  ;;  %v2834_v3 = vld [vmem:[%s8751_s13 + $0x1e0] sm:$0xff] }
 0x9ca   : > { %v2956_v60 = vpop.permute.xlu1 %2955  ;;  %3135 = vrot.lane.b32.xlu0 %v7517_v59, %s8803_s28 }
 0x9cb   : > { %5686 = vmatprep.subr.bf16.mxu0 %v2956_v60  ;;  %6085 = vmatprep.subr.bf16.mxu1 %v2956_v60  ;;  %v5404_v60 = vcombine.high %v2830_v2, %v2834_v3 }
 0x9cc   : > { %5687 = vmatpush3.bf16.msra.mxu0 %v7505_v46  ;;  %6093 = vmatpush3.bf16.msra.mxu1 %v7505_v46  ;;  %v2899_v46 = vld [vmem:[%s8753_s15] sm:$0xff] }
 0x9cd   : > { %3137 = vrot.lane.b32.xlu1 %v7525_v22, %s8803_s28  ;;  %v2782_v22 = vld [vmem:[%s8751_s13 + $0x40] sm:$0xff] }
 0x9ce   : > { %v2978_v39 = vpop.permute.xlu1 %2977  ;;  %3072 = vrot.lane.b32.xlu0 %v7573_v41, %s8808_s1  ;;  %v5356_v53 = vcombine.high %v2782_v22, %v2786_v24  ;;  %v5355_v37 = vcombine.low %v2782_v22, %v2786_v24 }
 0x9d0   : > { %v2958_v56 = vpop.permute.xlu0 %2957 }
 0x9d1   : > { %4258 = vperm.xlu1 %6149, %v2874_v27   ;;  %v3152_v7 = vsel %vm698_vm2, %v2958_v56, %v2978_v39  ;;  %v2883_v39 = vld [vmem:[%s8752_s14 + $0x48] sm:$0xff] }
 0x9d2   : > { %v2946_v8 = vpop.permute.xlu1 %2945  ;;  %3139 = vrot.lane.b32.xlu0 %v7538_v23, %s8803_s28  ;;  %5688 = vmatprep.subr.bf16.mxu0 %v3152_v7  ;;  %v2818_v23 = vld [vmem:[%s8751_s13 + $0x160] sm:$0xff]  ;;  %v2775_v56 = vld [vmem:[%s8751_s13 + $0x8] sm:$0xff]  ;;  %s8811_s28 = sld [smem:[#allocation16_spill]] }
 0x9d3   : > { %6086 = vmatprep.subr.bf16.mxu1 %v3152_v7  ;;  %5689 = vmatpush3.bf16.msra.mxu0 %v7513_v58  ;;  %v5388_v4 = vcombine.high %v2814_v32, %v2818_v23  ;;  %v5387_v16 = vcombine.low %v2814_v32, %v2818_v23  ;;  %v2779_v7 = vld [vmem:[%s8751_s13 + $0x28] sm:$0xff]  ;;  %v2910_v32 = vld [vmem:[%s8753_s15 + $0x58] sm:$0xff] }
 0x9d4   : > { %6094 = vmatpush3.bf16.msra.mxu1 %v7513_v58  ;;  %v2980_v13 = vpop.permute.xlu0 %2979  ;;  %v3148_v58 = vsel %vm691_vm1, %v7529_v28, %v2946_v8  ;;  %v2783_v23 = vld [vmem:[%s8751_s13 + $0x48] sm:$0xff] }
 0x9d5   : > { %4408 = vperm.xlu1 %6149, %v2899_v46   ;;  %5690 = vmatprep.subr.bf16.mxu0 %v2980_v13  ;;  %v2884_v46 = vld [vmem:[%s8752_s14 + $0x50] sm:$0xff] }
 0x9d6   : > { %6087 = vmatprep.subr.bf16.mxu1 %v2980_v13  ;;  %v2984_v59 = vpop.permute.xlu1 %2983  ;;  %4263 = vperm.xlu0 %6148, %v2875_v9   ;;  %v5371_v9 = vcombine.low %v2798_v47, %v2802_v61  ;;  %v2838_v13 = vld [vmem:[%s8751_s13 + $0x200] sm:$0xff]  ;;  %v2889_v47 = vld [vmem:[%s8752_s14 + $0x78] sm:$0xff] }
 0x9d7   : > { %5691 = vmatpush3.bf16.msra.mxu0 %v7521_v20 }
 0x9d8   : > { %6095 = vmatpush3.bf16.msra.mxu1 %v7521_v20  ;;  %v2982_v31 = vpop.permute.xlu0 %2981 }
 0x9d9   : > { %4268 = vperm.xlu1 %6149, %v2876_v17   ;;  %5692 = vmatprep.subr.bf16.mxu0 %v2982_v31  ;;  %v2908_v17 = vld [vmem:[%s8753_s15 + $0x48] sm:$0xff] }
 0x9da   : > { %6088 = vmatprep.subr.bf16.mxu1 %v2982_v31  ;;  %v3030_v30 = vpop.permute.xlu1 %3029  ;;  %4413 = vperm.xlu0 %6148, %v2900_v18   ;;  %v5350_v18 = vcombine.high %v2775_v56, %v2779_v7 }
 0x9db   : > { %5693 = vmatpush3.bf16.msra.mxu0 %v3148_v58 }
 0x9dc   : > { %6096 = vmatpush3.bf16.msra.mxu1 %v3148_v58  ;;  %5694 = vmatprep.subr.bf16.mxu0 %v2984_v59  ;;  %v2948_v20 = vpop.permute.xlu0 %2947  ;;  %v5403_v58 = vcombine.low %v2830_v2, %v2834_v3  ;;  %v5365_v2 = vcombine.low %v2791_v25, %v2795_v43 }
 0x9dd   : > { %4418 = vperm.xlu1 %6149, %v2901_v0   ;;  %6089 = vmatprep.subr.bf16.mxu1 %v2984_v59  ;;  %v2842_v59 = vld [vmem:[%s8751_s13 + $0x220] sm:$0xff] }
 0x9de   : > { %v3022_v28 = vpop.permute.xlu1 %3021  ;;  %4273 = vperm.xlu0 %6148, %v2877_v21   ;;  %v2909_v21 = vld [vmem:[%s8753_s15 + $0x50] sm:$0xff] }
 0x9df   : > { %5695 = vmatpush3.bf16.msra.mxu0 %v2948_v20 }
 0x9e0   : > { %6097 = vmatpush3.bf16.msra.mxu1 %v2948_v20  ;;  %5774 = vmatprep.subr.bf16.mxu0 %v3022_v28  ;;  %v2986_v33 = vpop.permute.xlu0 %2985  ;;  %v2885_v20 = vld [vmem:[%s8752_s14 + $0x58] sm:$0xff] }
 0x9e1   : > { %4278 = vperm.xlu1 %6149, %v2878_v29   ;;  %v2886_v29 = vld [vmem:[%s8752_s14 + $0x60] sm:$0xff] }
 0x9e2   : > { %v3032_v19 = vpop.permute.xlu1 %3031  ;;  %4423 = vperm.xlu0 %6148, %v2902_v12   ;;  %3745 = vmatmul.mubr.bf16.vlgmr.msra.gmra.mrb[80].mxu0 %v5347_v11  ;;  %v2880_v11 = vld [vmem:[%s8752_s14 + $0x30] sm:$0xff]  ;;  %v2787_v12 = vld [vmem:[%s8751_s13 + $0x68] sm:$0xff] }
 0x9e3   : > { %5775 = vmatpush3.bf16.msra.mxu0 %v2986_v33  ;;  %3752 = vmatprep.mubr.bf16.mxu0 %v5356_v53  ;;  %v5349_v33 = vcombine.low %v2775_v56, %v2779_v7 }
 0x9e4   : > { %5776 = vmatprep.subr.bf16.mxu0 %v3030_v30  ;;  %v2988_v41 = vpop.permute.xlu0 %2987  ;;  %3777 = vmatmul.mubr.bf16.vlgmr.msra.gmra.mrb[44].mxu1 %v5379_v57  ;;  %v5363_v57 = vcombine.low %v2790_v35, %v2794_v36  ;;  %v5412_v30 = vcombine.high %v2838_v13, %v2842_v59  ;;  %v5358_v35 = vcombine.high %v2783_v23, %v2787_v12  ;;  %v2887_v36 = vld [vmem:[%s8752_s14 + $0x68] sm:$0xff] }
 0x9e5   : > { %4428 = vperm.xlu1 %6149, %v2903_v40   ;;  %3784 = vmatprep.mubr.bf16.mxu1 %v5388_v4  ;;  %v5411_v4 = vcombine.low %v2838_v13, %v2842_v59  ;;  %v2850_v40 = vld [vmem:[%s8751_s13 + $0x260] sm:$0xff]  ;;  %v2916_v13 = vld [vmem:[%s8753_s15 + $0x88] sm:$0xff] }
 0x9e6   : > { %v2990_v38 = vpop.permute.xlu1 %2989  ;;  %4283 = vperm.xlu0 %6148, %v2879_v15  }
 0x9e7   : > { %5777 = vmatpush3.bf16.msra.mxu0 %v2988_v41  ;;  %v2911_v41 = vld [vmem:[%s8753_s15 + $0x60] sm:$0xff] }
 0x9e8   : > { %5778 = vmatprep.subr.bf16.mxu0 %v3032_v19  ;;  %v3010_v44 = vpop.permute.xlu0 %3009  ;;  %v2846_v19 = vld [vmem:[%s8751_s13 + $0x240] sm:$0xff] }
 0x9e9   : > { %4288 = vperm.xlu1 %6149, %v2880_v11   ;;  %v3156_v48 = vsel %vm703_vm3, %v2990_v38, %v3010_v44  ;;  %v5420_v38 = vcombine.high %v2846_v19, %v2850_v40 }
 0x9ea   : > { %v3012_v49 = vpop.permute.xlu1 %3011  ;;  %4433 = vperm.xlu0 %6148, %v2904_v42   ;;  %3753 = vmatmul.mubr.bf16.gmra.mrb[84].mxu0 %v5355_v37  ;;  %v2888_v42 = vld [vmem:[%s8752_s14 + $0x70] sm:$0xff] }
 0x9eb   : > { %5779 = vmatpush3.bf16.msra.mxu0 %v3156_v48  ;;  %3760 = vmatprep.mubr.bf16.mxu0 %v5364_v26  ;;  %v2912_v26 = vld [vmem:[%s8753_s15 + $0x68] sm:$0xff]  ;;  %v5419_v48 = vcombine.low %v2846_v19, %v2850_v40 }
 0x9ec   : > { %v3034_v55 = vpop.permute.xlu0 %3033  ;;  %3785 = vmatmul.mubr.bf16.gmra.mrb[48].mxu1 %v5387_v16  ;;  %v5357_v16 = vcombine.low %v2783_v23, %v2787_v12  ;;  %v2819_v12 = vld [vmem:[%s8751_s13 + $0x168] sm:$0xff] }
 0x9ed   : > { %4438 = vperm.xlu1 %6149, %v2905_v51   ;;  %5780 = vmatprep.subr.bf16.mxu0 %v3034_v55  ;;  %v2858_v51 = vld [vmem:[%s8751_s13 + $0x2a0] sm:$0xff]  ;;  %v5366_v55 = vcombine.high %v2791_v25, %v2795_v43  ;;  %v2920_v25 = vld [vmem:[%s8753_s15 + $0xa8] sm:$0xff] }
 0x9ee   : > { %v3014_v45 = vpop.permute.xlu1 %3013  ;;  %4293 = vperm.xlu0 %6148, %v2881_v52   ;;  %3792 = vmatprep.mubr.bf16.mxu1 %v5396_v54  ;;  %v2913_v52 = vld [vmem:[%s8753_s15 + $0x70] sm:$0xff] }
 0x9ef   : > { %5781 = vmatpush3.bf16.msra.mxu0 %v3012_v49  ;;  %v2854_v49 = vld [vmem:[%s8751_s13 + $0x280] sm:$0xff] }
 0x9f0   : > { %v3036_v10 = vpop.permute.xlu0 %3035  ;;  %v5428_v61 = vcombine.high %v2854_v49, %v2858_v51  ;;  %v5427_v3 = vcombine.low %v2854_v49, %v2858_v51 }
 0x9f1   : > { %4298 = vperm.xlu1 %6149, %v2882_v63   ;;  %5782 = vmatprep.subr.bf16.mxu0 %v3036_v10  ;;  %v2799_v10 = vld [vmem:[%s8751_s13 + $0xc8] sm:$0xff] }
 0x9f2   : > { %v3016_v6 = vpop.permute.xlu1 %3015  ;;  %4443 = vperm.xlu0 %6148, %v2906_v1   ;;  %3761 = vmatmul.mubr.bf16.gmra.mrb[88].mxu0 %v5363_v57  ;;  %v2890_v57 = vld [vmem:[%s8752_s14 + $0x80] sm:$0xff]  ;;  %v2914_v1 = vld [vmem:[%s8753_s15 + $0x78] sm:$0xff] }
 0x9f3   : > { %5783 = vmatpush3.bf16.msra.mxu0 %v3014_v45  ;;  %3768 = vmatprep.mubr.bf16.mxu0 %v5372_v62 }
 0x9f4   : > { %v3038_v27 = vpop.permute.xlu0 %3037  ;;  %3793 = vmatmul.mubr.bf16.gmra.mrb[52].mxu1 %v5395_v5  ;;  %v2803_v5 = vld [vmem:[%s8751_s13 + $0xe8] sm:$0xff] }
 0x9f5   : > { %4448 = vperm.xlu1 %6149, %v2907_v34   ;;  %5784 = vmatprep.subr.bf16.mxu0 %v3038_v27  ;;  %v2915_v34 = vld [vmem:[%s8753_s15 + $0x80] sm:$0xff]  ;;  %v2891_v27 = vld [vmem:[%s8752_s14 + $0x88] sm:$0xff]  ;;  %v5374_v7 = vcombine.high %v2799_v10, %v2803_v5 }
 0x9f6   : > { %v3018_v8 = vpop.permute.xlu1 %3017  ;;  %4303 = vperm.xlu0 %6148, %v2883_v39   ;;  %3800 = vmatprep.mubr.bf16.mxu1 %v5404_v60  ;;  %v2862_v60 = vld [vmem:[%s8751_s13 + $0x2c0] sm:$0xff] }
 0x9f7   : > { %5785 = vmatpush3.bf16.msra.mxu0 %v3016_v6  ;;  %v2866_v39 = vld [vmem:[%s8751_s13 + $0x2e0] sm:$0xff] }
 0x9f8   : > { %v3040_v31 = vpop.permute.xlu0 %3039 }
 0x9f9   : > { %4308 = vperm.xlu1 %6149, %v2884_v46   ;;  %5786 = vmatprep.subr.bf16.mxu0 %v3040_v31  ;;  %v2811_v31 = vld [vmem:[%s8751_s13 + $0x128] sm:$0xff] }
 0x9fa   : > { %v3050_v0 = vpop.permute.xlu1 %3049  ;;  %4453 = vperm.xlu0 %6148, %v2908_v17   ;;  %3769 = vmatmul.mubr.bf16.gmra.mrb[92].mxu0 %v5371_v9  ;;  %v2892_v9 = vld [vmem:[%s8752_s14 + $0x90] sm:$0xff]  ;;  %v5373_v17 = vcombine.low %v2799_v10, %v2803_v5 }
 0x9fb   : > { %5787 = vmatpush3.bf16.msra.mxu0 %v3018_v8  ;;  %3880 = vmatprep.mubr.bf16.mxu0 %v5350_v18  ;;  %v5436_v8 = vcombine.high %v2862_v60, %v2866_v39  ;;  %v2807_v18 = vld [vmem:[%s8751_s13 + $0x108] sm:$0xff] }
 0x9fc   : > { %v3042_v22 = vpop.permute.xlu0 %3041  ;;  %3801 = vmatmul.mubr.bf16.gmra.mrb[56].mxu1 %v5403_v58  ;;  %v5435_v58 = vcombine.low %v2862_v60, %v2866_v39  ;;  %v5381_v40 = vcombine.low %v2807_v18, %v2811_v31 }
 0x9fd   : > { %4458 = vperm.xlu1 %6149, %v2909_v21   ;;  %v3160_v24 = vsel %vm691_vm1, %v3042_v22, %v3050_v0  ;;  %3808 = vmatprep.mubr.bf16.mxu1 %v5412_v30  ;;  %v2870_v30 = vld [vmem:[%s8751_s13 + $0x300] sm:$0xff]  ;;  %v2917_v21 = vld [vmem:[%s8753_s15 + $0x90] sm:$0xff]  ;;  %v5382_v22 = vcombine.high %v2807_v18, %v2811_v31 }
 0x9fe   : > { %v3098_v28 = vpop.permute.xlu1 %3097  ;;  %4313 = vperm.xlu0 %6148, %v2885_v20   ;;  %5788 = vmatprep.subr.bf16.mxu0 %v3160_v24  ;;  %v2893_v20 = vld [vmem:[%s8752_s14 + $0x98] sm:$0xff] }
 0xa00   : > { %v3020_v53 = vpop.permute.xlu0 %3019 }
 0xa01   : > { %4318 = vperm.xlu1 %6149, %v2886_v29   ;;  %5789 = vmatpush3.bf16.msra.mxu0 %v3020_v53  ;;  %v2894_v29 = vld [vmem:[%s8752_s14 + $0xa0] sm:$0xff]  ;;  %v7964_v53 = vld [vmem:[%s8751_s13 + $0x10] sm:$0xff] }
 0xa02   : > { %v7859_v15 = vpop.permute.xlu1 %3107  ;;  %4463 = vperm.xlu0 %6148, %v2910_v32   ;;  %4120 = vmatprep.subr.bf16.mxu0 %v6665_v14  ;;  %v2815_v32 = vld [vmem:[%s8751_s13 + $0x148] sm:$0xff] }
 0xa04   : > { %3881 = vmatmul.mubr.bf16.vlgmr.msra.gmra.mrb[96].mxu0 %v5349_v33  ;;  %v7868_v11 = vpop.permute.xlu0 %3109  ;;  %3809 = vmatmul.mubr.bf16.gmra.mrb[60].mxu1 %v5411_v4  ;;  %v7969_v33 = vld [vmem:[%s8751_s13 + $0x30] sm:$0xff]  ;;  %v2918_v4 = vld [vmem:[%s8753_s15 + $0x98] sm:$0xff] }
 0xa05   : > { %4468 = vperm.xlu1 %6149, %v2911_v41   ;;  %4121 = vmatpush1.bf16.msra.mxu0 %v3098_v28  ;;  %v5444_v28 = vcombine.high %v2870_v30, %v2870_v30  ;;  %v5390_v41 = vcombine.high %v2815_v32, %v2819_v12 }
 0xa06   : > { %v7870_v37 = vpop.permute.xlu1 %3111  ;;  %4323 = vperm.xlu0 %6148, %v2887_v36   ;;  %3888 = vmatprep.mubr.bf16.mxu0 %v5358_v35  ;;  %v5352_v35 = vcombine.high %v7964_v53, %v7969_v33 }
 0xa07   : > { %4122 = vmatprep.subr.bf16.mxu0 %v6665_v14  ;;  %3816 = vmatprep.mubr.bf16.mxu1 %v5420_v38  ;;  %v2895_v38 = vld [vmem:[%s8752_s14 + $0xa8] sm:$0xff] }
 0xa08   : > { %v7885_v44 = vpop.permute.xlu0 %3113 }
 0xa09   : > { %4328 = vperm.xlu1 %6149, %v2888_v42   ;;  %v2827_v42 = vld [vmem:[%s8751_s13 + $0x1a8] sm:$0xff] }
 0xa0a   : > { %v3075_v54 = vpop.permute.xlu1 %3074  ;;  %4473 = vperm.xlu0 %6148, %v2912_v26  }
 0xa0b   : > { %5868 = vmatprep.subr.bf16.mxu1 %v3075_v54 }
 0xa0c   : > { %3889 = vmatmul.mubr.bf16.gmra.mrb[100].mxu0 %v5357_v16  ;;  %v3052_v45 = vpop.permute.xlu0 %3051  ;;  %3817 = vmatmul.mubr.bf16.gmra.mrb[64].mxu1 %v5419_v48 }
 0xa0d   : > { %4478 = vperm.xlu1 %6149, %v2913_v52   ;;  %5869 = vmatpush3.bf16.msra.mxu1 %v3052_v45  ;;  %v2831_v52 = vld [vmem:[%s8751_s13 + $0x1c8] sm:$0xff] }
 0xa0e   : > { %v7899_v63 = vpop.permute.xlu1 %3115  ;;  %4333 = vperm.xlu0 %6148, %v2889_v47   ;;  %3896 = vmatprep.mubr.bf16.mxu0 %v5366_v55  ;;  %v2835_v55 = vld [vmem:[%s8751_s13 + $0x1e8] sm:$0xff] }
 0xa0f   : > { %3824 = vmatprep.mubr.bf16.mxu1 %v5428_v61 }
 0xa10   : > { %v3100_v62 = vpop.permute.xlu0 %3099 }
 0xa11   : > { %4338 = vperm.xlu1 %6149, %v2890_v57   ;;  %4123 = vmatpush1.bf16.msra.mxu0 %v3100_v62 }
 0xa12   : > { %v3054_v6 = vpop.permute.xlu1 %3053  ;;  %4483 = vperm.xlu0 %6148, %v2914_v1   ;;  %4124 = vmatprep.subr.bf16.mxu0 %v6665_v14 }
 0xa14   : > { %3897 = vmatmul.mubr.bf16.gmra.mrb[104].mxu0 %v5365_v2  ;;  %v3077_v56 = vpop.permute.xlu0 %3076  ;;  %3825 = vmatmul.mubr.bf16.gmra.mrb[68].mxu1 %v5427_v3  ;;  %v2839_v2 = vld [vmem:[%s8751_s13 + $0x208] sm:$0xff] }
 0xa15   : > { %4488 = vperm.xlu1 %6149, %v2915_v34   ;;  %5870 = vmatprep.subr.bf16.mxu1 %v3077_v56  ;;  %v2843_v3 = vld [vmem:[%s8751_s13 + $0x228] sm:$0xff] }
 0xa16   : > { %4125 = vmatpush1.bf16.msra.mxu0 %v7859_v15  ;;  %v3079_v46 = vpop.permute.xlu1 %3078  ;;  %4343 = vperm.xlu0 %6148, %v2891_v27   ;;  %v5443_v15 = vcombine.low %v2870_v30, %v2870_v30  ;;  %v5414_v34 = vcombine.high %v2839_v2, %v2843_v3  ;;  %v2847_v27 = vld [vmem:[%s8751_s13 + $0x248] sm:$0xff] }
 0xa17   : > { %5871 = vmatpush3.bf16.msra.mxu1 %v3054_v6  ;;  %4126 = vmatprep.subr.bf16.mxu0 %v6665_v14  ;;  %v5405_v6 = vcombine.low %v2831_v52, %v2835_v55  ;;  %v2851_v56 = vld [vmem:[%s8751_s13 + $0x268] sm:$0xff] }
 0xa18   : > { %5872 = vmatprep.subr.bf16.mxu1 %v3079_v46  ;;  %v3118_v59 = vpop.permute.xlu0 %3117  ;;  %3904 = vmatprep.mubr.bf16.mxu0 %v5374_v7  ;;  %v2784_v7 = vld [vmem:[%s8751_s13 + $0x50] sm:$0xff]  ;;  %v2855_v30 = vld [vmem:[%s8751_s13 + $0x288] sm:$0xff] }
 0xa19   : > { %4348 = vperm.xlu1 %6149, %v2892_v9   ;;  %3832 = vmatprep.mubr.bf16.mxu1 %v5436_v8  ;;  %v2788_v8 = vld [vmem:[%s8751_s13 + $0x70] sm:$0xff]  ;;  %v5351_v9 = vcombine.low %v7964_v53, %v7969_v33 }
 0xa1a   : > { %4127 = vmatpush1.bf16.msra.mxu0 %v7868_v11  ;;  %v3120_v0 = vpop.permute.xlu1 %3119  ;;  %4493 = vperm.xlu0 %6148, %v2916_v13   ;;  %v5413_v13 = vcombine.low %v2839_v2, %v2843_v3  ;;  %v5360_v18 = vcombine.high %v2784_v7, %v2788_v8 }
 0xa1b   : > { %4128 = vmatprep.subr.bf16.mxu0 %v6665_v14 }
 0xa1c   : > { %3905 = vmatmul.mubr.bf16.gmra.mrb[108].mxu0 %v5373_v17  ;;  %v3056_v24 = vpop.permute.xlu0 %3055  ;;  %3833 = vmatmul.mubr.bf16.gmra.mrb[72].mxu1 %v5435_v58  ;;  %v5422_v17 = vcombine.high %v2847_v27, %v2851_v56 }
 0xa1d   : > { %4498 = vperm.xlu1 %6149, %v2917_v21   ;;  %5873 = vmatpush3.bf16.msra.mxu1 %v3056_v24  ;;  %v2796_v21 = vld [vmem:[%s8751_s13 + $0xb0] sm:$0xff] }
 0xa1e   : > { %4129 = vmatpush1.bf16.msra.mxu0 %v7870_v37  ;;  %v3058_v23 = vpop.permute.xlu1 %3057  ;;  %4353 = vperm.xlu0 %6148, %v2893_v20   ;;  %v2823_v37 = vld [vmem:[%s8751_s13 + $0x188] sm:$0xff]  ;;  %v5421_v20 = vcombine.low %v2847_v27, %v2851_v56 }
 0xa1f   : > { %4130 = vmatprep.subr.bf16.mxu0 %v6665_v14  ;;  %3912 = vmatprep.mubr.bf16.mxu0 %v5382_v22  ;;  %v5398_v16 = vcombine.high %v2823_v37, %v2827_v42  ;;  %v5397_v45 = vcombine.low %v2823_v37, %v2827_v42  ;;  %v5359_v22 = vcombine.low %v2784_v7, %v2788_v8  ;;  %v2816_v37 = vld [vmem:[%s8751_s13 + $0x150] sm:$0xff] }
 0xa20   : > { %v3128_v19 = vpop.permute.xlu0 %3127  ;;  %3840 = vmatprep.mubr.bf16.mxu1 %v5444_v28  ;;  %v2820_v42 = vld [vmem:[%s8751_s13 + $0x170] sm:$0xff] }
 0xa21   : > { %4358 = vperm.xlu1 %6149, %v2894_v29   ;;  %v3172_v54 = vsel %vm691_vm1, %v3120_v0, %v3128_v19  ;;  %v2859_v0 = vld [vmem:[%s8751_s13 + $0x2a8] sm:$0xff] }
 0xa22   : > { %4131 = vmatpush1.bf16.msra.mxu0 %v7885_v44  ;;  %v3090_v36 = vpop.permute.xlu1 %3089  ;;  %4503 = vperm.xlu0 %6148, %v2918_v4   ;;  %v5389_v44 = vcombine.low %v2815_v32, %v2819_v12  ;;  %v5430_v24 = vcombine.high %v2855_v30, %v2859_v0  ;;  %v2863_v29 = vld [vmem:[%s8751_s13 + $0x2c8] sm:$0xff]  ;;  %v2804_v12 = vld [vmem:[%s8751_s13 + $0xf0] sm:$0xff]  ;;  %v5429_v53 = vcombine.low %v2855_v30, %v2859_v0 }
 0xa23   : > { %4132 = vmatprep.subr.bf16.mxu0 %v6665_v14  ;;  %v2867_v32 = vld [vmem:[%s8751_s13 + $0x2e8] sm:$0xff]  ;;  %v2856_v30 = vld [vmem:[%s8751_s13 + $0x290] sm:$0xff] }
 0xa24   : > { %3913 = vmatmul.mubr.bf16.gmra.mrb[112].mxu0 %v5381_v40  ;;  %v3088_v11 = vpop.permute.xlu0 %3087  ;;  %3841 = vmatmul.mubr.bf16.gmra.mrb[76].mxu1 %v5443_v15  ;;  %v5438_v4 = vcombine.high %v2863_v29, %v2867_v32  ;;  %v2871_v40 = vld [vmem:[%s8751_s13 + $0x308] sm:$0xff]  ;;  %v2808_v15 = vld [vmem:[%s8751_s13 + $0x110] sm:$0xff] }
 0xa25   : > { %3920 = vmatprep.mubr.bf16.mxu0 %v5390_v41  ;;  %4016 = vmatprep.mubr.bf16.mxu1 %v5352_v35  ;;  %v2812_v41 = vld [vmem:[%s8751_s13 + $0x130] sm:$0xff]  ;;  %v5437_v35 = vcombine.low %v2863_v29, %v2867_v32 }
 0xa26   : > { %4133 = vmatpush1.bf16.msra.mxu0 %v7899_v63  ;;  %4363 = vperm.xlu0 %6148, %v2895_v38   ;;  %v5406_v63 = vcombine.high %v2831_v52, %v2835_v55  ;;  %v5446_v38 = vcombine.high %v2871_v40, %v2871_v40  ;;  %v2789_v52 = vld [vmem:[%s8751_s13 + $0x78] sm:$0xff]  ;;  %v2860_v0 = vld [vmem:[%s8751_s13 + $0x2b0] sm:$0xff] }
 0xa27   : > { %v3132_v26 = vpop.permute.xlu1 %3131  ;;  %4134 = vmatprep.subr.bf16.mxu0 %v6665_v14  ;;  %v2864_v29 = vld [vmem:[%s8751_s13 + $0x2d0] sm:$0xff] }
 0xa28   : > { %v3130_v43 = vpop.permute.xlu0 %3129  ;;  %v2868_v32 = vld [vmem:[%s8751_s13 + $0x2f0] sm:$0xff] }
 0xa2a   : > { %4135 = vmatpush1.bf16.msra.mxu0 %v3118_v59  ;;  %4513 = vperm.xlu0 %6148, %v2920_v25   ;;  %v2781_v25 = vld [vmem:[%s8751_s13 + $0x38] sm:$0xff] }
 0xa2b   : > { %v3081_v48 = vpop.permute.xlu1 %3080  ;;  %4136 = vmatprep.subr.bf16.mxu0 %v6665_v14 }
 0xa2c   : > { %3921 = vmatmul.mubr.bf16.gmra.mrb[116].mxu0 %v5389_v44  ;;  %v3168_v49 = vsel %vm703_vm3, %v3081_v48, %v3088_v11  ;;  %v3060_v51 = vpop.permute.xlu0 %3059  ;;  %v5384_v11 = vcombine.high %v2808_v15, %v2812_v41  ;;  %v5383_v44 = vcombine.low %v2808_v15, %v2812_v41  ;;  %v2833_v15 = vld [vmem:[%s8751_s13 + $0x1d8] sm:$0xff]  ;;  %vm5123_vm3 = vcmask 15360  }
 0xa2d   : > { %5874 = vmatprep.subr.bf16.mxu1 %v3168_v49  ;;  %3928 = vmatprep.mubr.bf16.mxu0 %v5398_v16  ;;  %v5392_v16 = vcombine.high %v2816_v37, %v2820_v42  ;;  %v2824_v49 = vld [vmem:[%s8751_s13 + $0x190] sm:$0xff]  ;;  %v2837_v41 = vld [vmem:[%s8751_s13 + $0x1f8] sm:$0xff] }
 0xa2e   : > { %5875 = vmatpush3.bf16.msra.mxu1 %v3058_v23  ;;  %4137 = vmatpush1.bf16.msra.mxu0 %v3172_v54  ;;  %v2800_v23 = vld [vmem:[%s8751_s13 + $0xd0] sm:$0xff]  ;;  %v2785_v54 = vld [vmem:[%s8751_s13 + $0x58] sm:$0xff] }
 0xa2f   : > { %v3069_v47 = vpop.permute.xlu1 %3068  ;;  %5876 = vmatprep.subr.bf16.mxu1 %v3090_v36  ;;  %4138 = vmatprep.subr.bf16.mxu0 %v6665_v14  ;;  %v5376_v19 = vcombine.high %v2800_v23, %v2804_v12  ;;  %v5375_v36 = vcombine.low %v2800_v23, %v2804_v12  ;;  %v5361_v3 = vcombine.low %v2785_v54, %v2789_v52  ;;  %v2825_v23 = vld [vmem:[%s8751_s13 + $0x198] sm:$0xff] }
 0xa30   : > { %v3092_v61 = vpop.permute.xlu0 %3091  ;;  %v2829_v12 = vld [vmem:[%s8751_s13 + $0x1b8] sm:$0xff] }
 0xa32   : > { %5877 = vmatpush3.bf16.msra.mxu1 %v3060_v51  ;;  %4139 = vmatpush1.bf16.msra.mxu0 %v3130_v43  ;;  %v5445_v43 = vcombine.low %v2871_v40, %v2871_v40  ;;  %v2828_v51 = vld [vmem:[%s8751_s13 + $0x1b0] sm:$0xff] }
 0xa33   : > { %v3134_v57 = vpop.permute.xlu1 %3133  ;;  %5878 = vmatprep.subr.bf16.mxu1 %v3092_v61  ;;  %4140 = vmatprep.subr.bf16.mxu0 %v6665_v14  ;;  %v5400_v61 = vcombine.high %v2824_v49, %v2828_v51  ;;  %v5399_v2 = vcombine.low %v2824_v49, %v2828_v51  ;;  %v2872_v40 = vld [vmem:[%s8751_s13 + $0x310] sm:$0xff]  ;;  %v2857_v51 = vld [vmem:[%s8751_s13 + $0x298] sm:$0xff] }
 0xa34   : > { %3929 = vmatmul.mubr.bf16.gmra.mrb[120].mxu0 %v5397_v45  ;;  %v3062_v1 = vpop.permute.xlu0 %3061  ;;  %v5362_v45 = vcombine.high %v2785_v54, %v2789_v52  ;;  %v2861_v54 = vld [vmem:[%s8751_s13 + $0x2b8] sm:$0xff] }
 0xa35   : > { %v3164_v62 = vsel %vm698_vm2, %v3062_v1, %v3069_v47  ;;  %3936 = vmatprep.mubr.bf16.mxu0 %v5406_v63  ;;  %v5391_v47 = vcombine.low %v2816_v37, %v2820_v42  ;;  %v2832_v63 = vld [vmem:[%s8751_s13 + $0x1d0] sm:$0xff]  ;;  %v2793_v1 = vld [vmem:[%s8751_s13 + $0x98] sm:$0xff] }
 0xa36   : > { %4141 = vmatpush1.bf16.msra.mxu0 %v3132_v26  ;;  %5879 = vmatpush3.bf16.msra.mxu1 %v3164_v62  ;;  %v2777_v26 = vld [vmem:[%s8751_s13 + $0x18] sm:$0xff] }
 0xa37   : > { %v3071_v10 = vpop.permute.xlu1 %3070  ;;  %4142 = vmatprep.subr.bf16.mxu0 %v6665_v14  ;;  %v5354_v48 = vcombine.high %v2777_v26, %v2781_v25  ;;  %v5353_v55 = vcombine.low %v2777_v26, %v2781_v25  ;;  %v2797_v62 = vld [vmem:[%s8751_s13 + $0xb8] sm:$0xff]  ;;  %v5447_v26 = vcombine.low %v2872_v40, %v2872_v40  ;;  %v5409_v25 = vcombine.low %v2833_v15, %v2837_v41 }
 0xa38   : > { %v3094_v5 = vpop.permute.xlu0 %3093  ;;  %v5369_v56 = vcombine.low %v2793_v1, %v2797_v62  ;;  %v2841_v37 = vld [vmem:[%s8751_s13 + $0x218] sm:$0xff] }
 0xa39   : > { %5880 = vmatprep.subr.bf16.mxu1 %v3094_v5  ;;  %v5370_v5 = vcombine.high %v2793_v1, %v2797_v62  ;;  %v2845_v42 = vld [vmem:[%s8751_s13 + $0x238] sm:$0xff] }
 0xa3a   : > { %4143 = vmatpush1.bf16.msra.mxu0 %v3134_v57  ;;  %5881 = vmatpush3.bf16.msra.mxu1 %v3071_v10  ;;  %v2836_v57 = vld [vmem:[%s8751_s13 + $0x1f0] sm:$0xff] }
 0xa3b   : > { %v3096_v60 = vpop.permute.xlu1 %3095  ;;  %4144 = vmatprep.subr.bf16.mxu0 %v6665_v14  ;;  %v5408_v10 = vcombine.high %v2832_v63, %v2836_v57  ;;  %v5407_v27 = vcombine.low %v2832_v63, %v2836_v57  ;;  %v2869_v63 = vld [vmem:[%s8751_s13 + $0x2f8] sm:$0xff] }
 0xa3c   : > { %5882 = vmatprep.subr.bf16.mxu1 %v3096_v60  ;;  %3937 = vmatmul.mubr.bf16.gmra.mrb[124].mxu0 %v5405_v6  ;;  %v3136_v39 = vpop.permute.xlu0 %3135  ;;  %v2840_v6 = vld [vmem:[%s8751_s13 + $0x210] sm:$0xff]  ;;  %v2801_v60 = vld [vmem:[%s8751_s13 + $0xd8] sm:$0xff] }
 0xa3d   : > { %3944 = vmatprep.mubr.bf16.mxu0 %v5414_v34  ;;  %v2844_v34 = vld [vmem:[%s8751_s13 + $0x230] sm:$0xff] }
 0xa3e   : > { %4145 = vmatpush1.bf16.msra.mxu0 %v3136_v39  ;;  %v2805_v39 = vld [vmem:[%s8751_s13 + $0xf8] sm:$0xff]  ;;  %v5416_v7 = vcombine.high %v2840_v6, %v2844_v34 }
 0xa3f   : > { %4146 = vmatprep.subr.bf16.mxu0 %v6665_v14  ;;  %v3138_v59 = vpop.permute.xlu1 %3137  ;;  %v5378_v8 = vcombine.high %v2801_v60, %v2805_v39 }
 0xa40   : > { %v3073_v46 = vpop.permute.xlu0 %3072 }
 0xa41   : > { %5883 = vmatpush3.bf16.msra.mxu1 %v3073_v46  ;;  %v2848_v46 = vld [vmem:[%s8751_s13 + $0x250] sm:$0xff] }
 0xa42   : > { %4147 = vmatpush1.bf16.msra.mxu0 %v3138_v59  ;;  %6028 = vmatprep.subr.bf16.mxu1 %v6670_v50  ;;  %v2813_v59 = vld [vmem:[%s8751_s13 + $0x138] sm:$0xff] }
 0xa43   : > { %4148 = vmatprep.subr.bf16.mxu0 %v6665_v14  ;;  %v2792_v14 = vld [vmem:[%s8751_s13 + $0x90] sm:$0xff] }
 0xa44   : > { %3945 = vmatmul.mubr.bf16.gmra.mrb[128].mxu0 %v5413_v13  ;;  %4017 = vmatmul.mubr.bf16.vlgmr.msra.gmra.mrb[80].mxu1 %v5351_v9  ;;  %v3140_v31 = vpop.permute.xlu0 %3139  ;;  %v5368_v28 = vcombine.high %v2792_v14, %v2796_v21  ;;  %v5367_v33 = vcombine.low %v2792_v14, %v2796_v21  ;;  %v2852_v9 = vld [vmem:[%s8751_s13 + $0x270] sm:$0xff]  ;;  %v2809_v13 = vld [vmem:[%s8751_s13 + $0x118] sm:$0xff] }
 0xa45   : > { %v3710_v58 = vsel %vm698_vm2, %v3140_v31, 0  ;;  %3952 = vmatprep.mubr.bf16.mxu0 %v5422_v17  ;;  %4024 = vmatprep.mubr.bf16.mxu1 %v5360_v18  ;;  %vm3669_vm2 = vcmask 850944   ;;  %v5415_v17 = vcombine.low %v2840_v6, %v2844_v34  ;;  %v5377_v18 = vcombine.low %v2801_v60, %v2805_v39  ;;  %v2817_v14 = vld [vmem:[%s8751_s13 + $0x158] sm:$0xff] }
 0xa46   : > { %4149 = vmatpush1.bf16.msra.mxu0 %v3710_v58  ;;  %v5424_v31 = vcombine.high %v2848_v46, %v2852_v9  ;;  %v5386_v58 = vcombine.high %v2809_v13, %v2813_v59  ;;  %v2821_v21 = vld [vmem:[%s8751_s13 + $0x178] sm:$0xff] }
 0xa4c   : > { %3953 = vmatmul.mubr.bf16.gmra.mrb[132].mxu0 %v5421_v20  ;;  %4025 = vmatmul.mubr.bf16.gmra.mrb[84].mxu1 %v5359_v22  ;;  %v5423_v20 = vcombine.low %v2848_v46, %v2852_v9  ;;  %v5385_v22 = vcombine.low %v2809_v13, %v2813_v59 }
 0xa4d   : > { %3960 = vmatprep.mubr.bf16.mxu0 %v5430_v24  ;;  %4032 = vmatprep.mubr.bf16.mxu1 %v5368_v28  ;;  %v5432_v24 = vcombine.high %v2856_v30, %v2860_v0  ;;  %v5394_v28 = vcombine.high %v2817_v14, %v2821_v21 }
 0xa54   : > { %3961 = vmatmul.mubr.bf16.gmra.mrb[136].mxu0 %v5429_v53  ;;  %4033 = vmatmul.mubr.bf16.gmra.mrb[88].mxu1 %v5367_v33  ;;  %v5431_v53 = vcombine.low %v2856_v30, %v2860_v0  ;;  %v5393_v33 = vcombine.low %v2817_v14, %v2821_v21 }
 0xa55   : > { %3968 = vmatprep.mubr.bf16.mxu0 %v5438_v4  ;;  %4040 = vmatprep.mubr.bf16.mxu1 %v5376_v19  ;;  %v5440_v4 = vcombine.high %v2864_v29, %v2868_v32  ;;  %v5402_v19 = vcombine.high %v2825_v23, %v2829_v12 }
 0xa5c   : > { %3969 = vmatmul.mubr.bf16.gmra.mrb[140].mxu0 %v5437_v35  ;;  %4041 = vmatmul.mubr.bf16.gmra.mrb[92].mxu1 %v5375_v36  ;;  %v5439_v35 = vcombine.low %v2864_v29, %v2868_v32  ;;  %v5401_v36 = vcombine.low %v2825_v23, %v2829_v12 }
 0xa5d   : > { %3976 = vmatprep.mubr.bf16.mxu0 %v5446_v38  ;;  %4048 = vmatprep.mubr.bf16.mxu1 %v5384_v11  ;;  %v5448_v38 = vcombine.high %v2872_v40, %v2872_v40  ;;  %v5410_v11 = vcombine.high %v2833_v15, %v2837_v41 }
 0xa64   : > { %3977 = vmatmul.mubr.bf16.gmra.mrb[144].mxu0 %v5445_v43  ;;  %4049 = vmatmul.mubr.bf16.gmra.mrb[96].mxu1 %v5383_v44  ;;  %v5418_v43 = vcombine.high %v2841_v37, %v2845_v42  ;;  %v2849_v44 = vld [vmem:[%s8751_s13 + $0x258] sm:$0xff] }
 0xa65   : > { %4056 = vmatprep.mubr.bf16.mxu1 %v5392_v16  ;;  %5451 = vmatprep.mubr.msk.bf16.mxu0 %vm3669_vm2, %v5354_v48  ;;  %v2853_v16 = vld [vmem:[%s8751_s13 + $0x278] sm:$0xff]  ;;  %v5417_v48 = vcombine.low %v2841_v37, %v2845_v42 }
 0xa66   : > { %v5426_v49 = vcombine.high %v2849_v44, %v2853_v16  ;;  %v5425_v52 = vcombine.low %v2849_v44, %v2853_v16 }
 0xa6c   : > { %4057 = vmatmul.mubr.bf16.gmra.mrb[100].mxu1 %v5391_v47  ;;  %4153 = vmatmul.mubr.bf16.vlgmr.msra.gmra.mrb[148].mxu0 %v5353_v55  ;;  %v5434_v55 = vcombine.high %v2857_v51, %v2861_v54 }
 0xa6d   : > { %4064 = vmatprep.mubr.bf16.mxu1 %v5400_v61  ;;  %5452 = vmatprep.mubr.msk.bf16.mxu0 %vm3669_vm2, %v5362_v45  ;;  %v2865_v45 = vld [vmem:[%s8751_s13 + $0x2d8] sm:$0xff] }
 0xa6e   : > { %v5442_v6 = vcombine.high %v2865_v45, %v2869_v63  ;;  %v5441_v59 = vcombine.low %v2865_v45, %v2869_v63 }
 0xa74   : > { %4065 = vmatmul.mubr.bf16.gmra.mrb[104].mxu1 %v5399_v2  ;;  %4161 = vmatmul.mubr.bf16.gmra.mrb[152].mxu0 %v5361_v3  ;;  %v5433_v2 = vcombine.low %v2857_v51, %v2861_v54 }
 0xa75   : > { %4072 = vmatprep.mubr.bf16.mxu1 %v5408_v10  ;;  %5453 = vmatprep.mubr.msk.bf16.mxu0 %vm3669_vm2, %v5370_v5 }
 0xa7c   : > { %4073 = vmatmul.mubr.bf16.gmra.mrb[108].mxu1 %v5407_v27  ;;  %4169 = vmatmul.mubr.bf16.gmra.mrb[156].mxu0 %v5369_v56 }
 0xa7d   : > { %4080 = vmatprep.mubr.bf16.mxu1 %v5416_v7  ;;  %5454 = vmatprep.mubr.msk.bf16.mxu0 %vm3669_vm2, %v5378_v8  ;;  %v2873_v8 = vld [vmem:[%s8751_s13 + $0x318] sm:$0xff] }
 0xa7e   : > { %v5449_v32 = vcombine.low %v2873_v8, %v2873_v8 }
 0xa84   : > { %4081 = vmatmul.mubr.bf16.gmra.mrb[112].mxu1 %v5415_v17  ;;  %4177 = vmatmul.mubr.bf16.gmra.mrb[160].mxu0 %v5377_v18 }
 0xa85   : > { %4088 = vmatprep.mubr.bf16.mxu1 %v5424_v31  ;;  %5455 = vmatprep.mubr.msk.bf16.mxu0 %vm3669_vm2, %v5386_v58  ;;  %v5450_v58 = vcombine.high %v2873_v8, %v2873_v8 }
 0xa8c   : > { %4089 = vmatmul.mubr.bf16.gmra.mrb[116].mxu1 %v5423_v20  ;;  %4185 = vmatmul.mubr.bf16.gmra.mrb[164].mxu0 %v5385_v22 }
 0xa8d   : > { %4096 = vmatprep.mubr.bf16.mxu1 %v5432_v24  ;;  %5456 = vmatprep.mubr.msk.bf16.mxu0 %vm3669_vm2, %v5394_v28 }
 0xa94   : > { %4097 = vmatmul.mubr.bf16.gmra.mrb[120].mxu1 %v5431_v53  ;;  %4193 = vmatmul.mubr.bf16.gmra.mrb[168].mxu0 %v5393_v33 }
 0xa95   : > { %4104 = vmatprep.mubr.bf16.mxu1 %v5440_v4  ;;  %5457 = vmatprep.mubr.msk.bf16.mxu0 %vm3669_vm2, %v5402_v19 }
 0xa9c   : > { %4105 = vmatmul.mubr.bf16.gmra.mrb[124].mxu1 %v5439_v35  ;;  %4201 = vmatmul.mubr.bf16.gmra.mrb[172].mxu0 %v5401_v36 }
 0xa9d   : > { %4112 = vmatprep.mubr.bf16.mxu1 %v5448_v38  ;;  %5458 = vmatprep.mubr.msk.bf16.mxu0 %vm3669_vm2, %v5410_v11 }
 0xaa4   : > { %4113 = vmatmul.mubr.bf16.gmra.mrb[128].mxu1 %v5447_v26  ;;  %4209 = vmatmul.mubr.bf16.gmra.mrb[176].mxu0 %v5409_v25 }
 0xaa5   : > { %5459 = vmatprep.mubr.msk.bf16.mxu0 %vm3669_vm2, %v5418_v43  ;;  %6030 = vmatprep.mubr.msk.bf16.mxu1 %vm6671_vm13, %v6670_v50 }
 0xaac   : > { %4217 = vmatmul.mubr.bf16.gmra.mrb[180].mxu0 %v5417_v48 }
 0xaad   : > { %5460 = vmatprep.mubr.msk.bf16.mxu0 %vm3669_vm2, %v5426_v49 }
 0xab4   : > { %4225 = vmatmul.mubr.bf16.gmra.mrb[184].mxu0 %v5425_v52 }
 0xab5   : > { %5461 = vmatprep.mubr.msk.bf16.mxu0 %vm3669_vm2, %v5434_v55  ;;  %v5696_v47 = vpop.f32.mrb[80].mxu0 }
 0xab6   : > { %v5697_v61 = vpop.f32.mrb[81].mxu0 }
 0xab7   : > { %v8194_v57 = vadd.f32 %v5697_v61, %v5696_v47  ;;  %v5699_v1 = vpop.f32.mrb[82].mxu0  ;;  %v5720_v62 = vpop.f32.mrb[44].mxu1 }
 0xab8   : > { %v5700_v3 = vpop.f32.mrb[83].mxu0  ;;  %v5721_v10 = vpop.f32.mrb[45].mxu1 }
 0xab9   : > { %v8196_v5 = vadd.f32 %v5700_v3, %v5699_v1  ;;  %v8198_v34 = vadd.f32 %v5721_v10, %v5720_v62  ;;  %v5723_v60 = vpop.f32.mrb[46].mxu1 }
 0xaba   : > { %v5724_v39 = vpop.f32.mrb[47].mxu1 }
 0xabb   : > { %v8200_v27 = vadd.f32 %v5724_v39, %v5723_v60 }
 0xabc   : > { %4233 = vmatmul.mubr.bf16.gmra.mrb[188].mxu0 %v5433_v2 }
 0xabd   : > { %5462 = vmatprep.mubr.msk.bf16.mxu0 %vm3669_vm2, %v5442_v6  ;;  %v5702_v56 = vpop.f32.mrb[84].mxu0 }
 0xabe   : > { %v5703_v7 = vpop.f32.mrb[85].mxu0 }
 0xabf   : > { %v8206_v46 = vadd.f32 %v5703_v7, %v5702_v56  ;;  %v5705_v9 = vpop.f32.mrb[86].mxu0  ;;  %v5726_v13 = vpop.f32.mrb[48].mxu1 }
 0xac0   : > { %v5706_v17 = vpop.f32.mrb[87].mxu0  ;;  %v5727_v18 = vpop.f32.mrb[49].mxu1 }
 0xac1   : > { %v5707_v31 = vadd.f32 %v5706_v17, %v5705_v9  ;;  %v8208_v30 = vadd.f32 %v5727_v18, %v5726_v13  ;;  %v5729_v0 = vpop.f32.mrb[50].mxu1 }
 0xac2   : > { %v5730_v14 = vpop.f32.mrb[51].mxu1 }
 0xac3   : > { %v8210_v21 = vadd.f32 %v5730_v14, %v5729_v0 }
 0xac4   : > { %4241 = vmatmul.mubr.bf16.gmra.mrb[192].mxu0 %v5441_v59 }
 0xac5   : > { %5463 = vmatprep.mubr.msk.bf16.mxu0 %vm3669_vm2, %v5450_v58  ;;  %v5708_v20 = vpop.f32.mrb[88].mxu0 }
 0xac6   : > { %v5709_v22 = vpop.f32.mrb[89].mxu0 }
 0xac7   : > { %v5710_v24 = vadd.f32 %v5709_v22, %v5708_v20  ;;  %v5711_v28 = vpop.f32.mrb[90].mxu0  ;;  %v5732_v29 = vpop.f32.mrb[52].mxu1 }
 0xac8   : > { %v5712_v23 = vpop.f32.mrb[91].mxu0  ;;  %v5733_v12 = vpop.f32.mrb[53].mxu1 }
 0xac9   : > { %v5713_v53 = vadd.f32 %v5712_v23, %v5711_v28  ;;  %v8213_v33 = vadd.f32 %v5733_v12, %v5732_v29  ;;  %v5735_v4 = vpop.f32.mrb[54].mxu1 }
 0xaca   : > { %v5736_v19 = vpop.f32.mrb[55].mxu1 }
 0xacb   : > { %v8215_v40 = vadd.f32 %v5736_v19, %v5735_v4 }
 0xacc   : > { %4249 = vmatmul.mubr.bf16.gmra.mrb[196].mxu0 %v5449_v32 }
 0xacd   : > { %v5714_v15 = vpop.f32.mrb[92].mxu0 }
 0xace   : > { %v5715_v41 = vpop.f32.mrb[93].mxu0 }
 0xacf   : > { %v5716_v35 = vadd.f32 %v5715_v41, %v5714_v15  ;;  %v5717_v36 = vpop.f32.mrb[94].mxu0  ;;  %v5738_v38 = vpop.f32.mrb[56].mxu1 }
 0xad0   : > { %v5718_v11 = vpop.f32.mrb[95].mxu0  ;;  %v5739_v37 = vpop.f32.mrb[57].mxu1 }
 0xad1   : > { %v5719_v42 = vadd.f32 %v5718_v11, %v5717_v36  ;;  %v8217_v26 = vadd.f32 %v5739_v37, %v5738_v38  ;;  %v5741_v25 = vpop.f32.mrb[58].mxu1 }
 0xad2   : > { %v5742_v43 = vpop.f32.mrb[59].mxu1 }
 0xad3   : > { %v8219_v44 = vadd.f32 %v5742_v43, %v5741_v25 }
 0xad7   : > { %v5790_v16 = vpop.f32.mrb[96].mxu0  ;;  %v5744_v48 = vpop.f32.mrb[60].mxu1 }
 0xad8   : > { %v5791_v49 = vpop.f32.mrb[97].mxu0  ;;  %v5745_v51 = vpop.f32.mrb[61].mxu1 }
 0xad9   : > { %v5792_v54 = vadd.f32 %v5791_v49, %v5790_v16  ;;  %v5793_v52 = vpop.f32.mrb[98].mxu0  ;;  %v8221_v55 = vadd.f32 %v5745_v51, %v5744_v48  ;;  %v5747_v47 = vpop.f32.mrb[62].mxu1 }
 0xada   : > { %v5794_v61 = vpop.f32.mrb[99].mxu0  ;;  %v5748_v45 = vpop.f32.mrb[63].mxu1 }
 0xadb   : > { %v8224_v63 = vadd.f32 %v5792_v54, %v8194_v57  ;;  %v5795_v1 = vadd.f32 %v5794_v61, %v5793_v52  ;;  %v8226_v62 = vadd.f32 %v5748_v45, %v5747_v47 }
 0xadd   : > { %v8229_v2 = vadd.f32 %v5795_v1, %v8196_v5 }
 0xadf   : > { %v5796_v3 = vpop.f32.mrb[100].mxu0  ;;  %v5750_v10 = vpop.f32.mrb[64].mxu1 }
 0xae0   : > { %v5797_v6 = vpop.f32.mrb[101].mxu0  ;;  %v5751_v60 = vpop.f32.mrb[65].mxu1 }
 0xae1   : > { %v5798_v39 = vadd.f32 %v5797_v6, %v5796_v3  ;;  %v5799_v56 = vpop.f32.mrb[102].mxu0  ;;  %v8231_v7 = vadd.f32 %v5751_v60, %v5750_v10  ;;  %v5753_v8 = vpop.f32.mrb[66].mxu1 }
 0xae2   : > { %v5800_v9 = vpop.f32.mrb[103].mxu0  ;;  %v5754_v13 = vpop.f32.mrb[67].mxu1 }
 0xae3   : > { %v8234_v57 = vadd.f32 %v5798_v39, %v8206_v46  ;;  %v5801_v59 = vadd.f32 %v5800_v9, %v5799_v56  ;;  %v8236_v17 = vadd.f32 %v5754_v13, %v5753_v8  ;;  %v8261_v39 = vpop.permute.xlu1 %4258 }
 0xae5   : > { %v8238_v18 = vadd.f32 %v5801_v59, %v5707_v31 }
 0xae7   : > { %v5802_v5 = vpop.f32.mrb[104].mxu0  ;;  %v5756_v58 = vpop.f32.mrb[68].mxu1 }
 0xae8   : > { %v5803_v0 = vpop.f32.mrb[105].mxu0  ;;  %v5757_v14 = vpop.f32.mrb[69].mxu1 }
 0xae9   : > { %v5804_v20 = vadd.f32 %v5803_v0, %v5802_v5  ;;  %v5805_v22 = vpop.f32.mrb[106].mxu0  ;;  %v8240_v28 = vadd.f32 %v5757_v14, %v5756_v58  ;;  %v5759_v29 = vpop.f32.mrb[70].mxu1 }
 0xaea   : > { %v5806_v32 = vpop.f32.mrb[107].mxu0  ;;  %v5760_v23 = vpop.f32.mrb[71].mxu1 }
 0xaeb   : > { %v8242_v12 = vadd.f32 %v5804_v20, %v5710_v24  ;;  %v5807_v46 = vadd.f32 %v5806_v32, %v5805_v22  ;;  %v8244_v4 = vadd.f32 %v5760_v23, %v5759_v29  ;;  %v8266_v5 = vpop.permute.xlu1 %4408  ;;  %v8271_v14 = vpop.permute.xlu0 %4263 }
 0xaed   : > { %v8246_v19 = vadd.f32 %v5807_v46, %v5713_v53 }
 0xaef   : > { %v5808_v31 = vpop.f32.mrb[108].mxu0  ;;  %v5762_v15 = vpop.f32.mrb[72].mxu1 }
 0xaf0   : > { %v5809_v41 = vpop.f32.mrb[109].mxu0  ;;  %v5763_v36 = vpop.f32.mrb[73].mxu1 }
 0xaf1   : > { %v5810_v38 = vadd.f32 %v5809_v41, %v5808_v31  ;;  %v5811_v11 = vpop.f32.mrb[110].mxu0  ;;  %v8248_v37 = vadd.f32 %v5763_v36, %v5762_v15  ;;  %v5765_v25 = vpop.f32.mrb[74].mxu1 }
 0xaf2   : > { %v5812_v43 = vpop.f32.mrb[111].mxu0  ;;  %v5766_v16 = vpop.f32.mrb[75].mxu1 }
 0xaf3   : > { %v8250_v48 = vadd.f32 %v5810_v38, %v5716_v35  ;;  %v5813_v24 = vadd.f32 %v5812_v43, %v5811_v11  ;;  %v8252_v49 = vadd.f32 %v5766_v16, %v5765_v25  ;;  %v8278_v23 = vpop.permute.xlu0 %4413 }
 0xaf5   : > { %v8254_v51 = vadd.f32 %v5813_v24, %v5719_v42 }
 0xaf7   : > { %v5814_v53 = vpop.f32.mrb[112].mxu0  ;;  %v5768_v54 = vpop.f32.mrb[76].mxu1 }
 0xaf8   : > { %v5815_v52 = vpop.f32.mrb[113].mxu0  ;;  %v5769_v47 = vpop.f32.mrb[77].mxu1 }
 0xaf9   : > { %v5816_v61 = vadd.f32 %v5815_v52, %v5814_v53  ;;  %v5817_v45 = vpop.f32.mrb[114].mxu0  ;;  %v8256_v1 = vadd.f32 %v5769_v47, %v5768_v54  ;;  %v5771_v3 = vpop.f32.mrb[78].mxu1 }
 0xafa   : > { %v5818_v10 = vpop.f32.mrb[115].mxu0  ;;  %v5772_v6 = vpop.f32.mrb[79].mxu1 }
 0xafb   : > { %v8259_v60 = vadd.f32 %v5816_v61, %v8198_v34  ;;  %v5819_v35 = vadd.f32 %v5818_v10, %v5817_v45  ;;  %v8288_v36 = vpop.permute.xlu0 %4273 }
 0xafd   : > { %v8264_v42 = vadd.f32 %v5819_v35, %v8200_v27  ;;  %v8276_v27 = vpop.permute.xlu1 %4268 }
 0xaff   : > { %v5820_v56 = vpop.f32.mrb[116].mxu0 }
 0xb00   : > { %v5821_v8 = vpop.f32.mrb[117].mxu0 }
 0xb01   : > { %v5822_v9 = vadd.f32 %v5821_v8, %v5820_v56  ;;  %v5823_v13 = vpop.f32.mrb[118].mxu0  ;;  %v8286_v41 = vpop.permute.xlu1 %4418 }
 0xb02   : > { %v5824_v59 = vpop.f32.mrb[119].mxu0 }
 0xb03   : > { %v8269_v58 = vadd.f32 %v5822_v9, %v8208_v30  ;;  %v5825_v0 = vadd.f32 %v5824_v59, %v5823_v13 }
 0xb05   : > { %v8274_v34 = vadd.f32 %v5825_v0, %v8210_v21  ;;  %v8296_v53 = vpop.permute.xlu1 %4278 }
 0xb07   : > { %v5826_v20 = vpop.f32.mrb[120].mxu0 }
 0xb08   : > { %v5827_v22 = vpop.f32.mrb[121].mxu0 }
 0xb09   : > { %v5828_v29 = vadd.f32 %v5827_v22, %v5826_v20  ;;  %v5829_v32 = vpop.f32.mrb[122].mxu0  ;;  %v8312_v0 = vpop.permute.xlu1 %4428 }
 0xb0a   : > { %v5830_v46 = vpop.f32.mrb[123].mxu0 }
 0xb0b   : > { %v8281_v31 = vadd.f32 %v5828_v29, %v8213_v33  ;;  %v5831_v30 = vadd.f32 %v5830_v46, %v5829_v32 }
 0xb0d   : > { %v8284_v15 = vadd.f32 %v5831_v30, %v8215_v40  ;;  %v8298_v40 = vpop.permute.xlu0 %4423 }
 0xb0f   : > { %v5832_v21 = vpop.f32.mrb[124].mxu0 }
 0xb10   : > { %v5833_v38 = vpop.f32.mrb[125].mxu0 }
 0xb11   : > { %v5834_v11 = vadd.f32 %v5833_v38, %v5832_v21  ;;  %v5835_v25 = vpop.f32.mrb[126].mxu0  ;;  %v8314_v20 = vpop.permute.xlu0 %4283 }
 0xb12   : > { %v5836_v43 = vpop.f32.mrb[127].mxu0 }
 0xb13   : > { %v8291_v16 = vadd.f32 %v5834_v11, %v8217_v26  ;;  %v5837_v24 = vadd.f32 %v5836_v43, %v5835_v25 }
 0xb15   : > { %v8294_v33 = vadd.f32 %v5837_v24, %v8219_v44 }
 0xb17   : > { %v5884_v54 = vpop.f32.mrb[80].mxu1  ;;  %v5838_v52 = vpop.f32.mrb[128].mxu0 }
 0xb18   : > { %v5885_v47 = vpop.f32.mrb[81].mxu1  ;;  %v5839_v61 = vpop.f32.mrb[129].mxu0 }
 0xb19   : > { %v5886_v45 = vadd.f32 %v5885_v47, %v5884_v54  ;;  %v5887_v3 = vpop.f32.mrb[82].mxu1  ;;  %v5840_v10 = vadd.f32 %v5839_v61, %v5838_v52  ;;  %v5841_v6 = vpop.f32.mrb[130].mxu0 }
 0xb1a   : > { %v5888_v35 = vpop.f32.mrb[83].mxu1  ;;  %v5842_v56 = vpop.f32.mrb[131].mxu0 }
 0xb1b   : > { %v5889_v26 = vadd.f32 %v5888_v35, %v5887_v3  ;;  %v8301_v8 = vadd.f32 %v5840_v10, %v8221_v55  ;;  %v5843_v44 = vadd.f32 %v5842_v56, %v5841_v6  ;;  %v8304_v9 = vadd.f32 %v5886_v45, %v8224_v63  ;;  %v2924_v55 = vld [vmem:[%s8754_s16] sm:$0x3]  ;;  %v8332_v61 = vpop.permute.xlu1 %4288  ;;  %v8334_v45 = vpop.permute.xlu0 %4433 }
 0xb1c   : > { %v4835_v38 = vsel %vm691_vm1, %v2924_v55, 0  ;;  %vm4794_vm1 = vcmask 31744  }
 0xb1d   : > { %v8307_v13 = vadd.f32 %v5843_v44, %v8226_v62  ;;  %v8310_v59 = vadd.f32 %v5889_v26, %v8229_v2  ;;  %6029 = vmatpush3.bf16.msra.mxu1 %v4835_v38 }
 0xb1f   : > { %v5890_v22 = vpop.f32.mrb[84].mxu1  ;;  %v5844_v29 = vpop.f32.mrb[132].mxu0 }
 0xb20   : > { %v5891_v32 = vpop.f32.mrb[85].mxu1  ;;  %v5845_v46 = vpop.f32.mrb[133].mxu0 }
 0xb21   : > { %v5892_v63 = vadd.f32 %v5891_v32, %v5890_v22  ;;  %v5893_v30 = vpop.f32.mrb[86].mxu1  ;;  %v5846_v21 = vadd.f32 %v5845_v46, %v5844_v29  ;;  %v5847_v62 = vpop.f32.mrb[134].mxu0 }
 0xb22   : > { %v5894_v2 = vpop.f32.mrb[87].mxu1  ;;  %v5848_v11 = vpop.f32.mrb[135].mxu0 }
 0xb23   : > { %v5895_v25 = vadd.f32 %v5894_v2, %v5893_v30  ;;  %v8321_v43 = vadd.f32 %v5846_v21, %v8231_v7  ;;  %v5849_v24 = vadd.f32 %v5848_v11, %v5847_v62  ;;  %v8324_v54 = vadd.f32 %v5892_v63, %v8234_v57  ;;  %v8348_v63 = vpop.permute.xlu1 %4438  ;;  %v8350_v30 = vpop.permute.xlu0 %4293 }
 0xb25   : > { %v8327_v52 = vadd.f32 %v5849_v24, %v8236_v17  ;;  %v8330_v47 = vadd.f32 %v5895_v25, %v8238_v18 }
 0xb27   : > { %v5896_v3 = vpop.f32.mrb[88].mxu1  ;;  %v5850_v10 = vpop.f32.mrb[136].mxu0 }
 0xb28   : > { %v5897_v6 = vpop.f32.mrb[89].mxu1  ;;  %v5851_v35 = vpop.f32.mrb[137].mxu0 }
 0xb29   : > { %v5898_v7 = vadd.f32 %v5897_v6, %v5896_v3  ;;  %v5899_v56 = vpop.f32.mrb[90].mxu1  ;;  %v5852_v26 = vadd.f32 %v5851_v35, %v5850_v10  ;;  %v5853_v44 = vpop.f32.mrb[138].mxu0 }
 0xb2a   : > { %v5900_v57 = vpop.f32.mrb[91].mxu1  ;;  %v5854_v22 = vpop.f32.mrb[139].mxu0 }
 0xb2b   : > { %v5901_v29 = vadd.f32 %v5900_v57, %v5899_v56  ;;  %v8337_v17 = vadd.f32 %v5852_v26, %v8240_v28  ;;  %v5855_v18 = vadd.f32 %v5854_v22, %v5853_v44  ;;  %v8340_v32 = vadd.f32 %v5898_v7, %v8242_v12  ;;  %v8364_v56 = vpop.permute.xlu1 %4298  ;;  %v8366_v26 = vpop.permute.xlu0 %4443 }
 0xb2d   : > { %v8343_v46 = vadd.f32 %v5855_v18, %v8244_v4  ;;  %v8346_v55 = vadd.f32 %v5901_v29, %v8246_v19 }
 0xb2f   : > { %v5902_v21 = vpop.f32.mrb[92].mxu1  ;;  %v5856_v62 = vpop.f32.mrb[140].mxu0 }
 0xb30   : > { %v5903_v38 = vpop.f32.mrb[93].mxu1  ;;  %v5857_v2 = vpop.f32.mrb[141].mxu0 }
 0xb31   : > { %v5904_v28 = vadd.f32 %v5903_v38, %v5902_v21  ;;  %v5905_v11 = vpop.f32.mrb[94].mxu1  ;;  %v5858_v25 = vadd.f32 %v5857_v2, %v5856_v62  ;;  %v5859_v24 = vpop.f32.mrb[142].mxu0 }
 0xb32   : > { %v5906_v12 = vpop.f32.mrb[95].mxu1  ;;  %v5860_v3 = vpop.f32.mrb[143].mxu0 }
 0xb33   : > { %v5907_v10 = vadd.f32 %v5906_v12, %v5905_v11  ;;  %v8353_v4 = vadd.f32 %v5858_v25, %v8248_v37  ;;  %v5861_v19 = vadd.f32 %v5860_v3, %v5859_v24  ;;  %v8356_v6 = vadd.f32 %v5904_v28, %v8250_v48  ;;  %v8377_v11 = vpop.permute.xlu1 %4448  ;;  %v8379_v25 = vpop.permute.xlu0 %4303 }
 0xb35   : > { %v8359_v35 = vadd.f32 %v5861_v19, %v8252_v49  ;;  %v8362_v7 = vadd.f32 %v5907_v10, %v8254_v51 }
 0xb37   : > { %v5908_v44 = vpop.f32.mrb[96].mxu1  ;;  %v5862_v57 = vpop.f32.mrb[144].mxu0 }
 0xb38   : > { %v5909_v22 = vpop.f32.mrb[97].mxu1  ;;  %v5863_v29 = vpop.f32.mrb[145].mxu0 }
 0xb39   : > { %v5910_v37 = vadd.f32 %v5909_v22, %v5908_v44  ;;  %v5911_v18 = vpop.f32.mrb[98].mxu1  ;;  %v5864_v21 = vadd.f32 %v5863_v29, %v5862_v57  ;;  %v5865_v62 = vpop.f32.mrb[146].mxu0 }
 0xb3a   : > { %v5912_v48 = vpop.f32.mrb[99].mxu1  ;;  %v5866_v38 = vpop.f32.mrb[147].mxu0 }
 0xb3b   : > { %v5913_v2 = vadd.f32 %v5912_v48, %v5911_v18  ;;  %v8369_v49 = vadd.f32 %v5864_v21, %v8256_v1  ;;  %v8372_v51 = vadd.f32 %v5910_v37, %v8259_v60  ;;  %v8393_v48 = vpop.permute.xlu0 %4453 }
 0xb3d   : > { %v8375_v28 = vadd.f32 %v5913_v2, %v8264_v42 }
 0xb3f   : > { %v5914_v24 = vpop.f32.mrb[100].mxu1  ;;  %v4154_v12 = vpop.f32.mrb[148].mxu0 }
 0xb40   : > { %v4155_v3 = vadd.f32 %v4154_v12, %v8304_v9  ;;  %v5915_v10 = vpop.f32.mrb[101].mxu1  ;;  %v4156_v19 = vpop.f32.mrb[149].mxu0 }
 0xb41   : > { %v5916_v44 = vadd.f32 %v5915_v10, %v5914_v24  ;;  %v5917_v57 = vpop.f32.mrb[102].mxu1  ;;  %v4157_v1 = vpop.f32.mrb[150].mxu0 }
 0xb42   : > { %v4381_v22 = vmul.f32 %v8261_v39, %v4155_v3  ;;  %v4158_v60 = vadd.f32 %v4157_v1, %v8310_v59  ;;  %v5918_v29 = vpop.f32.mrb[103].mxu1  ;;  %v4159_v42 = vpop.f32.mrb[151].mxu0  ;;  %v2919_v1 = vld [vmem:[%s8753_s15 + $0xa0] sm:$0xff] }
 0xb43   : > { %v5919_v37 = vadd.f32 %v5918_v29, %v5917_v57  ;;  %v8385_v18 = vadd.f32 %v5916_v44, %v8269_v58  ;;  %v8391_v9 = vpop.permute.xlu1 %4308  ;;  %v8423_v29 = vpop.permute.xlu0 %4313 }
 0xb44   : > { %v4382_v21 = vmul.f32 %v8271_v14, %v4158_v60  ;;  %v8396_v38 = vadd.f32 %v8266_v5, %v4381_v22 }
 0xb45   : > { %v8389_v62 = vadd.f32 %v5919_v37, %v8274_v34 }
 0xb46   : > { %v8399_v39 = vadd.f32 %v8278_v23, %v4382_v21 }
 0xb47   : > { %v5920_v59 = vpop.f32.mrb[104].mxu1  ;;  %v4162_v2 = vpop.f32.mrb[152].mxu0 }
 0xb48   : > { %v4163_v58 = vadd.f32 %v4162_v2, %v8324_v54  ;;  %v5921_v24 = vpop.f32.mrb[105].mxu1  ;;  %v4164_v12 = vpop.f32.mrb[153].mxu0  ;;  %v6285_v14 = vpack.i.bf16 %v8399_v39, %v8396_v38  ;;  %v2897_v54 = vld [vmem:[%s8752_s14 + $0xb8] sm:$0xff] }
 0xb49   : > { %v5922_v34 = vadd.f32 %v5921_v24, %v5920_v59  ;;  %v5923_v3 = vpop.f32.mrb[106].mxu1  ;;  %v4165_v10 = vpop.f32.mrb[154].mxu0 }
 0xb4a   : > { %v4383_v19 = vmul.f32 %v8276_v27, %v4163_v58  ;;  %v4166_v5 = vadd.f32 %v4165_v10, %v8330_v47  ;;  %v5924_v44 = vpop.f32.mrb[107].mxu1  ;;  %6286 = vrot.lane.b32.xlu0 %v6285_v14, %s8807_s19  ;;  %6281 = vrot.lane.b32.xlu1 %v6285_v14, %s8806_s21  ;;  %v4167_v23 = vpop.f32.mrb[155].mxu0  ;;  %v2896_v10 = vld [vmem:[%s8752_s14 + $0xb0] sm:$0xff] }
 0xb4b   : > { %v5925_v57 = vadd.f32 %v5924_v44, %v5923_v3  ;;  %v8415_v22 = vadd.f32 %v5922_v34, %v8281_v31  ;;  %v8421_v60 = vpop.permute.xlu1 %4458  ;;  %v8453_v44 = vpop.permute.xlu0 %4463 }
 0xb4c   : > { %v4384_v27 = vmul.f32 %v8288_v36, %v4166_v5  ;;  %v8426_v42 = vadd.f32 %v8286_v41, %v4383_v19 }
 0xb4d   : > { %v8419_v47 = vadd.f32 %v5925_v57, %v8284_v15 }
 0xb4e   : > { %v8429_v37 = vadd.f32 %v8298_v40, %v4384_v27  ;;  %4373 = vperm.xlu0 %6148, %v2897_v54   ;;  %4508 = vperm.xlu1 %6149, %v2919_v1  }
 0xb4f   : > { %v5926_v21 = vpop.f32.mrb[108].mxu1  ;;  %v4170_v31 = vpop.f32.mrb[156].mxu0 }
 0xb50   : > { %v4171_v59 = vadd.f32 %v4170_v31, %v8340_v32  ;;  %v5927_v36 = vpop.f32.mrb[109].mxu1  ;;  %v4172_v2 = vpop.f32.mrb[157].mxu0  ;;  %v6295_v15 = vpack.i.bf16 %v8429_v37, %v8426_v42  ;;  %v2922_v32 = vld [vmem:[%s8753_s15 + $0xb8] sm:$0xff] }
 0xb51   : > { %v5928_v58 = vadd.f32 %v5927_v36, %v5926_v21  ;;  %v5929_v24 = vpop.f32.mrb[110].mxu1  ;;  %v4173_v12 = vpop.f32.mrb[158].mxu0 }
 0xb52   : > { %v4385_v41 = vmul.f32 %v8296_v53, %v4171_v59  ;;  %v4174_v14 = vadd.f32 %v4173_v12, %v8346_v55  ;;  %v5930_v40 = vpop.f32.mrb[111].mxu1  ;;  %6296 = vrot.lane.b32.xlu0 %v6295_v15, %s8807_s19  ;;  %6291 = vrot.lane.b32.xlu1 %v6295_v15, %s8806_s21  ;;  %v4175_v34 = vpop.f32.mrb[159].mxu0 }
 0xb53   : > { %v5931_v3 = vadd.f32 %v5930_v40, %v5929_v24  ;;  %v8445_v19 = vadd.f32 %v5928_v58, %v8291_v16  ;;  %v8451_v5 = vpop.permute.xlu1 %4318  ;;  %v8480_v12 = vpop.permute.xlu0 %4323 }
 0xb54   : > { %v4386_v53 = vmul.f32 %v8314_v20, %v4174_v14  ;;  %v8456_v23 = vadd.f32 %v8312_v0, %v4385_v41 }
 0xb55   : > { %v8449_v55 = vadd.f32 %v5931_v3, %v8294_v33 }
 0xb56   : > { %v8459_v57 = vadd.f32 %v8334_v45, %v4386_v53  ;;  %4523 = vperm.xlu0 %6148, %v2922_v32   ;;  %4368 = vperm.xlu1 %6149, %v2896_v10  }
 0xb57   : > { %v5932_v54 = vpop.f32.mrb[112].mxu1  ;;  %v4178_v16 = vpop.f32.mrb[160].mxu0 }
 0xb58   : > { %v4179_v1 = vadd.f32 %v4178_v16, %v8356_v6  ;;  %v5933_v20 = vpop.f32.mrb[113].mxu1  ;;  %v4180_v27 = vpop.f32.mrb[161].mxu0  ;;  %v6305_v33 = vpack.i.bf16 %v8459_v57, %v8456_v23  ;;  %v2921_v6 = vld [vmem:[%s8753_s15 + $0xb0] sm:$0xff] }
 0xb59   : > { %v5934_v21 = vadd.f32 %v5933_v20, %v5932_v54  ;;  %v5935_v31 = vpop.f32.mrb[114].mxu1  ;;  %v4181_v59 = vpop.f32.mrb[162].mxu0  ;;  %v2898_v20 = vld [vmem:[%s8752_s14 + $0xc0] sm:$0xff] }
 0xb5a   : > { %v4387_v0 = vmul.f32 %v8332_v61, %v4179_v1  ;;  %v4182_v36 = vadd.f32 %v4181_v59, %v8362_v7  ;;  %v5936_v45 = vpop.f32.mrb[115].mxu1  ;;  %6306 = vrot.lane.b32.xlu0 %v6305_v33, %s8807_s19  ;;  %6301 = vrot.lane.b32.xlu1 %v6305_v33, %s8806_s21  ;;  %v4183_v2 = vpop.f32.mrb[163].mxu0 }
 0xb5b   : > { %v5937_v15 = vadd.f32 %v5936_v45, %v5935_v31  ;;  %v8472_v58 = vadd.f32 %v5934_v21, %v8301_v8  ;;  %v8478_v7 = vpop.permute.xlu1 %4468  ;;  %v4474_v21 = vpop.permute.xlu0 %4473 }
 0xb5c   : > { %v4388_v24 = vmul.f32 %v8350_v30, %v4182_v36  ;;  %v8483_v41 = vadd.f32 %v8348_v63, %v4387_v0 }
 0xb5d   : > { %v8476_v61 = vadd.f32 %v5937_v15, %v8307_v13 }
 0xb5e   : > { %v8486_v14 = vadd.f32 %v8366_v26, %v4388_v24  ;;  %4518 = vperm.xlu1 %6149, %v2921_v6  }
 0xb5f   : > { %v5938_v40 = vpop.f32.mrb[116].mxu1  ;;  %v4186_v34 = vpop.f32.mrb[164].mxu0 }
 0xb60   : > { %v4187_v8 = vadd.f32 %v4186_v34, %v8372_v51  ;;  %v5939_v3 = vpop.f32.mrb[117].mxu1  ;;  %v4188_v30 = vpop.f32.mrb[165].mxu0  ;;  %v6315_v13 = vpack.i.bf16 %v8486_v14, %v8483_v41  ;;  %v2923_v51 = vld [vmem:[%s8753_s15 + $0xc0] sm:$0xff] }
 0xb61   : > { %v5940_v32 = vadd.f32 %v5939_v3, %v5938_v40  ;;  %v5941_v10 = vpop.f32.mrb[118].mxu1  ;;  %v4189_v53 = vpop.f32.mrb[166].mxu0 }
 0xb62   : > { %v4389_v54 = vmul.f32 %v8364_v56, %v4187_v8  ;;  %v4190_v63 = vadd.f32 %v4189_v53, %v8375_v28  ;;  %v5942_v16 = vpop.f32.mrb[119].mxu1  ;;  %6316 = vrot.lane.b32.xlu0 %v6315_v13, %s8807_s19  ;;  %6311 = vrot.lane.b32.xlu1 %v6315_v13, %s8806_s21  ;;  %v4191_v26 = vpop.f32.mrb[167].mxu0 }
 0xb63   : > { %v5943_v1 = vadd.f32 %v5942_v16, %v5941_v10  ;;  %v8502_v27 = vadd.f32 %v5940_v32, %v8321_v43  ;;  %v4329_v33 = vpop.permute.xlu1 %4328  ;;  %v4334_v13 = vpop.permute.xlu0 %4333 }
 0xb64   : > { %v4390_v56 = vmul.f32 %v8379_v25, %v4190_v63  ;;  %v8509_v31 = vadd.f32 %v8377_v11, %v4389_v54 }
 0xb65   : > { %v8506_v28 = vadd.f32 %v5943_v1, %v8327_v52 }
 0xb66   : > { %v8512_v59 = vadd.f32 %v8393_v48, %v4390_v56  ;;  %4528 = vperm.xlu0 %6148, %v2923_v51   ;;  %4378 = vperm.xlu1 %6149, %v2898_v20  }
 0xb67   : > { %v5944_v0 = vpop.f32.mrb[120].mxu1  ;;  %v4194_v36 = vpop.f32.mrb[168].mxu0 }
 0xb68   : > { %v4195_v43 = vadd.f32 %v4194_v36, %v8385_v18  ;;  %v5945_v45 = vpop.f32.mrb[121].mxu1  ;;  %v4196_v2 = vpop.f32.mrb[169].mxu0  ;;  %v6325_v52 = vpack.i.bf16 %v8512_v59, %v8509_v31 }
 0xb69   : > { %v5946_v25 = vadd.f32 %v5945_v45, %v5944_v0  ;;  %v5947_v15 = vpop.f32.mrb[122].mxu1  ;;  %v4197_v6 = vpop.f32.mrb[170].mxu0 }
 0xb6a   : > { %v4391_v11 = vmul.f32 %v8391_v9, %v4195_v43  ;;  %v4198_v24 = vadd.f32 %v4197_v6, %v8389_v62  ;;  %v5948_v48 = vpop.f32.mrb[123].mxu1  ;;  %6326 = vrot.lane.b32.xlu0 %v6325_v52, %s8807_s19  ;;  %6321 = vrot.lane.b32.xlu1 %v6325_v52, %s8806_s21  ;;  %v4199_v40 = vpop.f32.mrb[171].mxu0 }
 0xb6b   : > { %v5949_v34 = vadd.f32 %v5948_v48, %v5947_v15  ;;  %v8522_v18 = vadd.f32 %v5946_v25, %v8337_v17  ;;  %v4479_v30 = vpop.permute.xlu1 %4478  ;;  %v4484_v56 = vpop.permute.xlu0 %4483 }
 0xb6c   : > { %v4392_v8 = vmul.f32 %v8423_v29, %v4198_v24  ;;  %v8529_v9 = vadd.f32 %v8421_v60, %v4391_v11 }
 0xb6d   : > { %v8526_v3 = vadd.f32 %v5949_v34, %v8343_v46 }
 0xb6e   : > { %v8532_v62 = vadd.f32 %v8453_v44, %v4392_v8 }
 0xb6f   : > { %v5950_v32 = vpop.f32.mrb[124].mxu1  ;;  %v4202_v10 = vpop.f32.mrb[172].mxu0 }
 0xb70   : > { %v4203_v53 = vadd.f32 %v4202_v10, %v8415_v22  ;;  %v5951_v54 = vpop.f32.mrb[125].mxu1  ;;  %v4204_v17 = vpop.f32.mrb[173].mxu0  ;;  %v6335_v29 = vpack.i.bf16 %v8532_v62, %v8529_v9 }
 0xb71   : > { %v5952_v63 = vadd.f32 %v5951_v54, %v5950_v32  ;;  %v5953_v46 = vpop.f32.mrb[126].mxu1  ;;  %v4205_v16 = vpop.f32.mrb[174].mxu0 }
 0xb72   : > { %v4393_v26 = vmul.f32 %v8451_v5, %v4203_v53  ;;  %v4206_v60 = vadd.f32 %v4205_v16, %v8419_v47  ;;  %v5954_v1 = vpop.f32.mrb[127].mxu1  ;;  %6336 = vrot.lane.b32.xlu0 %v6335_v29, %s8807_s19  ;;  %6331 = vrot.lane.b32.xlu1 %v6335_v29, %s8806_s21  ;;  %v4207_v44 = vpop.f32.mrb[175].mxu0 }
 0xb73   : > { %v5955_v51 = vadd.f32 %v5954_v1, %v5953_v46  ;;  %v8542_v22 = vadd.f32 %v5952_v63, %v8353_v4  ;;  %v4339_v36 = vpop.permute.xlu1 %4338  ;;  %v4344_v24 = vpop.permute.xlu0 %4343 }
 0xb74   : > { %v4394_v20 = vmul.f32 %v8480_v12, %v4206_v60  ;;  %v8549_v5 = vadd.f32 %v8478_v7, %v4393_v26 }
 0xb75   : > { %v8546_v0 = vadd.f32 %v5955_v51, %v8359_v35 }
 0xb76   : > { %v8551_v47 = vadd.f32 %v4474_v21, %v4394_v20 }
 0xb77   : > { %v5956_v43 = vpop.f32.mrb[128].mxu1  ;;  %v4210_v45 = vpop.f32.mrb[176].mxu0 }
 0xb78   : > { %v4211_v2 = vadd.f32 %v4210_v45, %v8445_v19  ;;  %v5957_v52 = vpop.f32.mrb[129].mxu1  ;;  %v4212_v25 = vpop.f32.mrb[177].mxu0  ;;  %v6345_v4 = vpack.i.bf16 %v8551_v47, %v8549_v5 }
 0xb79   : > { %v5958_v12 = vadd.f32 %v5957_v52, %v5956_v43  ;;  %v4213_v15 = vpop.f32.mrb[178].mxu0  ;;  %v5959_v6 = vpop.f32.mrb[130].mxu1 }
 0xb7a   : > { %v4395_v35 = vmul.f32 %v4329_v33, %v4211_v2  ;;  %v4214_v11 = vadd.f32 %v4213_v15, %v8449_v55  ;;  %6346 = vrot.lane.b32.xlu0 %v6345_v4, %s8807_s19  ;;  %6341 = vrot.lane.b32.xlu1 %v6345_v4, %s8806_s21  ;;  %v4215_v7 = vpop.f32.mrb[179].mxu0  ;;  %v5960_v21 = vpop.f32.mrb[131].mxu1 }
 0xb7b   : > { %v4115_v19 = vadd.f32 %v5958_v12, %v8369_v49  ;;  %v4489_v32 = vpop.permute.xlu1 %4488  ;;  %v4494_v53 = vpop.permute.xlu0 %4493 }
 0xb7c   : > { %v4396_v48 = vmul.f32 %v4334_v13, %v4214_v11  ;;  %v8560_v40 = vadd.f32 %v4479_v30, %v4395_v35 }
 0xb7e   : > { %v8562_v34 = vadd.f32 %v4484_v56, %v4396_v48 }
 0xb7f   : > { %v4218_v8 = vpop.f32.mrb[180].mxu0  ;;  %v4349_v13 = vpop.permute.xlu1 %4348 }
 0xb80   : > { %v4219_v33 = vadd.f32 %v4218_v8, %v8472_v58  ;;  %v4220_v10 = vpop.f32.mrb[181].mxu0  ;;  %v6355_v55 = vpack.i.bf16 %v8562_v34, %v8560_v40  ;;  %v4354_v58 = vpop.permute.xlu0 %4353 }
 0xb81   : > { %v4221_v54 = vpop.f32.mrb[182].mxu0 }
 0xb82   : > { %v4397_v17 = vmul.f32 %v4339_v36, %v4219_v33  ;;  %v4222_v29 = vadd.f32 %v4221_v54, %v8476_v61  ;;  %6356 = vrot.lane.b32.xlu0 %v6355_v55, %s8807_s19  ;;  %6351 = vrot.lane.b32.xlu1 %v6355_v55, %s8806_s21  ;;  %v4223_v49 = vpop.f32.mrb[183].mxu0 }
 0xb83   : > { %v4499_v36 = vpop.permute.xlu1 %4498 }
 0xb84   : > { %v4398_v30 = vmul.f32 %v4344_v24, %v4222_v29  ;;  %v8570_v63 = vadd.f32 %v4489_v32, %v4397_v17  ;;  %v4504_v43 = vpop.permute.xlu0 %4503 }
 0xb86   : > { %v8572_v46 = vadd.f32 %v4494_v53, %v4398_v30 }
 0xb87   : > { %v4226_v16 = vpop.f32.mrb[184].mxu0  ;;  %v4359_v10 = vpop.permute.xlu1 %4358 }
 0xb88   : > { %v4227_v26 = vadd.f32 %v4226_v16, %v8502_v27  ;;  %v4228_v60 = vpop.f32.mrb[185].mxu0  ;;  %v6365_v1 = vpack.i.bf16 %v8572_v46, %v8570_v63 }
 0xb89   : > { %v4229_v61 = vpop.f32.mrb[186].mxu0 }
 0xb8a   : > { %v4399_v44 = vmul.f32 %v4349_v13, %v4227_v26  ;;  %v4230_v51 = vadd.f32 %v4229_v61, %v8506_v28  ;;  %6366 = vrot.lane.b32.xlu0 %v6365_v1, %s8807_s19  ;;  %6361 = vrot.lane.b32.xlu1 %v6365_v1, %s8806_s21  ;;  %v4231_v20 = vpop.f32.mrb[187].mxu0 }
 0xb8c   : > { %v4400_v56 = vmul.f32 %v4354_v58, %v4230_v51  ;;  %v8580_v45 = vadd.f32 %v4499_v36, %v4399_v44 }
 0xb8e   : > { %v8582_v2 = vadd.f32 %v4504_v43, %v4400_v56 }
 0xb8f   : > { %v4234_v27 = vpop.f32.mrb[188].mxu0 }
 0xb90   : > { %v4235_v52 = vadd.f32 %v4234_v27, %v8522_v18  ;;  %v4236_v25 = vpop.f32.mrb[189].mxu0  ;;  %v6375_v4 = vpack.i.bf16 %v8582_v2, %v8580_v45 }
 0xb91   : > { %v4237_v28 = vpop.f32.mrb[190].mxu0 }
 0xb92   : > { %v4238_v12 = vadd.f32 %v4237_v28, %v8526_v3  ;;  %6376 = vrot.lane.b32.xlu0 %v6375_v4, %s8807_s19  ;;  %6371 = vrot.lane.b32.xlu1 %v6375_v4, %s8806_s21  ;;  %v4239_v15 = vpop.f32.mrb[191].mxu0  ;;  %v4364_v3 = vpop.permute.xlu0 %4363  ;;  %v4401_v26 = vmul.f32 %v4359_v10, %v4235_v52 }
 0xb94   : > { %v4402_v16 = vmul.f32 %v4364_v3, %v4238_v12 }
 0xb96   : > { %v4514_v55 = vpop.permute.xlu0 %4513 }
 0xb97   : > { %v4242_v6 = vpop.f32.mrb[192].mxu0  ;;  %v8599_v61 = vadd.f32 %v4514_v55, %v4402_v16 }
 0xb98   : > { %v4243_v35 = vadd.f32 %v4242_v6, %v8542_v22  ;;  %v4244_v11 = vpop.f32.mrb[193].mxu0 }
 0xb99   : > { %v4245_v7 = vpop.f32.mrb[194].mxu0 }
 0xb9a   : > { %v4246_v21 = vadd.f32 %v4245_v7, %v8546_v0  ;;  %v4247_v18 = vpop.f32.mrb[195].mxu0 }
 0xb9f   : > { %v4250_v24 = vpop.f32.mrb[196].mxu0 }
 0xba0   : > { %v8592_v48 = vadd.f32 %v4250_v24, %v4115_v19  ;;  %v4252_v8 = vpop.f32.mrb[197].mxu0 }
 0xba1   : > { %v4253_v32 = vpop.f32.mrb[198].mxu0 }
 0xba2   : > { %v4254_v33 = vpop.f32.mrb[199].mxu0 }
 0xbbc   : > { %v6287_v53 = vpop.permute.xlu0 %6286  ;;  %v6282_v54 = vpop.permute.xlu1 %6281 }
 0xbbd   : > { %v6284_v17 = vunpack.i.h.bf16 %v6282_v54  ;;  %v6283_v29 = vunpack.i.l.bf16 %v6282_v54  ;;  %v6289_v49 = vunpack.i.h.bf16 %v6287_v53  ;;  %v6288_v22 = vunpack.i.l.bf16 %v6287_v53 }
 0xbbf   : > { %v4657_v30 = vmax.f32 %v8399_v39, %v6284_v17  ;;  %v4656_v0 = vmax.f32 %v8396_v38, %v6283_v29 }
 0xbc1   : > { %v4757_v13 = vmax.f32 %v4657_v30, %v6289_v49  ;;  %v4756_v58 = vmax.f32 %v4656_v0, %v6288_v22 }
 0xbc3   : > { %v4781_v19 = vpack.c.bf16 %v4757_v13, %v4756_v58 }
 0xbc5   : > { %6031 = vmatmul.mubr.msk.bf16.vlgmr.msra.gmra.mrb[132].mxu1 %vm4794_vm1, %v4781_v19 }
 0xbc6   : > { %6034 = vmatprep.mubr.msk.bf16.mxu1 %vm6671_vm13, %v6670_v50 }
 0xbcd   : > { %v4374_v60 = vpop.permute.xlu0 %4373  ;;  %v4509_v1 = vpop.permute.xlu1 %4508 }
 0xbce   : > { %v8601_v44 = vadd.f32 %v4509_v1, %v4401_v26  ;;  %v4404_v32 = vmul.f32 %v4374_v60, %v4246_v21 }
 0xbd0   : > { %v6385_v38 = vpack.i.bf16 %v8599_v61, %v8601_v44 }
 0xbd1   : > { %v6297_v39 = vpop.permute.xlu0 %6296  ;;  %v6292_v51 = vpop.permute.xlu1 %6291 }
 0xbd2   : > { %v6294_v20 = vunpack.i.h.bf16 %v6292_v51  ;;  %v6293_v56 = vunpack.i.l.bf16 %v6292_v51  ;;  %6386 = vrot.lane.b32.xlu0 %v6385_v38, %s8807_s19  ;;  %6381 = vrot.lane.b32.xlu1 %v6385_v38, %s8806_s21  ;;  %v6299_v36 = vunpack.i.h.bf16 %v6297_v39  ;;  %v6298_v43 = vunpack.i.l.bf16 %v6297_v39 }
 0xbd4   : > { %v4659_v27 = vmax.f32 %v8429_v37, %v6294_v20  ;;  %v4658_v52 = vmax.f32 %v8426_v42, %v6293_v56 }
 0xbd5   : > { %v4524_v25 = vpop.permute.xlu0 %4523  ;;  %v4369_v4 = vpop.permute.xlu1 %4368 }
 0xbd6   : > { %v4759_v28 = vmax.f32 %v4659_v27, %v6299_v36  ;;  %v4758_v12 = vmax.f32 %v4658_v52, %v6298_v43  ;;  %v4403_v33 = vmul.f32 %v4369_v4, %v4243_v35  ;;  %v8614_v53 = vadd.f32 %v4524_v25, %v4404_v32 }
 0xbd8   : > { %v4782_v15 = vpack.c.bf16 %v4759_v28, %v4758_v12 }
 0xbd9   : > { %v6307_v6 = vpop.permute.xlu0 %6306  ;;  %v6302_v11 = vpop.permute.xlu1 %6301 }
 0xbda   : > { %v6304_v7 = vunpack.i.h.bf16 %v6302_v11  ;;  %v6303_v18 = vunpack.i.l.bf16 %v6302_v11  ;;  %6035 = vmatmul.mubr.msk.bf16.gmra.mrb[136].mxu1 %vm4794_vm1, %v4782_v15  ;;  %v6309_v24 = vunpack.i.h.bf16 %v6307_v6  ;;  %v6308_v8 = vunpack.i.l.bf16 %v6307_v6 }
 0xbdb   : > { %6038 = vmatprep.mubr.msk.bf16.mxu1 %vm6671_vm13, %v6670_v50 }
 0xbdc   : > { %v4661_v37 = vmax.f32 %v8459_v57, %v6304_v7  ;;  %v4660_v42 = vmax.f32 %v8456_v23, %v6303_v18 }
 0xbdd   : > { %v4519_v3 = vpop.permute.xlu1 %4518  ;;  %v6317_v29 = vpop.permute.xlu0 %6316 }
 0xbde   : > { %v4761_v10 = vmax.f32 %v4661_v37, %v6309_v24  ;;  %v4760_v55 = vmax.f32 %v4660_v42, %v6308_v8  ;;  %v8616_v54 = vadd.f32 %v4519_v3, %v4403_v33  ;;  %v6319_v23 = vunpack.i.h.bf16 %v6317_v29 }
 0xbdf   : > { %v6318_v57 = vunpack.i.l.bf16 %v6317_v29 }
 0xbe0   : > { %v4783_v17 = vpack.c.bf16 %v4761_v10, %v4760_v55  ;;  %v6395_v49 = vpack.i.bf16 %v8614_v53, %v8616_v54 }
 0xbe1   : > { %v6312_v22 = vpop.permute.xlu1 %6311 }
 0xbe2   : > { %v6314_v30 = vunpack.i.h.bf16 %v6312_v22  ;;  %v6313_v0 = vunpack.i.l.bf16 %v6312_v22  ;;  %6039 = vmatmul.mubr.msk.bf16.gmra.mrb[140].mxu1 %vm4794_vm1, %v4783_v17  ;;  %6396 = vrot.lane.b32.xlu0 %v6395_v49, %s8807_s19 }
 0xbe3   : > { %6391 = vrot.lane.b32.xlu1 %v6395_v49, %s8806_s21  ;;  %6042 = vmatprep.mubr.msk.bf16.mxu1 %vm6671_vm13, %v6670_v50 }
 0xbe4   : > { %v4663_v35 = vmax.f32 %v8486_v14, %v6314_v30  ;;  %v4662_v21 = vmax.f32 %v8483_v41, %v6313_v0 }
 0xbe5   : > { %v4529_v13 = vpop.permute.xlu0 %4528  ;;  %v4379_v58 = vpop.permute.xlu1 %4378 }
 0xbe6   : > { %v4763_v19 = vmax.f32 %v4663_v35, %v6319_v23  ;;  %v4762_v16 = vmax.f32 %v4662_v21, %v6318_v57  ;;  %v4405_v26 = vmul.f32 %v4379_v58, %v8592_v48 }
 0xbe8   : > { %v8628_v60 = vadd.f32 %v4529_v13, %v4405_v26  ;;  %v4784_v1 = vpack.c.bf16 %v4763_v19, %v4762_v16 }
 0xbe9   : > { %v6327_v38 = vpop.permute.xlu0 %6326  ;;  %v6322_v39 = vpop.permute.xlu1 %6321 }
 0xbea   : > { %v6324_v51 = vunpack.i.h.bf16 %v6322_v39  ;;  %v6323_v20 = vunpack.i.l.bf16 %v6322_v39  ;;  %4729 = vrot.lane.b32.xlu0 %v8628_v60, %s8807_s19  ;;  %4629 = vrot.lane.b32.xlu1 %v8628_v60, %s8806_s21  ;;  %v6329_v41 = vunpack.i.h.bf16 %v6327_v38  ;;  %v6328_v14 = vunpack.i.l.bf16 %v6327_v38  ;;  %s6100_s21 = smul.u32 200, %s8814_s27 }
 0xbeb   : > { %6043 = vmatmul.mubr.msk.bf16.gmra.mrb[144].mxu1 %vm4794_vm1, %v4784_v1 }
 0xbec   : > { %v4665_v56 = vmax.f32 %v8512_v59, %v6324_v51  ;;  %v4664_v48 = vmax.f32 %v8509_v31, %v6323_v20  ;;  %6046 = vmatprep.mubr.msk.bf16.mxu1 %vm6671_vm13, %v6670_v50  ;;  %s8683_s2 = scalar_lea.vmem %s8811_s28, %s6100_s21 }
 0xbed   : > { %v6332_v36 = vpop.permute.xlu1 %6331  ;;  %v6337_v4 = vpop.permute.xlu0 %6336 }
 0xbee   : > { %v4765_v43 = vmax.f32 %v4665_v56, %v6329_v41  ;;  %v4764_v27 = vmax.f32 %v4664_v48, %v6328_v14  ;;  %v6334_v52 = vunpack.i.h.bf16 %v6332_v36  ;;  %v6333_v25 = vunpack.i.l.bf16 %v6332_v36 }
 0xbef   : > { %v6339_v11 = vunpack.i.h.bf16 %v6337_v4  ;;  %v6338_v7 = vunpack.i.l.bf16 %v6337_v4 }
 0xbf0   : > { %v4785_v28 = vpack.c.bf16 %v4765_v43, %v4764_v27  ;;  %v4667_v12 = vmax.f32 %v8532_v62, %v6334_v52  ;;  %v4666_v15 = vmax.f32 %v8529_v9, %v6333_v25 }
 0xbf1   : > { %v6342_v6 = vpop.permute.xlu1 %6341  ;;  %v6347_v8 = vpop.permute.xlu0 %6346 }
 0xbf2   : > { %v4767_v31 = vmax.f32 %v4667_v12, %v6339_v11  ;;  %v4766_v59 = vmax.f32 %v4666_v15, %v6338_v7  ;;  %v6344_v18 = vunpack.i.h.bf16 %v6342_v6  ;;  %v6343_v24 = vunpack.i.l.bf16 %v6342_v6 }
 0xbf3   : > { %6047 = vmatmul.mubr.msk.bf16.gmra.mrb[148].mxu1 %vm4794_vm1, %v4785_v28  ;;  %v6349_v9 = vunpack.i.h.bf16 %v6347_v8  ;;  %v6348_v33 = vunpack.i.l.bf16 %v6347_v8 }
 0xbf4   : > { %6050 = vmatprep.mubr.msk.bf16.mxu1 %vm6671_vm13, %v6670_v50  ;;  %v4669_v37 = vmax.f32 %v8551_v47, %v6344_v18  ;;  %v4668_v42 = vmax.f32 %v8549_v5, %v6343_v24  ;;  %v4786_v62 = vpack.c.bf16 %v4767_v31, %v4766_v59 }
 0xbf5   : > { %v6352_v32 = vpop.permute.xlu1 %6351  ;;  %v6357_v29 = vpop.permute.xlu0 %6356 }
 0xbf6   : > { %v4769_v3 = vmax.f32 %v4669_v37, %v6349_v9  ;;  %v4768_v10 = vmax.f32 %v4668_v42, %v6348_v33  ;;  %v6354_v55 = vunpack.i.h.bf16 %v6352_v32  ;;  %v6353_v17 = vunpack.i.l.bf16 %v6352_v32 }
 0xbf7   : > { %v6359_v30 = vunpack.i.h.bf16 %v6357_v29  ;;  %v6358_v0 = vunpack.i.l.bf16 %v6357_v29 }
 0xbf8   : > { %v4671_v49 = vmax.f32 %v8562_v34, %v6354_v55  ;;  %v4670_v47 = vmax.f32 %v8560_v40, %v6353_v17  ;;  %v4787_v22 = vpack.c.bf16 %v4769_v3, %v4768_v10 }
 0xbfa   : > { %v4771_v23 = vmax.f32 %v4671_v49, %v6359_v30  ;;  %v4770_v57 = vmax.f32 %v4670_v47, %v6358_v0 }
 0xbfb   : > { %6051 = vmatmul.mubr.msk.bf16.gmra.mrb[152].mxu1 %vm4794_vm1, %v4786_v62 }
 0xbfc   : > { %6054 = vmatprep.mubr.msk.bf16.mxu1 %vm6671_vm13, %v6670_v50  ;;  %v6362_v5 = vpop.permute.xlu1 %6361  ;;  %v6367_v13 = vpop.permute.xlu0 %6366  ;;  %v4788_v19 = vpack.c.bf16 %v4771_v23, %v4770_v57 }
 0xbfd   : > { %v6364_v35 = vunpack.i.h.bf16 %v6362_v5  ;;  %v6363_v21 = vunpack.i.l.bf16 %v6362_v5  ;;  %v6369_v16 = vunpack.i.h.bf16 %v6367_v13  ;;  %v6368_v26 = vunpack.i.l.bf16 %v6367_v13 }
 0xbff   : > { %v4673_v58 = vmax.f32 %v8572_v46, %v6364_v35  ;;  %v4672_v34 = vmax.f32 %v8570_v63, %v6363_v21 }
 0xc01   : > { %v4773_v1 = vmax.f32 %v4673_v58, %v6369_v16  ;;  %v4772_v38 = vmax.f32 %v4672_v34, %v6368_v26 }
 0xc03   : > { %6055 = vmatmul.mubr.msk.bf16.gmra.mrb[156].mxu1 %vm4794_vm1, %v4787_v22  ;;  %v4789_v14 = vpack.c.bf16 %v4773_v1, %v4772_v38 }
 0xc04   : > { %6058 = vmatprep.mubr.msk.bf16.mxu1 %vm6671_vm13, %v6670_v50  ;;  %v6372_v40 = vpop.permute.xlu1 %6371  ;;  %v6377_v20 = vpop.permute.xlu0 %6376 }
 0xc05   : > { %v6374_v39 = vunpack.i.h.bf16 %v6372_v40  ;;  %v6373_v51 = vunpack.i.l.bf16 %v6372_v40  ;;  %v6379_v63 = vunpack.i.h.bf16 %v6377_v20  ;;  %v6378_v56 = vunpack.i.l.bf16 %v6377_v20 }
 0xc07   : > { %v4675_v41 = vmax.f32 %v8582_v2, %v6374_v39  ;;  %v4674_v46 = vmax.f32 %v8580_v45, %v6373_v51 }
 0xc09   : > { %v4775_v48 = vmax.f32 %v4675_v41, %v6379_v63  ;;  %v4774_v36 = vmax.f32 %v4674_v46, %v6378_v56 }
 0xc0b   : > { %6059 = vmatmul.mubr.msk.bf16.gmra.mrb[160].mxu1 %vm4794_vm1, %v4788_v19  ;;  %v4790_v43 = vpack.c.bf16 %v4775_v48, %v4774_v36 }
 0xc0c   : > { %6062 = vmatprep.mubr.msk.bf16.mxu1 %vm6671_vm13, %v6670_v50 }
 0xc13   : > { %6063 = vmatmul.mubr.msk.bf16.gmra.mrb[164].mxu1 %vm4794_vm1, %v4789_v14 }
 0xc14   : > { %6066 = vmatprep.mubr.msk.bf16.mxu1 %vm6671_vm13, %v6670_v50 }
 0xc1b   : > { %6067 = vmatmul.mubr.msk.bf16.gmra.mrb[168].mxu1 %vm4794_vm1, %v4790_v43 }
 0xc1c   : > { %6070 = vmatprep.mubr.msk.bf16.mxu1 %vm6671_vm13, %v6670_v50 }
 0xc44   : > { %v6387_v27 = vpop.permute.xlu0 %6386  ;;  %v6382_v2 = vpop.permute.xlu1 %6381 }
 0xc45   : > { %v6384_v52 = vunpack.i.h.bf16 %v6382_v2  ;;  %v6383_v45 = vunpack.i.l.bf16 %v6382_v2  ;;  %v6389_v25 = vunpack.i.h.bf16 %v6387_v27  ;;  %v6388_v4 = vunpack.i.l.bf16 %v6387_v27 }
 0xc47   : > { %v4677_v28 = vmax.f32 %v8599_v61, %v6384_v52  ;;  %v4676_v12 = vmax.f32 %v8601_v44, %v6383_v45 }
 0xc49   : > { %v4777_v15 = vmax.f32 %v4677_v28, %v6389_v25  ;;  %v4776_v6 = vmax.f32 %v4676_v12, %v6388_v4 }
 0xc4b   : > { %v4791_v11 = vpack.c.bf16 %v4777_v15, %v4776_v6 }
 0xc4d   : > { %6071 = vmatmul.mubr.msk.bf16.gmra.mrb[172].mxu1 %vm4794_vm1, %v4791_v11 }
 0xc4e   : > { %6074 = vmatprep.mubr.msk.bf16.mxu1 %vm6671_vm13, %v6670_v50 }
 0xc54   : > { %v6397_v7 = vpop.permute.xlu0 %6396 }
 0xc55   : > { %v6392_v31 = vpop.permute.xlu1 %6391  ;;  %v6399_v24 = vunpack.i.h.bf16 %v6397_v7  ;;  %v6398_v8 = vunpack.i.l.bf16 %v6397_v7 }
 0xc56   : > { %v6394_v59 = vunpack.i.h.bf16 %v6392_v31  ;;  %v6393_v18 = vunpack.i.l.bf16 %v6392_v31 }
 0xc58   : > { %v4679_v37 = vmax.f32 %v8614_v53, %v6394_v59  ;;  %v4678_v61 = vmax.f32 %v8616_v54, %v6393_v18 }
 0xc5a   : > { %v4779_v42 = vmax.f32 %v4679_v37, %v6399_v24  ;;  %v4778_v44 = vmax.f32 %v4678_v61, %v6398_v8 }
 0xc5c   : > { %v4630_v62 = vpop.permute.xlu1 %4629  ;;  %v4792_v32 = vpack.c.bf16 %v4779_v42, %v4778_v44  ;;  %v4730_v33 = vpop.permute.xlu0 %4729 }
 0xc5d   : > { %v4680_v9 = vmax.f32 %v8628_v60, %v4630_v62 }
 0xc5e   : > { %6075 = vmatmul.mubr.msk.bf16.gmra.mrb[176].mxu1 %vm4794_vm1, %v4792_v32 }
 0xc5f   : > { %6078 = vmatprep.mubr.msk.bf16.mxu1 %vm6671_vm13, %v6670_v50  ;;  %v4780_v3 = vmax.f32 %v4680_v9, %v4730_v33 }
 0xc61   : > { %v4793_v10 = vpack.c.bf16 %v4780_v3, %v4780_v3 }
 0xc66   : > { %6079 = vmatmul.mubr.msk.bf16.gmra.mrb[180].mxu1 %vm4794_vm1, %v4793_v10 }
 0xc98   : > { %v4871_v53 = vpop.f32.mrb[132].mxu1 }
 0xc99   : > { %v4998_v55 = vmin.f32 %v4871_v53, 0.0  ;;  %v6032_v54 = vpop.f32.mrb[133].mxu1  ;;  %vm4973_vm13 = vcmp.gt.f32.partialorder %v4871_v53, 0.0 }
 0xc9a   : > { %v4874_v17 = vpop.f32.mrb[134].mxu1 }
 0xc9b   : > { %v5023_v29 = vmul.f32 1.442695, %v4998_v55  ;;  %v4999_v49 = vmin.f32 %v4874_v17, 0.0  ;;  %v6033_v47 = vpop.f32.mrb[135].mxu1  ;;  %vm4974_vm15 = vcmp.gt.f32.partialorder %v4874_v17, 0.0 }
 0xc9d   : > { %6530 = vpow2.f32 %v5023_v29  ;;  %v5025_v60 = vmul.f32 1.442695, %v4999_v49 }
 0xc9f   : > { %6532 = vpow2.f32 %v5025_v60 }
 0xca7   : > { %v6531_v22 = vpop.eup %6530 }
 0xca8   : > { %v5477_v50 = vadd.f32 -1.0, %v6531_v22 }
 0xca9   : > { %v6533_v5 = vpop.eup %6532 }
 0xcaa   : > { %v5098_v30 = vsel %vm4973_vm13, %v4871_v53, %v5477_v50  ;;  %v5478_v0 = vadd.f32 -1.0, %v6533_v5 }
 0xcab   : > { %5124 = vst.msk [vmem:[%s8683_s2] sm:$0xff] %vm5123_vm3, %v5098_v30 }
 0xcac   : > { %v5099_v23 = vsel %vm4974_vm15, %v4874_v17, %v5478_v0 }
 0xcad   : > { %5125 = vst.msk [vmem:[%s8683_s2 + $0x8] sm:$0xff] %vm5123_vm3, %v5099_v23  ;;  %v4879_v57 = vpop.f32.mrb[136].mxu1 }
 0xcae   : > { %v5000_v35 = vmin.f32 %v4879_v57, 0.0  ;;  %v6036_v21 = vpop.f32.mrb[137].mxu1  ;;  %vm4975_vm0 = vcmp.gt.f32.partialorder %v4879_v57, 0.0 }
 0xcaf   : > { %v4882_v13 = vpop.f32.mrb[138].mxu1 }
 0xcb0   : > { %v5027_v58 = vmul.f32 1.442695, %v5000_v35  ;;  %v5001_v34 = vmin.f32 %v4882_v13, 0.0  ;;  %v6037_v19 = vpop.f32.mrb[139].mxu1  ;;  %vm4976_vm9 = vcmp.gt.f32.partialorder %v4882_v13, 0.0 }
 0xcb2   : > { %6534 = vpow2.f32 %v5027_v58  ;;  %v5029_v40 = vmul.f32 1.442695, %v5001_v34 }
 0xcb4   : > { %6536 = vpow2.f32 %v5029_v40 }
 0xcb5   : > { %v4887_v16 = vpop.f32.mrb[140].mxu1 }
 0xcb6   : > { %v5002_v26 = vmin.f32 %v4887_v16, 0.0  ;;  %v6040_v1 = vpop.f32.mrb[141].mxu1  ;;  %vm4977_vm14 = vcmp.gt.f32.partialorder %v4887_v16, 0.0 }
 0xcb7   : > { %v4890_v38 = vpop.f32.mrb[142].mxu1 }
 0xcb8   : > { %v5031_v39 = vmul.f32 1.442695, %v5002_v26  ;;  %v5003_v51 = vmin.f32 %v4890_v38, 0.0  ;;  %v6041_v20 = vpop.f32.mrb[143].mxu1  ;;  %vm4978_vm4 = vcmp.gt.f32.partialorder %v4890_v38, 0.0 }
 0xcba   : > { %6538 = vpow2.f32 %v5031_v39  ;;  %v5033_v41 = vmul.f32 1.442695, %v5003_v51 }
 0xcbc   : > { %v6535_v46 = vpop.eup %6534  ;;  %6540 = vpow2.f32 %v5033_v41 }
 0xcbd   : > { %v5479_v14 = vadd.f32 -1.0, %v6535_v46 }
 0xcbe   : > { %v6537_v63 = vpop.eup %6536  ;;  %v4895_v56 = vpop.f32.mrb[144].mxu1 }
 0xcbf   : > { %v5100_v48 = vsel %vm4975_vm0, %v4879_v57, %v5479_v14  ;;  %v5480_v36 = vadd.f32 -1.0, %v6537_v63  ;;  %v5004_v43 = vmin.f32 %v4895_v56, 0.0  ;;  %v6044_v27 = vpop.f32.mrb[145].mxu1  ;;  %vm4979_vm5 = vcmp.gt.f32.partialorder %v4895_v56, 0.0 }
 0xcc0   : > { %5126 = vst.msk [vmem:[%s8683_s2 + $0x10] sm:$0xff] %vm5123_vm3, %v5100_v48  ;;  %v4898_v2 = vpop.f32.mrb[146].mxu1 }
 0xcc1   : > { %v5101_v52 = vsel %vm4976_vm9, %v4882_v13, %v5480_v36  ;;  %v5035_v45 = vmul.f32 1.442695, %v5004_v43  ;;  %v5005_v25 = vmin.f32 %v4898_v2, 0.0  ;;  %v6045_v4 = vpop.f32.mrb[147].mxu1  ;;  %vm4980_vm11 = vcmp.gt.f32.partialorder %v4898_v2, 0.0 }
 0xcc2   : > { %5127 = vst.msk [vmem:[%s8683_s2 + $0x18] sm:$0xff] %vm5123_vm3, %v5101_v52 }
 0xcc3   : > { %6542 = vpow2.f32 %v5035_v45  ;;  %v5037_v28 = vmul.f32 1.442695, %v5005_v25 }
 0xcc4   : > { %v6539_v12 = vpop.eup %6538 }
 0xcc5   : > { %v5481_v15 = vadd.f32 -1.0, %v6539_v12  ;;  %6544 = vpow2.f32 %v5037_v28 }
 0xcc6   : > { %v6541_v6 = vpop.eup %6540  ;;  %v4903_v11 = vpop.f32.mrb[148].mxu1 }
 0xcc7   : > { %v5102_v7 = vsel %vm4977_vm14, %v4887_v16, %v5481_v15  ;;  %v5482_v31 = vadd.f32 -1.0, %v6541_v6  ;;  %v5006_v59 = vmin.f32 %v4903_v11, 0.0  ;;  %v6048_v18 = vpop.f32.mrb[149].mxu1  ;;  %vm4981_vm8 = vcmp.gt.f32.partialorder %v4903_v11, 0.0 }
 0xcc8   : > { %5128 = vst.msk [vmem:[%s8683_s2 + $0x20] sm:$0xff] %vm5123_vm3, %v5102_v7  ;;  %v4906_v24 = vpop.f32.mrb[150].mxu1 }
 0xcc9   : > { %v5103_v8 = vsel %vm4978_vm4, %v4890_v38, %v5482_v31  ;;  %v5039_v37 = vmul.f32 1.442695, %v5006_v59  ;;  %v5007_v61 = vmin.f32 %v4906_v24, 0.0  ;;  %v6049_v42 = vpop.f32.mrb[151].mxu1  ;;  %vm4982_vm12 = vcmp.gt.f32.partialorder %v4906_v24, 0.0 }
 0xcca   : > { %5129 = vst.msk [vmem:[%s8683_s2 + $0x28] sm:$0xff] %vm5123_vm3, %v5103_v8 }
 0xccb   : > { %6546 = vpow2.f32 %v5039_v37  ;;  %v5041_v44 = vmul.f32 1.442695, %v5007_v61 }
 0xccd   : > { %v6543_v62 = vpop.eup %6542  ;;  %6548 = vpow2.f32 %v5041_v44 }
 0xcce   : > { %v5483_v32 = vadd.f32 -1.0, %v6543_v62  ;;  %v4911_v9 = vpop.f32.mrb[152].mxu1 }
 0xccf   : > { %v6545_v33 = vpop.eup %6544  ;;  %v5008_v3 = vmin.f32 %v4911_v9, 0.0  ;;  %v6052_v10 = vpop.f32.mrb[153].mxu1  ;;  %vm4983_vm7 = vcmp.gt.f32.partialorder %v4911_v9, 0.0 }
 0xcd0   : > { %v5104_v53 = vsel %vm4979_vm5, %v4895_v56, %v5483_v32  ;;  %v5484_v55 = vadd.f32 -1.0, %v6545_v33  ;;  %v4914_v54 = vpop.f32.mrb[154].mxu1 }
 0xcd1   : > { %5130 = vst.msk [vmem:[%s8683_s2 + $0x30] sm:$0xff] %vm5123_vm3, %v5104_v53  ;;  %v5043_v17 = vmul.f32 1.442695, %v5008_v3  ;;  %v5009_v29 = vmin.f32 %v4914_v54, 0.0  ;;  %v6053_v49 = vpop.f32.mrb[155].mxu1  ;;  %vm4984_vm6 = vcmp.gt.f32.partialorder %v4914_v54, 0.0 }
 0xcd2   : > { %v5105_v47 = vsel %vm4980_vm11, %v4898_v2, %v5484_v55 }
 0xcd3   : > { %5131 = vst.msk [vmem:[%s8683_s2 + $0x38] sm:$0xff] %vm5123_vm3, %v5105_v47  ;;  %6550 = vpow2.f32 %v5043_v17  ;;  %v5045_v60 = vmul.f32 1.442695, %v5009_v29 }
 0xcd5   : > { %v6547_v22 = vpop.eup %6546  ;;  %6552 = vpow2.f32 %v5045_v60 }
 0xcd6   : > { %v5485_v50 = vadd.f32 -1.0, %v6547_v22  ;;  %v4919_v5 = vpop.f32.mrb[156].mxu1 }
 0xcd7   : > { %v6549_v30 = vpop.eup %6548  ;;  %v5010_v0 = vmin.f32 %v4919_v5, 0.0  ;;  %v6056_v23 = vpop.f32.mrb[157].mxu1  ;;  %vm4985_vm10 = vcmp.gt.f32.partialorder %v4919_v5, 0.0 }
 0xcd8   : > { %v5106_v57 = vsel %vm4981_vm8, %v4903_v11, %v5485_v50  ;;  %v5486_v35 = vadd.f32 -1.0, %v6549_v30  ;;  %v4922_v21 = vpop.f32.mrb[158].mxu1 }
 0xcd9   : > { %5132 = vst.msk [vmem:[%s8683_s2 + $0x40] sm:$0xff] %vm5123_vm3, %v5106_v57  ;;  %v5047_v13 = vmul.f32 1.442695, %v5010_v0  ;;  %v5011_v58 = vmin.f32 %v4922_v21, 0.0  ;;  %v6057_v34 = vpop.f32.mrb[159].mxu1  ;;  %vm4986_vm2 = vcmp.gt.f32.partialorder %v4922_v21, 0.0 }
 0xcda   : > { %v5107_v19 = vsel %vm4982_vm12, %v4906_v24, %v5486_v35 }
 0xcdb   : > { %5133 = vst.msk [vmem:[%s8683_s2 + $0x48] sm:$0xff] %vm5123_vm3, %v5107_v19  ;;  %6554 = vpow2.f32 %v5047_v13  ;;  %v5049_v40 = vmul.f32 1.442695, %v5011_v58 }
 0xcdd   : > { %v6551_v16 = vpop.eup %6550  ;;  %6556 = vpow2.f32 %v5049_v40 }
 0xcde   : > { %v5487_v26 = vadd.f32 -1.0, %v6551_v16  ;;  %v4927_v1 = vpop.f32.mrb[160].mxu1 }
 0xcdf   : > { %v6553_v38 = vpop.eup %6552  ;;  %v5012_v39 = vmin.f32 %v4927_v1, 0.0  ;;  %v6060_v51 = vpop.f32.mrb[161].mxu1  ;;  %vm4987_vm1 = vcmp.gt.f32.partialorder %v4927_v1, 0.0 }
 0xce0   : > { %v5108_v20 = vsel %vm4983_vm7, %v4911_v9, %v5487_v26  ;;  %v5488_v41 = vadd.f32 -1.0, %v6553_v38  ;;  %v4930_v46 = vpop.f32.mrb[162].mxu1 }
 0xce1   : > { %5134 = vst.msk [vmem:[%s8683_s2 + $0x50] sm:$0xff] %vm5123_vm3, %v5108_v20  ;;  %v5051_v14 = vmul.f32 1.442695, %v5012_v39  ;;  %v5013_v63 = vmin.f32 %v4930_v46, 0.0  ;;  %v6061_v56 = vpop.f32.mrb[163].mxu1  ;;  %vm4988_vm13 = vcmp.gt.f32.partialorder %v4930_v46, 0.0 }
 0xce2   : > { %v5109_v48 = vsel %vm4984_vm6, %v4914_v54, %v5488_v41 }
 0xce3   : > { %5135 = vst.msk [vmem:[%s8683_s2 + $0x58] sm:$0xff] %vm5123_vm3, %v5109_v48  ;;  %6558 = vpow2.f32 %v5051_v14  ;;  %v5053_v36 = vmul.f32 1.442695, %v5013_v63 }
 0xce5   : > { %v6555_v43 = vpop.eup %6554  ;;  %6560 = vpow2.f32 %v5053_v36 }
 0xce6   : > { %v5489_v27 = vadd.f32 -1.0, %v6555_v43  ;;  %v4935_v2 = vpop.f32.mrb[164].mxu1 }
 0xce7   : > { %v6557_v52 = vpop.eup %6556  ;;  %v5014_v45 = vmin.f32 %v4935_v2, 0.0  ;;  %v6064_v25 = vpop.f32.mrb[165].mxu1  ;;  %vm4989_vm15 = vcmp.gt.f32.partialorder %v4935_v2, 0.0 }
 0xce8   : > { %v5110_v4 = vsel %vm4985_vm10, %v4919_v5, %v5489_v27  ;;  %v5490_v28 = vadd.f32 -1.0, %v6557_v52  ;;  %v4938_v12 = vpop.f32.mrb[166].mxu1 }
 0xce9   : > { %5136 = vst.msk [vmem:[%s8683_s2 + $0x60] sm:$0xff] %vm5123_vm3, %v5110_v4  ;;  %v5055_v15 = vmul.f32 1.442695, %v5014_v45  ;;  %v5015_v6 = vmin.f32 %v4938_v12, 0.0  ;;  %v6065_v11 = vpop.f32.mrb[167].mxu1  ;;  %vm4990_vm0 = vcmp.gt.f32.partialorder %v4938_v12, 0.0 }
 0xcea   : > { %v5111_v7 = vsel %vm4986_vm2, %v4922_v21, %v5490_v28 }
 0xceb   : > { %5137 = vst.msk [vmem:[%s8683_s2 + $0x68] sm:$0xff] %vm5123_vm3, %v5111_v7  ;;  %6562 = vpow2.f32 %v5055_v15  ;;  %v5057_v31 = vmul.f32 1.442695, %v5015_v6 }
 0xced   : > { %v6559_v59 = vpop.eup %6558  ;;  %6564 = vpow2.f32 %v5057_v31 }
 0xcee   : > { %v5491_v18 = vadd.f32 -1.0, %v6559_v59  ;;  %v4943_v24 = vpop.f32.mrb[168].mxu1 }
 0xcef   : > { %v6561_v8 = vpop.eup %6560  ;;  %v5016_v37 = vmin.f32 %v4943_v24, 0.0  ;;  %v6068_v61 = vpop.f32.mrb[169].mxu1  ;;  %vm4991_vm9 = vcmp.gt.f32.partialorder %v4943_v24, 0.0 }
 0xcf0   : > { %v5112_v42 = vsel %vm4987_vm1, %v4927_v1, %v5491_v18  ;;  %v5492_v44 = vadd.f32 -1.0, %v6561_v8  ;;  %v4946_v62 = vpop.f32.mrb[170].mxu1 }
 0xcf1   : > { %5138 = vst.msk [vmem:[%s8683_s2 + $0x70] sm:$0xff] %vm5123_vm3, %v5112_v42  ;;  %v5059_v32 = vmul.f32 1.442695, %v5016_v37  ;;  %v5017_v9 = vmin.f32 %v4946_v62, 0.0  ;;  %v6069_v33 = vpop.f32.mrb[171].mxu1  ;;  %vm4992_vm14 = vcmp.gt.f32.partialorder %v4946_v62, 0.0 }
 0xcf2   : > { %v5113_v3 = vsel %vm4988_vm13, %v4930_v46, %v5492_v44 }
 0xcf3   : > { %5139 = vst.msk [vmem:[%s8683_s2 + $0x78] sm:$0xff] %vm5123_vm3, %v5113_v3  ;;  %6566 = vpow2.f32 %v5059_v32  ;;  %v5061_v10 = vmul.f32 1.442695, %v5017_v9 }
 0xcf5   : > { %v6563_v53 = vpop.eup %6562  ;;  %6568 = vpow2.f32 %v5061_v10 }
 0xcf6   : > { %v5493_v55 = vadd.f32 -1.0, %v6563_v53 }
 0xcf7   : > { %v6565_v54 = vpop.eup %6564 }
 0xcf8   : > { %v5114_v17 = vsel %vm4989_vm15, %v4935_v2, %v5493_v55  ;;  %v5494_v29 = vadd.f32 -1.0, %v6565_v54 }
 0xcf9   : > { %5140 = vst.msk [vmem:[%s8683_s2 + $0x80] sm:$0xff] %vm5123_vm3, %v5114_v17 }
 0xcfa   : > { %v5115_v49 = vsel %vm4990_vm0, %v4938_v12, %v5494_v29 }
 0xcfb   : > { %5141 = vst.msk [vmem:[%s8683_s2 + $0x88] sm:$0xff] %vm5123_vm3, %v5115_v49 }
 0xcfd   : > { %v6567_v47 = vpop.eup %6566 }
 0xcfe   : > { %v5495_v60 = vadd.f32 -1.0, %v6567_v47 }
 0xcff   : > { %v6569_v22 = vpop.eup %6568 }
 0xd00   : > { %v5116_v50 = vsel %vm4991_vm9, %v4943_v24, %v5495_v60  ;;  %v5496_v5 = vadd.f32 -1.0, %v6569_v22 }
 0xd01   : > { %5142 = vst.msk [vmem:[%s8683_s2 + $0x90] sm:$0xff] %vm5123_vm3, %v5116_v50 }
 0xd02   : > { %v5117_v30 = vsel %vm4992_vm14, %v4946_v62, %v5496_v5 }
 0xd03   : > { %5143 = vst.msk [vmem:[%s8683_s2 + $0x98] sm:$0xff] %vm5123_vm3, %v5117_v30 }
 0xd20   : > { %v4951_v0 = vpop.f32.mrb[172].mxu1 }
 0xd21   : > { %v5018_v23 = vmin.f32 %v4951_v0, 0.0  ;;  %v6072_v57 = vpop.f32.mrb[173].mxu1  ;;  %vm4993_vm4 = vcmp.gt.f32.partialorder %v4951_v0, 0.0 }
 0xd22   : > { %v4954_v35 = vpop.f32.mrb[174].mxu1 }
 0xd23   : > { %v5063_v21 = vmul.f32 1.442695, %v5018_v23  ;;  %v5019_v13 = vmin.f32 %v4954_v35, 0.0  ;;  %v6073_v58 = vpop.f32.mrb[175].mxu1  ;;  %vm4994_vm5 = vcmp.gt.f32.partialorder %v4954_v35, 0.0 }
 0xd25   : > { %6570 = vpow2.f32 %v5063_v21  ;;  %v5065_v34 = vmul.f32 1.442695, %v5019_v13 }
 0xd27   : > { %6572 = vpow2.f32 %v5065_v34 }
 0xd2f   : > { %v6571_v19 = vpop.eup %6570 }
 0xd30   : > { %v5497_v40 = vadd.f32 -1.0, %v6571_v19 }
 0xd31   : > { %v6573_v16 = vpop.eup %6572  ;;  %v4959_v26 = vpop.f32.mrb[176].mxu1 }
 0xd32   : > { %v5118_v1 = vsel %vm4993_vm4, %v4951_v0, %v5497_v40  ;;  %v5498_v38 = vadd.f32 -1.0, %v6573_v16  ;;  %v5020_v39 = vmin.f32 %v4959_v26, 0.0  ;;  %v6076_v51 = vpop.f32.mrb[177].mxu1  ;;  %vm4995_vm11 = vcmp.gt.f32.partialorder %v4959_v26, 0.0 }
 0xd33   : > { %5144 = vst.msk [vmem:[%s8683_s2 + $0xa0] sm:$0xff] %vm5123_vm3, %v5118_v1  ;;  %v4962_v20 = vpop.f32.mrb[178].mxu1 }
 0xd34   : > { %v5119_v41 = vsel %vm4994_vm5, %v4954_v35, %v5498_v38  ;;  %v5067_v46 = vmul.f32 1.442695, %v5020_v39  ;;  %v5021_v14 = vmin.f32 %v4962_v20, 0.0  ;;  %v6077_v63 = vpop.f32.mrb[179].mxu1  ;;  %vm4996_vm8 = vcmp.gt.f32.partialorder %v4962_v20, 0.0 }
 0xd35   : > { %5145 = vst.msk [vmem:[%s8683_s2 + $0xa8] sm:$0xff] %vm5123_vm3, %v5119_v41 }
 0xd36   : > { %6574 = vpow2.f32 %v5067_v46  ;;  %v5069_v56 = vmul.f32 1.442695, %v5021_v14 }
 0xd38   : > { %6576 = vpow2.f32 %v5069_v56 }
 0xd39   : > { %v4967_v48 = vpop.f32.mrb[180].mxu1 }
 0xd3a   : > { %v5022_v36 = vmin.f32 %v4967_v48, 0.0  ;;  %v6080_v43 = vpop.f32.mrb[181].mxu1  ;;  %vm4997_vm12 = vcmp.gt.f32.partialorder %v4967_v48, 0.0 }
 0xd3b   : > { %v4970_v27 = vpop.f32.mrb[182].mxu1 }
 0xd3c   : > { %v5071_v2 = vmul.f32 1.442695, %v5022_v36  ;;  %v6081_v52 = vpop.f32.mrb[183].mxu1 }
 0xd3e   : > { %6578 = vpow2.f32 %v5071_v2 }
 0xd40   : > { %v6575_v45 = vpop.eup %6574 }
 0xd41   : > { %v5499_v25 = vadd.f32 -1.0, %v6575_v45 }
 0xd42   : > { %v6577_v4 = vpop.eup %6576 }
 0xd43   : > { %v5120_v28 = vsel %vm4995_vm11, %v4959_v26, %v5499_v25  ;;  %v5500_v12 = vadd.f32 -1.0, %v6577_v4 }
 0xd44   : > { %5146 = vst.msk [vmem:[%s8683_s2 + $0xb0] sm:$0xff] %vm5123_vm3, %v5120_v28 }
 0xd45   : > { %v5121_v15 = vsel %vm4996_vm8, %v4962_v20, %v5500_v12 }
 0xd46   : > { %5147 = vst.msk [vmem:[%s8683_s2 + $0xb8] sm:$0xff] %vm5123_vm3, %v5121_v15 }
 0xd48   : > { %v6579_v6 = vpop.eup %6578 }
 0xd49   : > { %v5501_v11 = vadd.f32 -1.0, %v6579_v6 }
 0xd4b   : > { %v5122_v7 = vsel %vm4997_vm12, %v4967_v48, %v5501_v11 }
 0xd4c   : > { %5148 = vst.msk [vmem:[%s8683_s2 + $0xc0] sm:$0xff] %vm5123_vm3, %v5122_v7 }
 0xd4d PF: > { %s8812_s27 = sld [smem:[#allocation8_spill]] }
 0xd53   : > { %s29_s24 = sadd.s32 1, %s8812_s27  }
 0xd54   : > { %p26_p5 = scmp.ge.s32.totalorder %s29_s24, 4  }
 0xd56   :  { %28 = sbr.rel (!%p26_p5) target bundleno = 11 (0xb), region = 127 }
 0xd5d   :  { %5170 = vsyncpa [#allocation3], 1 }
 0xd5e   :  { %5172 = vsyncpa [#allocation3 + $0x1], 1 }
 0xd5f   :  { %5173 = vsyncpa [#allocation5], 1 }

</bundles_post_ra>
